<compile_context>
chip_gen: v6e
topology: v6e:2x2x1
jax: 0.10.0
libtpu: 0.0.40
codegen_flags: <defaults>
</compile_context>

<pallas_src>
import jax
import jax.numpy as jnp
from jax import lax
from jax.experimental import pallas as pl
from jax.experimental.pallas import tpu as pltpu


def conv_kernel(w_s, b_s, x_ref, o_ref):
    # w_s : SMEM (OC*C*KH*KW,) f32   b_s : SMEM (OC,) f32
    # x_ref: VMEM (nb, C, H, W)      o_ref: VMEM (nb, OC, OH, OW)
    nb, C, H, W = x_ref.shape
    _, OC, OH, OW = o_ref.shape
    KH, KW = H - OH + 1, W - OW + 1
    CKK = C * KH * KW

    for n in range(nb):
        # init accumulators with the bias (scalar broadcast from SMEM)
        acc = [jnp.zeros((OH, OW), jnp.float32) + b_s[oc] for oc in range(OC)]
        for c in range(C):
            for kh in range(KH):
                for kw in range(KW):
                    # shifted (OH, OW) window of the resident plane = in-kernel im2col
                    patch = x_ref[n, c, kh:kh + OH, kw:kw + OW].astype(jnp.float32)
                    base = (c * KH + kh) * KW + kw
                    for oc in range(OC):
                        acc[oc] = acc[oc] + w_s[oc * CKK + base] * patch
        for oc in range(OC):
            o_ref[n, oc] = acc[oc].astype(o_ref.dtype)


def _pick_batch_block(N, bytes_per_sample, max_nb=8, vmem_budget=8 << 20):
    """Samples per grid step: >=2 parallel steps when N>=2, capped by VMEM budget."""
    if N >= 2:
        nb = min(max_nb, max(1, N // 2))
    else:
        nb = 1
    nb = max(1, min(nb, max(1, vmem_budget // max(bytes_per_sample, 1))))
    return nb


def conv2d_pallas(x, w, b):
    N, C, H, W = x.shape
    OC, C2, KH, KW = w.shape
    assert C2 == C
    OH, OW = H - KH + 1, W - KW + 1

    # per-sample in+out block bytes (x2 for double buffering)
    bps = 2 * 4 * (C * H * W + OC * OH * OW)
    nb = _pick_batch_block(N, bps)

    # pad batch UP to a multiple of the block (never shrink the block)
    Np = pl.cdiv(N, nb) * nb
    xp = x if Np == N else jnp.pad(x, ((0, Np - N), (0, 0), (0, 0), (0, 0)))

    w_flat = w.reshape(-1).astype(jnp.float32)   # (OC*C*KH*KW,) -> SMEM
    b_flat = b.astype(jnp.float32)               # (OC,)         -> SMEM

    cost = pl.CostEstimate(
        flops=2 * N * OC * C * KH * KW * OH * OW,
        transcendentals=0,
        bytes_accessed=4 * (x.size + w.size + b.size + N * OC * OH * OW),
    )

    out = pl.pallas_call(
        conv_kernel,
        out_shape=jax.ShapeDtypeStruct((Np, OC, OH, OW), x.dtype),
        grid_spec=pltpu.PrefetchScalarGridSpec(
            num_scalar_prefetch=0,
            grid=(Np // nb,),
            in_specs=[
                pl.BlockSpec(memory_space=pltpu.MemorySpace.SMEM),   # weights
                pl.BlockSpec(memory_space=pltpu.MemorySpace.SMEM),   # bias
                pl.BlockSpec((nb, C, H, W), lambda i: (i, 0, 0, 0)),  # activations
            ],
            out_specs=pl.BlockSpec((nb, OC, OH, OW), lambda i: (i, 0, 0, 0)),
        ),
        compiler_params=pltpu.CompilerParams(
            dimension_semantics=("parallel",),
        ),
        cost_estimate=cost,
    )(w_flat, b_flat, xp)

    return out if Np == N else out[:N]


def init_params(key, in_ch=3, out_ch=6, k=3):
    # Deterministic init mirroring PyTorch Conv2d default (uniform in +-1/sqrt(fan_in)).
    kw_key, kb_key = jax.random.split(key)
    fan_in = in_ch * k * k
    bound = 1.0 / jnp.sqrt(fan_in)
    w = jax.random.uniform(kw_key, (out_ch, in_ch, k, k), jnp.float32, -bound, bound)
    b = jax.random.uniform(kb_key, (out_ch,), jnp.float32, -bound, bound)
    return w, b


if __name__ == "__main__":
    key = jax.random.PRNGKey(0)
    kx, kp = jax.random.split(key)

    x = jax.random.normal(kx, (2, 3, 16, 16), dtype=jnp.float32)  # NCHW
    w, b = init_params(kp)

    out = conv2d_pallas(x, w, b)
    out = jax.block_until_ready(out)

    # Reference check against XLA's conv (same NCHW/OIHW convention as PyTorch).
    ref = lax.conv_general_dilated(
        x, w, window_strides=(1, 1), padding="VALID",
        dimension_numbers=("NCHW", "OIHW", "NCHW"),
    ) + b.reshape(1, -1, 1, 1)

    assert out.shape == (2, 6, 14, 14), out.shape
    assert jnp.allclose(out, ref, atol=1e-5, rtol=1e-5), float(jnp.max(jnp.abs(out - ref)))

    print("KERNEL_OK")
</pallas_src>

<mosaic_0001>
module attributes {stable_mosaic.version = 11 : i64} {
  func.func @conv_kernel(%arg0: i32, %arg1: memref<162xf32, #tpu.memory_space<smem>>, %arg2: memref<6xf32, #tpu.memory_space<smem>>, %arg3: memref<1x3x16x16xf32, #tpu.memory_space<vmem>>, %arg4: memref<1x6x14x14xf32, #tpu.memory_space<vmem>>) attributes {dimension_semantics = [#tpu.dimension_semantics<parallel>], iteration_bounds = array<i64: 2>, scalar_prefetch = 0 : i64, scratch_operands = 0 : i64, tpu.core_type = #tpu.core_type<tc>, window_params = [{transform_indices = @transform_0, window_bounds = array<i64: 162>}, {transform_indices = @transform_1, window_bounds = array<i64: 6>}, {transform_indices = @transform_2, window_bounds = array<i64: 1, 3, 16, 16>}, {transform_indices = @transform_3, window_bounds = array<i64: 1, 6, 14, 14>}]} {
    %cst = arith.constant 0.000000e+00 : f32
    %0 = vector.broadcast %cst : f32 to vector<14x14xf32>
    %c0 = arith.constant 0 : index
    %1 = memref.load %arg2[%c0] : memref<6xf32, #tpu.memory_space<smem>>
    %2 = vector.broadcast %1 : f32 to vector<14x14xf32>
    %3 = arith.addf %0, %2 : vector<14x14xf32>
    %cst_0 = arith.constant 0.000000e+00 : f32
    %4 = vector.broadcast %cst_0 : f32 to vector<14x14xf32>
    %c1 = arith.constant 1 : index
    %5 = memref.load %arg2[%c1] : memref<6xf32, #tpu.memory_space<smem>>
    %6 = vector.broadcast %5 : f32 to vector<14x14xf32>
    %7 = arith.addf %4, %6 : vector<14x14xf32>
    %cst_1 = arith.constant 0.000000e+00 : f32
    %8 = vector.broadcast %cst_1 : f32 to vector<14x14xf32>
    %c2 = arith.constant 2 : index
    %9 = memref.load %arg2[%c2] : memref<6xf32, #tpu.memory_space<smem>>
    %10 = vector.broadcast %9 : f32 to vector<14x14xf32>
    %11 = arith.addf %8, %10 : vector<14x14xf32>
    %cst_2 = arith.constant 0.000000e+00 : f32
    %12 = vector.broadcast %cst_2 : f32 to vector<14x14xf32>
    %c3 = arith.constant 3 : index
    %13 = memref.load %arg2[%c3] : memref<6xf32, #tpu.memory_space<smem>>
    %14 = vector.broadcast %13 : f32 to vector<14x14xf32>
    %15 = arith.addf %12, %14 : vector<14x14xf32>
    %cst_3 = arith.constant 0.000000e+00 : f32
    %16 = vector.broadcast %cst_3 : f32 to vector<14x14xf32>
    %c4 = arith.constant 4 : index
    %17 = memref.load %arg2[%c4] : memref<6xf32, #tpu.memory_space<smem>>
    %18 = vector.broadcast %17 : f32 to vector<14x14xf32>
    %19 = arith.addf %16, %18 : vector<14x14xf32>
    %cst_4 = arith.constant 0.000000e+00 : f32
    %20 = vector.broadcast %cst_4 : f32 to vector<14x14xf32>
    %c5 = arith.constant 5 : index
    %21 = memref.load %arg2[%c5] : memref<6xf32, #tpu.memory_space<smem>>
    %22 = vector.broadcast %21 : f32 to vector<14x14xf32>
    %23 = arith.addf %20, %22 : vector<14x14xf32>
    %c0_5 = arith.constant 0 : index
    %c0_6 = arith.constant 0 : index
    %c0_7 = arith.constant 0 : index
    %c0_8 = arith.constant 0 : index
    %24 = vector.load %arg3[%c0_5, %c0_6, %c0_7, %c0_8] : memref<1x3x16x16xf32, #tpu.memory_space<vmem>>, vector<1x1x14x14xf32>
    %25 = vector.shape_cast %24 : vector<1x1x14x14xf32> to vector<14x14xf32>
    %c0_9 = arith.constant 0 : index
    %26 = memref.load %arg1[%c0_9] : memref<162xf32, #tpu.memory_space<smem>>
    %27 = vector.broadcast %26 : f32 to vector<14x14xf32>
    %28 = arith.mulf %27, %25 : vector<14x14xf32>
    %29 = arith.addf %3, %28 : vector<14x14xf32>
    %c27 = arith.constant 27 : index
    %30 = memref.load %arg1[%c27] : memref<162xf32, #tpu.memory_space<smem>>
    %31 = vector.broadcast %30 : f32 to vector<14x14xf32>
    %32 = arith.mulf %31, %25 : vector<14x14xf32>
    %33 = arith.addf %7, %32 : vector<14x14xf32>
    %c54 = arith.constant 54 : index
    %34 = memref.load %arg1[%c54] : memref<162xf32, #tpu.memory_space<smem>>
    %35 = vector.broadcast %34 : f32 to vector<14x14xf32>
    %36 = arith.mulf %35, %25 : vector<14x14xf32>
    %37 = arith.addf %11, %36 : vector<14x14xf32>
    %c81 = arith.constant 81 : index
    %38 = memref.load %arg1[%c81] : memref<162xf32, #tpu.memory_space<smem>>
    %39 = vector.broadcast %38 : f32 to vector<14x14xf32>
    %40 = arith.mulf %39, %25 : vector<14x14xf32>
    %41 = arith.addf %15, %40 : vector<14x14xf32>
    %c108 = arith.constant 108 : index
    %42 = memref.load %arg1[%c108] : memref<162xf32, #tpu.memory_space<smem>>
    %43 = vector.broadcast %42 : f32 to vector<14x14xf32>
    %44 = arith.mulf %43, %25 : vector<14x14xf32>
    %45 = arith.addf %19, %44 : vector<14x14xf32>
    %c135 = arith.constant 135 : index
    %46 = memref.load %arg1[%c135] : memref<162xf32, #tpu.memory_space<smem>>
    %47 = vector.broadcast %46 : f32 to vector<14x14xf32>
    %48 = arith.mulf %47, %25 : vector<14x14xf32>
    %49 = arith.addf %23, %48 : vector<14x14xf32>
    %c0_10 = arith.constant 0 : index
    %c0_11 = arith.constant 0 : index
    %c0_12 = arith.constant 0 : index
    %c1_13 = arith.constant 1 : index
    %50 = vector.load %arg3[%c0_10, %c0_11, %c0_12, %c1_13] : memref<1x3x16x16xf32, #tpu.memory_space<vmem>>, vector<1x1x14x14xf32>
    %51 = vector.shape_cast %50 : vector<1x1x14x14xf32> to vector<14x14xf32>
    %c1_14 = arith.constant 1 : index
    %52 = memref.load %arg1[%c1_14] : memref<162xf32, #tpu.memory_space<smem>>
    %53 = vector.broadcast %52 : f32 to vector<14x14xf32>
    %54 = arith.mulf %53, %51 : vector<14x14xf32>
    %55 = arith.addf %29, %54 : vector<14x14xf32>
    %c28 = arith.constant 28 : index
    %56 = memref.load %arg1[%c28] : memref<162xf32, #tpu.memory_space<smem>>
    %57 = vector.broadcast %56 : f32 to vector<14x14xf32>
    %58 = arith.mulf %57, %51 : vector<14x14xf32>
    %59 = arith.addf %33, %58 : vector<14x14xf32>
    %c55 = arith.constant 55 : index
    %60 = memref.load %arg1[%c55] : memref<162xf32, #tpu.memory_space<smem>>
    %61 = vector.broadcast %60 : f32 to vector<14x14xf32>
    %62 = arith.mulf %61, %51 : vector<14x14xf32>
    %63 = arith.addf %37, %62 : vector<14x14xf32>
    %c82 = arith.constant 82 : index
    %64 = memref.load %arg1[%c82] : memref<162xf32, #tpu.memory_space<smem>>
    %65 = vector.broadcast %64 : f32 to vector<14x14xf32>
    %66 = arith.mulf %65, %51 : vector<14x14xf32>
    %67 = arith.addf %41, %66 : vector<14x14xf32>
    %c109 = arith.constant 109 : index
    %68 = memref.load %arg1[%c109] : memref<162xf32, #tpu.memory_space<smem>>
    %69 = vector.broadcast %68 : f32 to vector<14x14xf32>
    %70 = arith.mulf %69, %51 : vector<14x14xf32>
    %71 = arith.addf %45, %70 : vector<14x14xf32>
    %c136 = arith.constant 136 : index
    %72 = memref.load %arg1[%c136] : memref<162xf32, #tpu.memory_space<smem>>
    %73 = vector.broadcast %72 : f32 to vector<14x14xf32>
    %74 = arith.mulf %73, %51 : vector<14x14xf32>
    %75 = arith.addf %49, %74 : vector<14x14xf32>
    %c0_15 = arith.constant 0 : index
    %c0_16 = arith.constant 0 : index
    %c0_17 = arith.constant 0 : index
    %c2_18 = arith.constant 2 : index
    %76 = vector.load %arg3[%c0_15, %c0_16, %c0_17, %c2_18] : memref<1x3x16x16xf32, #tpu.memory_space<vmem>>, vector<1x1x14x14xf32>
    %77 = vector.shape_cast %76 : vector<1x1x14x14xf32> to vector<14x14xf32>
    %c2_19 = arith.constant 2 : index
    %78 = memref.load %arg1[%c2_19] : memref<162xf32, #tpu.memory_space<smem>>
    %79 = vector.broadcast %78 : f32 to vector<14x14xf32>
    %80 = arith.mulf %79, %77 : vector<14x14xf32>
    %81 = arith.addf %55, %80 : vector<14x14xf32>
    %c29 = arith.constant 29 : index
    %82 = memref.load %arg1[%c29] : memref<162xf32, #tpu.memory_space<smem>>
    %83 = vector.broadcast %82 : f32 to vector<14x14xf32>
    %84 = arith.mulf %83, %77 : vector<14x14xf32>
    %85 = arith.addf %59, %84 : vector<14x14xf32>
    %c56 = arith.constant 56 : index
    %86 = memref.load %arg1[%c56] : memref<162xf32, #tpu.memory_space<smem>>
    %87 = vector.broadcast %86 : f32 to vector<14x14xf32>
    %88 = arith.mulf %87, %77 : vector<14x14xf32>
    %89 = arith.addf %63, %88 : vector<14x14xf32>
    %c83 = arith.constant 83 : index
    %90 = memref.load %arg1[%c83] : memref<162xf32, #tpu.memory_space<smem>>
    %91 = vector.broadcast %90 : f32 to vector<14x14xf32>
    %92 = arith.mulf %91, %77 : vector<14x14xf32>
    %93 = arith.addf %67, %92 : vector<14x14xf32>
    %c110 = arith.constant 110 : index
    %94 = memref.load %arg1[%c110] : memref<162xf32, #tpu.memory_space<smem>>
    %95 = vector.broadcast %94 : f32 to vector<14x14xf32>
    %96 = arith.mulf %95, %77 : vector<14x14xf32>
    %97 = arith.addf %71, %96 : vector<14x14xf32>
    %c137 = arith.constant 137 : index
    %98 = memref.load %arg1[%c137] : memref<162xf32, #tpu.memory_space<smem>>
    %99 = vector.broadcast %98 : f32 to vector<14x14xf32>
    %100 = arith.mulf %99, %77 : vector<14x14xf32>
    %101 = arith.addf %75, %100 : vector<14x14xf32>
    %c0_20 = arith.constant 0 : index
    %c0_21 = arith.constant 0 : index
    %c1_22 = arith.constant 1 : index
    %c0_23 = arith.constant 0 : index
    %102 = vector.load %arg3[%c0_20, %c0_21, %c1_22, %c0_23] : memref<1x3x16x16xf32, #tpu.memory_space<vmem>>, vector<1x1x14x14xf32>
    %103 = vector.shape_cast %102 : vector<1x1x14x14xf32> to vector<14x14xf32>
    %c3_24 = arith.constant 3 : index
    %104 = memref.load %arg1[%c3_24] : memref<162xf32, #tpu.memory_space<smem>>
    %105 = vector.broadcast %104 : f32 to vector<14x14xf32>
    %106 = arith.mulf %105, %103 : vector<14x14xf32>
    %107 = arith.addf %81, %106 : vector<14x14xf32>
    %c30 = arith.constant 30 : index
    %108 = memref.load %arg1[%c30] : memref<162xf32, #tpu.memory_space<smem>>
    %109 = vector.broadcast %108 : f32 to vector<14x14xf32>
    %110 = arith.mulf %109, %103 : vector<14x14xf32>
    %111 = arith.addf %85, %110 : vector<14x14xf32>
    %c57 = arith.constant 57 : index
    %112 = memref.load %arg1[%c57] : memref<162xf32, #tpu.memory_space<smem>>
    %113 = vector.broadcast %112 : f32 to vector<14x14xf32>
    %114 = arith.mulf %113, %103 : vector<14x14xf32>
    %115 = arith.addf %89, %114 : vector<14x14xf32>
    %c84 = arith.constant 84 : index
    %116 = memref.load %arg1[%c84] : memref<162xf32, #tpu.memory_space<smem>>
    %117 = vector.broadcast %116 : f32 to vector<14x14xf32>
    %118 = arith.mulf %117, %103 : vector<14x14xf32>
    %119 = arith.addf %93, %118 : vector<14x14xf32>
    %c111 = arith.constant 111 : index
    %120 = memref.load %arg1[%c111] : memref<162xf32, #tpu.memory_space<smem>>
    %121 = vector.broadcast %120 : f32 to vector<14x14xf32>
    %122 = arith.mulf %121, %103 : vector<14x14xf32>
    %123 = arith.addf %97, %122 : vector<14x14xf32>
    %c138 = arith.constant 138 : index
    %124 = memref.load %arg1[%c138] : memref<162xf32, #tpu.memory_space<smem>>
    %125 = vector.broadcast %124 : f32 to vector<14x14xf32>
    %126 = arith.mulf %125, %103 : vector<14x14xf32>
    %127 = arith.addf %101, %126 : vector<14x14xf32>
    %c0_25 = arith.constant 0 : index
    %c0_26 = arith.constant 0 : index
    %c1_27 = arith.constant 1 : index
    %c1_28 = arith.constant 1 : index
    %128 = vector.load %arg3[%c0_25, %c0_26, %c1_27, %c1_28] : memref<1x3x16x16xf32, #tpu.memory_space<vmem>>, vector<1x1x14x14xf32>
    %129 = vector.shape_cast %128 : vector<1x1x14x14xf32> to vector<14x14xf32>
    %c4_29 = arith.constant 4 : index
    %130 = memref.load %arg1[%c4_29] : memref<162xf32, #tpu.memory_space<smem>>
    %131 = vector.broadcast %130 : f32 to vector<14x14xf32>
    %132 = arith.mulf %131, %129 : vector<14x14xf32>
    %133 = arith.addf %107, %132 : vector<14x14xf32>
    %c31 = arith.constant 31 : index
    %134 = memref.load %arg1[%c31] : memref<162xf32, #tpu.memory_space<smem>>
    %135 = vector.broadcast %134 : f32 to vector<14x14xf32>
    %136 = arith.mulf %135, %129 : vector<14x14xf32>
    %137 = arith.addf %111, %136 : vector<14x14xf32>
    %c58 = arith.constant 58 : index
    %138 = memref.load %arg1[%c58] : memref<162xf32, #tpu.memory_space<smem>>
    %139 = vector.broadcast %138 : f32 to vector<14x14xf32>
    %140 = arith.mulf %139, %129 : vector<14x14xf32>
    %141 = arith.addf %115, %140 : vector<14x14xf32>
    %c85 = arith.constant 85 : index
    %142 = memref.load %arg1[%c85] : memref<162xf32, #tpu.memory_space<smem>>
    %143 = vector.broadcast %142 : f32 to vector<14x14xf32>
    %144 = arith.mulf %143, %129 : vector<14x14xf32>
    %145 = arith.addf %119, %144 : vector<14x14xf32>
    %c112 = arith.constant 112 : index
    %146 = memref.load %arg1[%c112] : memref<162xf32, #tpu.memory_space<smem>>
    %147 = vector.broadcast %146 : f32 to vector<14x14xf32>
    %148 = arith.mulf %147, %129 : vector<14x14xf32>
    %149 = arith.addf %123, %148 : vector<14x14xf32>
    %c139 = arith.constant 139 : index
    %150 = memref.load %arg1[%c139] : memref<162xf32, #tpu.memory_space<smem>>
    %151 = vector.broadcast %150 : f32 to vector<14x14xf32>
    %152 = arith.mulf %151, %129 : vector<14x14xf32>
    %153 = arith.addf %127, %152 : vector<14x14xf32>
    %c0_30 = arith.constant 0 : index
    %c0_31 = arith.constant 0 : index
    %c1_32 = arith.constant 1 : index
    %c2_33 = arith.constant 2 : index
    %154 = vector.load %arg3[%c0_30, %c0_31, %c1_32, %c2_33] : memref<1x3x16x16xf32, #tpu.memory_space<vmem>>, vector<1x1x14x14xf32>
    %155 = vector.shape_cast %154 : vector<1x1x14x14xf32> to vector<14x14xf32>
    %c5_34 = arith.constant 5 : index
    %156 = memref.load %arg1[%c5_34] : memref<162xf32, #tpu.memory_space<smem>>
    %157 = vector.broadcast %156 : f32 to vector<14x14xf32>
    %158 = arith.mulf %157, %155 : vector<14x14xf32>
    %159 = arith.addf %133, %158 : vector<14x14xf32>
    %c32 = arith.constant 32 : index
    %160 = memref.load %arg1[%c32] : memref<162xf32, #tpu.memory_space<smem>>
    %161 = vector.broadcast %160 : f32 to vector<14x14xf32>
    %162 = arith.mulf %161, %155 : vector<14x14xf32>
    %163 = arith.addf %137, %162 : vector<14x14xf32>
    %c59 = arith.constant 59 : index
    %164 = memref.load %arg1[%c59] : memref<162xf32, #tpu.memory_space<smem>>
    %165 = vector.broadcast %164 : f32 to vector<14x14xf32>
    %166 = arith.mulf %165, %155 : vector<14x14xf32>
    %167 = arith.addf %141, %166 : vector<14x14xf32>
    %c86 = arith.constant 86 : index
    %168 = memref.load %arg1[%c86] : memref<162xf32, #tpu.memory_space<smem>>
    %169 = vector.broadcast %168 : f32 to vector<14x14xf32>
    %170 = arith.mulf %169, %155 : vector<14x14xf32>
    %171 = arith.addf %145, %170 : vector<14x14xf32>
    %c113 = arith.constant 113 : index
    %172 = memref.load %arg1[%c113] : memref<162xf32, #tpu.memory_space<smem>>
    %173 = vector.broadcast %172 : f32 to vector<14x14xf32>
    %174 = arith.mulf %173, %155 : vector<14x14xf32>
    %175 = arith.addf %149, %174 : vector<14x14xf32>
    %c140 = arith.constant 140 : index
    %176 = memref.load %arg1[%c140] : memref<162xf32, #tpu.memory_space<smem>>
    %177 = vector.broadcast %176 : f32 to vector<14x14xf32>
    %178 = arith.mulf %177, %155 : vector<14x14xf32>
    %179 = arith.addf %153, %178 : vector<14x14xf32>
    %c0_35 = arith.constant 0 : index
    %c0_36 = arith.constant 0 : index
    %c2_37 = arith.constant 2 : index
    %c0_38 = arith.constant 0 : index
    %180 = vector.load %arg3[%c0_35, %c0_36, %c2_37, %c0_38] : memref<1x3x16x16xf32, #tpu.memory_space<vmem>>, vector<1x1x14x14xf32>
    %181 = vector.shape_cast %180 : vector<1x1x14x14xf32> to vector<14x14xf32>
    %c6 = arith.constant 6 : index
    %182 = memref.load %arg1[%c6] : memref<162xf32, #tpu.memory_space<smem>>
    %183 = vector.broadcast %182 : f32 to vector<14x14xf32>
    %184 = arith.mulf %183, %181 : vector<14x14xf32>
    %185 = arith.addf %159, %184 : vector<14x14xf32>
    %c33 = arith.constant 33 : index
    %186 = memref.load %arg1[%c33] : memref<162xf32, #tpu.memory_space<smem>>
    %187 = vector.broadcast %186 : f32 to vector<14x14xf32>
    %188 = arith.mulf %187, %181 : vector<14x14xf32>
    %189 = arith.addf %163, %188 : vector<14x14xf32>
    %c60 = arith.constant 60 : index
    %190 = memref.load %arg1[%c60] : memref<162xf32, #tpu.memory_space<smem>>
    %191 = vector.broadcast %190 : f32 to vector<14x14xf32>
    %192 = arith.mulf %191, %181 : vector<14x14xf32>
    %193 = arith.addf %167, %192 : vector<14x14xf32>
    %c87 = arith.constant 87 : index
    %194 = memref.load %arg1[%c87] : memref<162xf32, #tpu.memory_space<smem>>
    %195 = vector.broadcast %194 : f32 to vector<14x14xf32>
    %196 = arith.mulf %195, %181 : vector<14x14xf32>
    %197 = arith.addf %171, %196 : vector<14x14xf32>
    %c114 = arith.constant 114 : index
    %198 = memref.load %arg1[%c114] : memref<162xf32, #tpu.memory_space<smem>>
    %199 = vector.broadcast %198 : f32 to vector<14x14xf32>
    %200 = arith.mulf %199, %181 : vector<14x14xf32>
    %201 = arith.addf %175, %200 : vector<14x14xf32>
    %c141 = arith.constant 141 : index
    %202 = memref.load %arg1[%c141] : memref<162xf32, #tpu.memory_space<smem>>
    %203 = vector.broadcast %202 : f32 to vector<14x14xf32>
    %204 = arith.mulf %203, %181 : vector<14x14xf32>
    %205 = arith.addf %179, %204 : vector<14x14xf32>
    %c0_39 = arith.constant 0 : index
    %c0_40 = arith.constant 0 : index
    %c2_41 = arith.constant 2 : index
    %c1_42 = arith.constant 1 : index
    %206 = vector.load %arg3[%c0_39, %c0_40, %c2_41, %c1_42] : memref<1x3x16x16xf32, #tpu.memory_space<vmem>>, vector<1x1x14x14xf32>
    %207 = vector.shape_cast %206 : vector<1x1x14x14xf32> to vector<14x14xf32>
    %c7 = arith.constant 7 : index
    %208 = memref.load %arg1[%c7] : memref<162xf32, #tpu.memory_space<smem>>
    %209 = vector.broadcast %208 : f32 to vector<14x14xf32>
    %210 = arith.mulf %209, %207 : vector<14x14xf32>
    %211 = arith.addf %185, %210 : vector<14x14xf32>
    %c34 = arith.constant 34 : index
    %212 = memref.load %arg1[%c34] : memref<162xf32, #tpu.memory_space<smem>>
    %213 = vector.broadcast %212 : f32 to vector<14x14xf32>
    %214 = arith.mulf %213, %207 : vector<14x14xf32>
    %215 = arith.addf %189, %214 : vector<14x14xf32>
    %c61 = arith.constant 61 : index
    %216 = memref.load %arg1[%c61] : memref<162xf32, #tpu.memory_space<smem>>
    %217 = vector.broadcast %216 : f32 to vector<14x14xf32>
    %218 = arith.mulf %217, %207 : vector<14x14xf32>
    %219 = arith.addf %193, %218 : vector<14x14xf32>
    %c88 = arith.constant 88 : index
    %220 = memref.load %arg1[%c88] : memref<162xf32, #tpu.memory_space<smem>>
    %221 = vector.broadcast %220 : f32 to vector<14x14xf32>
    %222 = arith.mulf %221, %207 : vector<14x14xf32>
    %223 = arith.addf %197, %222 : vector<14x14xf32>
    %c115 = arith.constant 115 : index
    %224 = memref.load %arg1[%c115] : memref<162xf32, #tpu.memory_space<smem>>
    %225 = vector.broadcast %224 : f32 to vector<14x14xf32>
    %226 = arith.mulf %225, %207 : vector<14x14xf32>
    %227 = arith.addf %201, %226 : vector<14x14xf32>
    %c142 = arith.constant 142 : index
    %228 = memref.load %arg1[%c142] : memref<162xf32, #tpu.memory_space<smem>>
    %229 = vector.broadcast %228 : f32 to vector<14x14xf32>
    %230 = arith.mulf %229, %207 : vector<14x14xf32>
    %231 = arith.addf %205, %230 : vector<14x14xf32>
    %c0_43 = arith.constant 0 : index
    %c0_44 = arith.constant 0 : index
    %c2_45 = arith.constant 2 : index
    %c2_46 = arith.constant 2 : index
    %232 = vector.load %arg3[%c0_43, %c0_44, %c2_45, %c2_46] : memref<1x3x16x16xf32, #tpu.memory_space<vmem>>, vector<1x1x14x14xf32>
    %233 = vector.shape_cast %232 : vector<1x1x14x14xf32> to vector<14x14xf32>
    %c8 = arith.constant 8 : index
    %234 = memref.load %arg1[%c8] : memref<162xf32, #tpu.memory_space<smem>>
    %235 = vector.broadcast %234 : f32 to vector<14x14xf32>
    %236 = arith.mulf %235, %233 : vector<14x14xf32>
    %237 = arith.addf %211, %236 : vector<14x14xf32>
    %c35 = arith.constant 35 : index
    %238 = memref.load %arg1[%c35] : memref<162xf32, #tpu.memory_space<smem>>
    %239 = vector.broadcast %238 : f32 to vector<14x14xf32>
    %240 = arith.mulf %239, %233 : vector<14x14xf32>
    %241 = arith.addf %215, %240 : vector<14x14xf32>
    %c62 = arith.constant 62 : index
    %242 = memref.load %arg1[%c62] : memref<162xf32, #tpu.memory_space<smem>>
    %243 = vector.broadcast %242 : f32 to vector<14x14xf32>
    %244 = arith.mulf %243, %233 : vector<14x14xf32>
    %245 = arith.addf %219, %244 : vector<14x14xf32>
    %c89 = arith.constant 89 : index
    %246 = memref.load %arg1[%c89] : memref<162xf32, #tpu.memory_space<smem>>
    %247 = vector.broadcast %246 : f32 to vector<14x14xf32>
    %248 = arith.mulf %247, %233 : vector<14x14xf32>
    %249 = arith.addf %223, %248 : vector<14x14xf32>
    %c116 = arith.constant 116 : index
    %250 = memref.load %arg1[%c116] : memref<162xf32, #tpu.memory_space<smem>>
    %251 = vector.broadcast %250 : f32 to vector<14x14xf32>
    %252 = arith.mulf %251, %233 : vector<14x14xf32>
    %253 = arith.addf %227, %252 : vector<14x14xf32>
    %c143 = arith.constant 143 : index
    %254 = memref.load %arg1[%c143] : memref<162xf32, #tpu.memory_space<smem>>
    %255 = vector.broadcast %254 : f32 to vector<14x14xf32>
    %256 = arith.mulf %255, %233 : vector<14x14xf32>
    %257 = arith.addf %231, %256 : vector<14x14xf32>
    %c0_47 = arith.constant 0 : index
    %c1_48 = arith.constant 1 : index
    %c0_49 = arith.constant 0 : index
    %c0_50 = arith.constant 0 : index
    %258 = vector.load %arg3[%c0_47, %c1_48, %c0_49, %c0_50] : memref<1x3x16x16xf32, #tpu.memory_space<vmem>>, vector<1x1x14x14xf32>
    %259 = vector.shape_cast %258 : vector<1x1x14x14xf32> to vector<14x14xf32>
    %c9 = arith.constant 9 : index
    %260 = memref.load %arg1[%c9] : memref<162xf32, #tpu.memory_space<smem>>
    %261 = vector.broadcast %260 : f32 to vector<14x14xf32>
    %262 = arith.mulf %261, %259 : vector<14x14xf32>
    %263 = arith.addf %237, %262 : vector<14x14xf32>
    %c36 = arith.constant 36 : index
    %264 = memref.load %arg1[%c36] : memref<162xf32, #tpu.memory_space<smem>>
    %265 = vector.broadcast %264 : f32 to vector<14x14xf32>
    %266 = arith.mulf %265, %259 : vector<14x14xf32>
    %267 = arith.addf %241, %266 : vector<14x14xf32>
    %c63 = arith.constant 63 : index
    %268 = memref.load %arg1[%c63] : memref<162xf32, #tpu.memory_space<smem>>
    %269 = vector.broadcast %268 : f32 to vector<14x14xf32>
    %270 = arith.mulf %269, %259 : vector<14x14xf32>
    %271 = arith.addf %245, %270 : vector<14x14xf32>
    %c90 = arith.constant 90 : index
    %272 = memref.load %arg1[%c90] : memref<162xf32, #tpu.memory_space<smem>>
    %273 = vector.broadcast %272 : f32 to vector<14x14xf32>
    %274 = arith.mulf %273, %259 : vector<14x14xf32>
    %275 = arith.addf %249, %274 : vector<14x14xf32>
    %c117 = arith.constant 117 : index
    %276 = memref.load %arg1[%c117] : memref<162xf32, #tpu.memory_space<smem>>
    %277 = vector.broadcast %276 : f32 to vector<14x14xf32>
    %278 = arith.mulf %277, %259 : vector<14x14xf32>
    %279 = arith.addf %253, %278 : vector<14x14xf32>
    %c144 = arith.constant 144 : index
    %280 = memref.load %arg1[%c144] : memref<162xf32, #tpu.memory_space<smem>>
    %281 = vector.broadcast %280 : f32 to vector<14x14xf32>
    %282 = arith.mulf %281, %259 : vector<14x14xf32>
    %283 = arith.addf %257, %282 : vector<14x14xf32>
    %c0_51 = arith.constant 0 : index
    %c1_52 = arith.constant 1 : index
    %c0_53 = arith.constant 0 : index
    %c1_54 = arith.constant 1 : index
    %284 = vector.load %arg3[%c0_51, %c1_52, %c0_53, %c1_54] : memref<1x3x16x16xf32, #tpu.memory_space<vmem>>, vector<1x1x14x14xf32>
    %285 = vector.shape_cast %284 : vector<1x1x14x14xf32> to vector<14x14xf32>
    %c10 = arith.constant 10 : index
    %286 = memref.load %arg1[%c10] : memref<162xf32, #tpu.memory_space<smem>>
    %287 = vector.broadcast %286 : f32 to vector<14x14xf32>
    %288 = arith.mulf %287, %285 : vector<14x14xf32>
    %289 = arith.addf %263, %288 : vector<14x14xf32>
    %c37 = arith.constant 37 : index
    %290 = memref.load %arg1[%c37] : memref<162xf32, #tpu.memory_space<smem>>
    %291 = vector.broadcast %290 : f32 to vector<14x14xf32>
    %292 = arith.mulf %291, %285 : vector<14x14xf32>
    %293 = arith.addf %267, %292 : vector<14x14xf32>
    %c64 = arith.constant 64 : index
    %294 = memref.load %arg1[%c64] : memref<162xf32, #tpu.memory_space<smem>>
    %295 = vector.broadcast %294 : f32 to vector<14x14xf32>
    %296 = arith.mulf %295, %285 : vector<14x14xf32>
    %297 = arith.addf %271, %296 : vector<14x14xf32>
    %c91 = arith.constant 91 : index
    %298 = memref.load %arg1[%c91] : memref<162xf32, #tpu.memory_space<smem>>
    %299 = vector.broadcast %298 : f32 to vector<14x14xf32>
    %300 = arith.mulf %299, %285 : vector<14x14xf32>
    %301 = arith.addf %275, %300 : vector<14x14xf32>
    %c118 = arith.constant 118 : index
    %302 = memref.load %arg1[%c118] : memref<162xf32, #tpu.memory_space<smem>>
    %303 = vector.broadcast %302 : f32 to vector<14x14xf32>
    %304 = arith.mulf %303, %285 : vector<14x14xf32>
    %305 = arith.addf %279, %304 : vector<14x14xf32>
    %c145 = arith.constant 145 : index
    %306 = memref.load %arg1[%c145] : memref<162xf32, #tpu.memory_space<smem>>
    %307 = vector.broadcast %306 : f32 to vector<14x14xf32>
    %308 = arith.mulf %307, %285 : vector<14x14xf32>
    %309 = arith.addf %283, %308 : vector<14x14xf32>
    %c0_55 = arith.constant 0 : index
    %c1_56 = arith.constant 1 : index
    %c0_57 = arith.constant 0 : index
    %c2_58 = arith.constant 2 : index
    %310 = vector.load %arg3[%c0_55, %c1_56, %c0_57, %c2_58] : memref<1x3x16x16xf32, #tpu.memory_space<vmem>>, vector<1x1x14x14xf32>
    %311 = vector.shape_cast %310 : vector<1x1x14x14xf32> to vector<14x14xf32>
    %c11 = arith.constant 11 : index
    %312 = memref.load %arg1[%c11] : memref<162xf32, #tpu.memory_space<smem>>
    %313 = vector.broadcast %312 : f32 to vector<14x14xf32>
    %314 = arith.mulf %313, %311 : vector<14x14xf32>
    %315 = arith.addf %289, %314 : vector<14x14xf32>
    %c38 = arith.constant 38 : index
    %316 = memref.load %arg1[%c38] : memref<162xf32, #tpu.memory_space<smem>>
    %317 = vector.broadcast %316 : f32 to vector<14x14xf32>
    %318 = arith.mulf %317, %311 : vector<14x14xf32>
    %319 = arith.addf %293, %318 : vector<14x14xf32>
    %c65 = arith.constant 65 : index
    %320 = memref.load %arg1[%c65] : memref<162xf32, #tpu.memory_space<smem>>
    %321 = vector.broadcast %320 : f32 to vector<14x14xf32>
    %322 = arith.mulf %321, %311 : vector<14x14xf32>
    %323 = arith.addf %297, %322 : vector<14x14xf32>
    %c92 = arith.constant 92 : index
    %324 = memref.load %arg1[%c92] : memref<162xf32, #tpu.memory_space<smem>>
    %325 = vector.broadcast %324 : f32 to vector<14x14xf32>
    %326 = arith.mulf %325, %311 : vector<14x14xf32>
    %327 = arith.addf %301, %326 : vector<14x14xf32>
    %c119 = arith.constant 119 : index
    %328 = memref.load %arg1[%c119] : memref<162xf32, #tpu.memory_space<smem>>
    %329 = vector.broadcast %328 : f32 to vector<14x14xf32>
    %330 = arith.mulf %329, %311 : vector<14x14xf32>
    %331 = arith.addf %305, %330 : vector<14x14xf32>
    %c146 = arith.constant 146 : index
    %332 = memref.load %arg1[%c146] : memref<162xf32, #tpu.memory_space<smem>>
    %333 = vector.broadcast %332 : f32 to vector<14x14xf32>
    %334 = arith.mulf %333, %311 : vector<14x14xf32>
    %335 = arith.addf %309, %334 : vector<14x14xf32>
    %c0_59 = arith.constant 0 : index
    %c1_60 = arith.constant 1 : index
    %c1_61 = arith.constant 1 : index
    %c0_62 = arith.constant 0 : index
    %336 = vector.load %arg3[%c0_59, %c1_60, %c1_61, %c0_62] : memref<1x3x16x16xf32, #tpu.memory_space<vmem>>, vector<1x1x14x14xf32>
    %337 = vector.shape_cast %336 : vector<1x1x14x14xf32> to vector<14x14xf32>
    %c12 = arith.constant 12 : index
    %338 = memref.load %arg1[%c12] : memref<162xf32, #tpu.memory_space<smem>>
    %339 = vector.broadcast %338 : f32 to vector<14x14xf32>
    %340 = arith.mulf %339, %337 : vector<14x14xf32>
    %341 = arith.addf %315, %340 : vector<14x14xf32>
    %c39 = arith.constant 39 : index
    %342 = memref.load %arg1[%c39] : memref<162xf32, #tpu.memory_space<smem>>
    %343 = vector.broadcast %342 : f32 to vector<14x14xf32>
    %344 = arith.mulf %343, %337 : vector<14x14xf32>
    %345 = arith.addf %319, %344 : vector<14x14xf32>
    %c66 = arith.constant 66 : index
    %346 = memref.load %arg1[%c66] : memref<162xf32, #tpu.memory_space<smem>>
    %347 = vector.broadcast %346 : f32 to vector<14x14xf32>
    %348 = arith.mulf %347, %337 : vector<14x14xf32>
    %349 = arith.addf %323, %348 : vector<14x14xf32>
    %c93 = arith.constant 93 : index
    %350 = memref.load %arg1[%c93] : memref<162xf32, #tpu.memory_space<smem>>
    %351 = vector.broadcast %350 : f32 to vector<14x14xf32>
    %352 = arith.mulf %351, %337 : vector<14x14xf32>
    %353 = arith.addf %327, %352 : vector<14x14xf32>
    %c120 = arith.constant 120 : index
    %354 = memref.load %arg1[%c120] : memref<162xf32, #tpu.memory_space<smem>>
    %355 = vector.broadcast %354 : f32 to vector<14x14xf32>
    %356 = arith.mulf %355, %337 : vector<14x14xf32>
    %357 = arith.addf %331, %356 : vector<14x14xf32>
    %c147 = arith.constant 147 : index
    %358 = memref.load %arg1[%c147] : memref<162xf32, #tpu.memory_space<smem>>
    %359 = vector.broadcast %358 : f32 to vector<14x14xf32>
    %360 = arith.mulf %359, %337 : vector<14x14xf32>
    %361 = arith.addf %335, %360 : vector<14x14xf32>
    %c0_63 = arith.constant 0 : index
    %c1_64 = arith.constant 1 : index
    %c1_65 = arith.constant 1 : index
    %c1_66 = arith.constant 1 : index
    %362 = vector.load %arg3[%c0_63, %c1_64, %c1_65, %c1_66] : memref<1x3x16x16xf32, #tpu.memory_space<vmem>>, vector<1x1x14x14xf32>
    %363 = vector.shape_cast %362 : vector<1x1x14x14xf32> to vector<14x14xf32>
    %c13 = arith.constant 13 : index
    %364 = memref.load %arg1[%c13] : memref<162xf32, #tpu.memory_space<smem>>
    %365 = vector.broadcast %364 : f32 to vector<14x14xf32>
    %366 = arith.mulf %365, %363 : vector<14x14xf32>
    %367 = arith.addf %341, %366 : vector<14x14xf32>
    %c40 = arith.constant 40 : index
    %368 = memref.load %arg1[%c40] : memref<162xf32, #tpu.memory_space<smem>>
    %369 = vector.broadcast %368 : f32 to vector<14x14xf32>
    %370 = arith.mulf %369, %363 : vector<14x14xf32>
    %371 = arith.addf %345, %370 : vector<14x14xf32>
    %c67 = arith.constant 67 : index
    %372 = memref.load %arg1[%c67] : memref<162xf32, #tpu.memory_space<smem>>
    %373 = vector.broadcast %372 : f32 to vector<14x14xf32>
    %374 = arith.mulf %373, %363 : vector<14x14xf32>
    %375 = arith.addf %349, %374 : vector<14x14xf32>
    %c94 = arith.constant 94 : index
    %376 = memref.load %arg1[%c94] : memref<162xf32, #tpu.memory_space<smem>>
    %377 = vector.broadcast %376 : f32 to vector<14x14xf32>
    %378 = arith.mulf %377, %363 : vector<14x14xf32>
    %379 = arith.addf %353, %378 : vector<14x14xf32>
    %c121 = arith.constant 121 : index
    %380 = memref.load %arg1[%c121] : memref<162xf32, #tpu.memory_space<smem>>
    %381 = vector.broadcast %380 : f32 to vector<14x14xf32>
    %382 = arith.mulf %381, %363 : vector<14x14xf32>
    %383 = arith.addf %357, %382 : vector<14x14xf32>
    %c148 = arith.constant 148 : index
    %384 = memref.load %arg1[%c148] : memref<162xf32, #tpu.memory_space<smem>>
    %385 = vector.broadcast %384 : f32 to vector<14x14xf32>
    %386 = arith.mulf %385, %363 : vector<14x14xf32>
    %387 = arith.addf %361, %386 : vector<14x14xf32>
    %c0_67 = arith.constant 0 : index
    %c1_68 = arith.constant 1 : index
    %c1_69 = arith.constant 1 : index
    %c2_70 = arith.constant 2 : index
    %388 = vector.load %arg3[%c0_67, %c1_68, %c1_69, %c2_70] : memref<1x3x16x16xf32, #tpu.memory_space<vmem>>, vector<1x1x14x14xf32>
    %389 = vector.shape_cast %388 : vector<1x1x14x14xf32> to vector<14x14xf32>
    %c14 = arith.constant 14 : index
    %390 = memref.load %arg1[%c14] : memref<162xf32, #tpu.memory_space<smem>>
    %391 = vector.broadcast %390 : f32 to vector<14x14xf32>
    %392 = arith.mulf %391, %389 : vector<14x14xf32>
    %393 = arith.addf %367, %392 : vector<14x14xf32>
    %c41 = arith.constant 41 : index
    %394 = memref.load %arg1[%c41] : memref<162xf32, #tpu.memory_space<smem>>
    %395 = vector.broadcast %394 : f32 to vector<14x14xf32>
    %396 = arith.mulf %395, %389 : vector<14x14xf32>
    %397 = arith.addf %371, %396 : vector<14x14xf32>
    %c68 = arith.constant 68 : index
    %398 = memref.load %arg1[%c68] : memref<162xf32, #tpu.memory_space<smem>>
    %399 = vector.broadcast %398 : f32 to vector<14x14xf32>
    %400 = arith.mulf %399, %389 : vector<14x14xf32>
    %401 = arith.addf %375, %400 : vector<14x14xf32>
    %c95 = arith.constant 95 : index
    %402 = memref.load %arg1[%c95] : memref<162xf32, #tpu.memory_space<smem>>
    %403 = vector.broadcast %402 : f32 to vector<14x14xf32>
    %404 = arith.mulf %403, %389 : vector<14x14xf32>
    %405 = arith.addf %379, %404 : vector<14x14xf32>
    %c122 = arith.constant 122 : index
    %406 = memref.load %arg1[%c122] : memref<162xf32, #tpu.memory_space<smem>>
    %407 = vector.broadcast %406 : f32 to vector<14x14xf32>
    %408 = arith.mulf %407, %389 : vector<14x14xf32>
    %409 = arith.addf %383, %408 : vector<14x14xf32>
    %c149 = arith.constant 149 : index
    %410 = memref.load %arg1[%c149] : memref<162xf32, #tpu.memory_space<smem>>
    %411 = vector.broadcast %410 : f32 to vector<14x14xf32>
    %412 = arith.mulf %411, %389 : vector<14x14xf32>
    %413 = arith.addf %387, %412 : vector<14x14xf32>
    %c0_71 = arith.constant 0 : index
    %c1_72 = arith.constant 1 : index
    %c2_73 = arith.constant 2 : index
    %c0_74 = arith.constant 0 : index
    %414 = vector.load %arg3[%c0_71, %c1_72, %c2_73, %c0_74] : memref<1x3x16x16xf32, #tpu.memory_space<vmem>>, vector<1x1x14x14xf32>
    %415 = vector.shape_cast %414 : vector<1x1x14x14xf32> to vector<14x14xf32>
    %c15 = arith.constant 15 : index
    %416 = memref.load %arg1[%c15] : memref<162xf32, #tpu.memory_space<smem>>
    %417 = vector.broadcast %416 : f32 to vector<14x14xf32>
    %418 = arith.mulf %417, %415 : vector<14x14xf32>
    %419 = arith.addf %393, %418 : vector<14x14xf32>
    %c42 = arith.constant 42 : index
    %420 = memref.load %arg1[%c42] : memref<162xf32, #tpu.memory_space<smem>>
    %421 = vector.broadcast %420 : f32 to vector<14x14xf32>
    %422 = arith.mulf %421, %415 : vector<14x14xf32>
    %423 = arith.addf %397, %422 : vector<14x14xf32>
    %c69 = arith.constant 69 : index
    %424 = memref.load %arg1[%c69] : memref<162xf32, #tpu.memory_space<smem>>
    %425 = vector.broadcast %424 : f32 to vector<14x14xf32>
    %426 = arith.mulf %425, %415 : vector<14x14xf32>
    %427 = arith.addf %401, %426 : vector<14x14xf32>
    %c96 = arith.constant 96 : index
    %428 = memref.load %arg1[%c96] : memref<162xf32, #tpu.memory_space<smem>>
    %429 = vector.broadcast %428 : f32 to vector<14x14xf32>
    %430 = arith.mulf %429, %415 : vector<14x14xf32>
    %431 = arith.addf %405, %430 : vector<14x14xf32>
    %c123 = arith.constant 123 : index
    %432 = memref.load %arg1[%c123] : memref<162xf32, #tpu.memory_space<smem>>
    %433 = vector.broadcast %432 : f32 to vector<14x14xf32>
    %434 = arith.mulf %433, %415 : vector<14x14xf32>
    %435 = arith.addf %409, %434 : vector<14x14xf32>
    %c150 = arith.constant 150 : index
    %436 = memref.load %arg1[%c150] : memref<162xf32, #tpu.memory_space<smem>>
    %437 = vector.broadcast %436 : f32 to vector<14x14xf32>
    %438 = arith.mulf %437, %415 : vector<14x14xf32>
    %439 = arith.addf %413, %438 : vector<14x14xf32>
    %c0_75 = arith.constant 0 : index
    %c1_76 = arith.constant 1 : index
    %c2_77 = arith.constant 2 : index
    %c1_78 = arith.constant 1 : index
    %440 = vector.load %arg3[%c0_75, %c1_76, %c2_77, %c1_78] : memref<1x3x16x16xf32, #tpu.memory_space<vmem>>, vector<1x1x14x14xf32>
    %441 = vector.shape_cast %440 : vector<1x1x14x14xf32> to vector<14x14xf32>
    %c16 = arith.constant 16 : index
    %442 = memref.load %arg1[%c16] : memref<162xf32, #tpu.memory_space<smem>>
    %443 = vector.broadcast %442 : f32 to vector<14x14xf32>
    %444 = arith.mulf %443, %441 : vector<14x14xf32>
    %445 = arith.addf %419, %444 : vector<14x14xf32>
    %c43 = arith.constant 43 : index
    %446 = memref.load %arg1[%c43] : memref<162xf32, #tpu.memory_space<smem>>
    %447 = vector.broadcast %446 : f32 to vector<14x14xf32>
    %448 = arith.mulf %447, %441 : vector<14x14xf32>
    %449 = arith.addf %423, %448 : vector<14x14xf32>
    %c70 = arith.constant 70 : index
    %450 = memref.load %arg1[%c70] : memref<162xf32, #tpu.memory_space<smem>>
    %451 = vector.broadcast %450 : f32 to vector<14x14xf32>
    %452 = arith.mulf %451, %441 : vector<14x14xf32>
    %453 = arith.addf %427, %452 : vector<14x14xf32>
    %c97 = arith.constant 97 : index
    %454 = memref.load %arg1[%c97] : memref<162xf32, #tpu.memory_space<smem>>
    %455 = vector.broadcast %454 : f32 to vector<14x14xf32>
    %456 = arith.mulf %455, %441 : vector<14x14xf32>
    %457 = arith.addf %431, %456 : vector<14x14xf32>
    %c124 = arith.constant 124 : index
    %458 = memref.load %arg1[%c124] : memref<162xf32, #tpu.memory_space<smem>>
    %459 = vector.broadcast %458 : f32 to vector<14x14xf32>
    %460 = arith.mulf %459, %441 : vector<14x14xf32>
    %461 = arith.addf %435, %460 : vector<14x14xf32>
    %c151 = arith.constant 151 : index
    %462 = memref.load %arg1[%c151] : memref<162xf32, #tpu.memory_space<smem>>
    %463 = vector.broadcast %462 : f32 to vector<14x14xf32>
    %464 = arith.mulf %463, %441 : vector<14x14xf32>
    %465 = arith.addf %439, %464 : vector<14x14xf32>
    %c0_79 = arith.constant 0 : index
    %c1_80 = arith.constant 1 : index
    %c2_81 = arith.constant 2 : index
    %c2_82 = arith.constant 2 : index
    %466 = vector.load %arg3[%c0_79, %c1_80, %c2_81, %c2_82] : memref<1x3x16x16xf32, #tpu.memory_space<vmem>>, vector<1x1x14x14xf32>
    %467 = vector.shape_cast %466 : vector<1x1x14x14xf32> to vector<14x14xf32>
    %c17 = arith.constant 17 : index
    %468 = memref.load %arg1[%c17] : memref<162xf32, #tpu.memory_space<smem>>
    %469 = vector.broadcast %468 : f32 to vector<14x14xf32>
    %470 = arith.mulf %469, %467 : vector<14x14xf32>
    %471 = arith.addf %445, %470 : vector<14x14xf32>
    %c44 = arith.constant 44 : index
    %472 = memref.load %arg1[%c44] : memref<162xf32, #tpu.memory_space<smem>>
    %473 = vector.broadcast %472 : f32 to vector<14x14xf32>
    %474 = arith.mulf %473, %467 : vector<14x14xf32>
    %475 = arith.addf %449, %474 : vector<14x14xf32>
    %c71 = arith.constant 71 : index
    %476 = memref.load %arg1[%c71] : memref<162xf32, #tpu.memory_space<smem>>
    %477 = vector.broadcast %476 : f32 to vector<14x14xf32>
    %478 = arith.mulf %477, %467 : vector<14x14xf32>
    %479 = arith.addf %453, %478 : vector<14x14xf32>
    %c98 = arith.constant 98 : index
    %480 = memref.load %arg1[%c98] : memref<162xf32, #tpu.memory_space<smem>>
    %481 = vector.broadcast %480 : f32 to vector<14x14xf32>
    %482 = arith.mulf %481, %467 : vector<14x14xf32>
    %483 = arith.addf %457, %482 : vector<14x14xf32>
    %c125 = arith.constant 125 : index
    %484 = memref.load %arg1[%c125] : memref<162xf32, #tpu.memory_space<smem>>
    %485 = vector.broadcast %484 : f32 to vector<14x14xf32>
    %486 = arith.mulf %485, %467 : vector<14x14xf32>
    %487 = arith.addf %461, %486 : vector<14x14xf32>
    %c152 = arith.constant 152 : index
    %488 = memref.load %arg1[%c152] : memref<162xf32, #tpu.memory_space<smem>>
    %489 = vector.broadcast %488 : f32 to vector<14x14xf32>
    %490 = arith.mulf %489, %467 : vector<14x14xf32>
    %491 = arith.addf %465, %490 : vector<14x14xf32>
    %c0_83 = arith.constant 0 : index
    %c2_84 = arith.constant 2 : index
    %c0_85 = arith.constant 0 : index
    %c0_86 = arith.constant 0 : index
    %492 = vector.load %arg3[%c0_83, %c2_84, %c0_85, %c0_86] : memref<1x3x16x16xf32, #tpu.memory_space<vmem>>, vector<1x1x14x14xf32>
    %493 = vector.shape_cast %492 : vector<1x1x14x14xf32> to vector<14x14xf32>
    %c18 = arith.constant 18 : index
    %494 = memref.load %arg1[%c18] : memref<162xf32, #tpu.memory_space<smem>>
    %495 = vector.broadcast %494 : f32 to vector<14x14xf32>
    %496 = arith.mulf %495, %493 : vector<14x14xf32>
    %497 = arith.addf %471, %496 : vector<14x14xf32>
    %c45 = arith.constant 45 : index
    %498 = memref.load %arg1[%c45] : memref<162xf32, #tpu.memory_space<smem>>
    %499 = vector.broadcast %498 : f32 to vector<14x14xf32>
    %500 = arith.mulf %499, %493 : vector<14x14xf32>
    %501 = arith.addf %475, %500 : vector<14x14xf32>
    %c72 = arith.constant 72 : index
    %502 = memref.load %arg1[%c72] : memref<162xf32, #tpu.memory_space<smem>>
    %503 = vector.broadcast %502 : f32 to vector<14x14xf32>
    %504 = arith.mulf %503, %493 : vector<14x14xf32>
    %505 = arith.addf %479, %504 : vector<14x14xf32>
    %c99 = arith.constant 99 : index
    %506 = memref.load %arg1[%c99] : memref<162xf32, #tpu.memory_space<smem>>
    %507 = vector.broadcast %506 : f32 to vector<14x14xf32>
    %508 = arith.mulf %507, %493 : vector<14x14xf32>
    %509 = arith.addf %483, %508 : vector<14x14xf32>
    %c126 = arith.constant 126 : index
    %510 = memref.load %arg1[%c126] : memref<162xf32, #tpu.memory_space<smem>>
    %511 = vector.broadcast %510 : f32 to vector<14x14xf32>
    %512 = arith.mulf %511, %493 : vector<14x14xf32>
    %513 = arith.addf %487, %512 : vector<14x14xf32>
    %c153 = arith.constant 153 : index
    %514 = memref.load %arg1[%c153] : memref<162xf32, #tpu.memory_space<smem>>
    %515 = vector.broadcast %514 : f32 to vector<14x14xf32>
    %516 = arith.mulf %515, %493 : vector<14x14xf32>
    %517 = arith.addf %491, %516 : vector<14x14xf32>
    %c0_87 = arith.constant 0 : index
    %c2_88 = arith.constant 2 : index
    %c0_89 = arith.constant 0 : index
    %c1_90 = arith.constant 1 : index
    %518 = vector.load %arg3[%c0_87, %c2_88, %c0_89, %c1_90] : memref<1x3x16x16xf32, #tpu.memory_space<vmem>>, vector<1x1x14x14xf32>
    %519 = vector.shape_cast %518 : vector<1x1x14x14xf32> to vector<14x14xf32>
    %c19 = arith.constant 19 : index
    %520 = memref.load %arg1[%c19] : memref<162xf32, #tpu.memory_space<smem>>
    %521 = vector.broadcast %520 : f32 to vector<14x14xf32>
    %522 = arith.mulf %521, %519 : vector<14x14xf32>
    %523 = arith.addf %497, %522 : vector<14x14xf32>
    %c46 = arith.constant 46 : index
    %524 = memref.load %arg1[%c46] : memref<162xf32, #tpu.memory_space<smem>>
    %525 = vector.broadcast %524 : f32 to vector<14x14xf32>
    %526 = arith.mulf %525, %519 : vector<14x14xf32>
    %527 = arith.addf %501, %526 : vector<14x14xf32>
    %c73 = arith.constant 73 : index
    %528 = memref.load %arg1[%c73] : memref<162xf32, #tpu.memory_space<smem>>
    %529 = vector.broadcast %528 : f32 to vector<14x14xf32>
    %530 = arith.mulf %529, %519 : vector<14x14xf32>
    %531 = arith.addf %505, %530 : vector<14x14xf32>
    %c100 = arith.constant 100 : index
    %532 = memref.load %arg1[%c100] : memref<162xf32, #tpu.memory_space<smem>>
    %533 = vector.broadcast %532 : f32 to vector<14x14xf32>
    %534 = arith.mulf %533, %519 : vector<14x14xf32>
    %535 = arith.addf %509, %534 : vector<14x14xf32>
    %c127 = arith.constant 127 : index
    %536 = memref.load %arg1[%c127] : memref<162xf32, #tpu.memory_space<smem>>
    %537 = vector.broadcast %536 : f32 to vector<14x14xf32>
    %538 = arith.mulf %537, %519 : vector<14x14xf32>
    %539 = arith.addf %513, %538 : vector<14x14xf32>
    %c154 = arith.constant 154 : index
    %540 = memref.load %arg1[%c154] : memref<162xf32, #tpu.memory_space<smem>>
    %541 = vector.broadcast %540 : f32 to vector<14x14xf32>
    %542 = arith.mulf %541, %519 : vector<14x14xf32>
    %543 = arith.addf %517, %542 : vector<14x14xf32>
    %c0_91 = arith.constant 0 : index
    %c2_92 = arith.constant 2 : index
    %c0_93 = arith.constant 0 : index
    %c2_94 = arith.constant 2 : index
    %544 = vector.load %arg3[%c0_91, %c2_92, %c0_93, %c2_94] : memref<1x3x16x16xf32, #tpu.memory_space<vmem>>, vector<1x1x14x14xf32>
    %545 = vector.shape_cast %544 : vector<1x1x14x14xf32> to vector<14x14xf32>
    %c20 = arith.constant 20 : index
    %546 = memref.load %arg1[%c20] : memref<162xf32, #tpu.memory_space<smem>>
    %547 = vector.broadcast %546 : f32 to vector<14x14xf32>
    %548 = arith.mulf %547, %545 : vector<14x14xf32>
    %549 = arith.addf %523, %548 : vector<14x14xf32>
    %c47 = arith.constant 47 : index
    %550 = memref.load %arg1[%c47] : memref<162xf32, #tpu.memory_space<smem>>
    %551 = vector.broadcast %550 : f32 to vector<14x14xf32>
    %552 = arith.mulf %551, %545 : vector<14x14xf32>
    %553 = arith.addf %527, %552 : vector<14x14xf32>
    %c74 = arith.constant 74 : index
    %554 = memref.load %arg1[%c74] : memref<162xf32, #tpu.memory_space<smem>>
    %555 = vector.broadcast %554 : f32 to vector<14x14xf32>
    %556 = arith.mulf %555, %545 : vector<14x14xf32>
    %557 = arith.addf %531, %556 : vector<14x14xf32>
    %c101 = arith.constant 101 : index
    %558 = memref.load %arg1[%c101] : memref<162xf32, #tpu.memory_space<smem>>
    %559 = vector.broadcast %558 : f32 to vector<14x14xf32>
    %560 = arith.mulf %559, %545 : vector<14x14xf32>
    %561 = arith.addf %535, %560 : vector<14x14xf32>
    %c128 = arith.constant 128 : index
    %562 = memref.load %arg1[%c128] : memref<162xf32, #tpu.memory_space<smem>>
    %563 = vector.broadcast %562 : f32 to vector<14x14xf32>
    %564 = arith.mulf %563, %545 : vector<14x14xf32>
    %565 = arith.addf %539, %564 : vector<14x14xf32>
    %c155 = arith.constant 155 : index
    %566 = memref.load %arg1[%c155] : memref<162xf32, #tpu.memory_space<smem>>
    %567 = vector.broadcast %566 : f32 to vector<14x14xf32>
    %568 = arith.mulf %567, %545 : vector<14x14xf32>
    %569 = arith.addf %543, %568 : vector<14x14xf32>
    %c0_95 = arith.constant 0 : index
    %c2_96 = arith.constant 2 : index
    %c1_97 = arith.constant 1 : index
    %c0_98 = arith.constant 0 : index
    %570 = vector.load %arg3[%c0_95, %c2_96, %c1_97, %c0_98] : memref<1x3x16x16xf32, #tpu.memory_space<vmem>>, vector<1x1x14x14xf32>
    %571 = vector.shape_cast %570 : vector<1x1x14x14xf32> to vector<14x14xf32>
    %c21 = arith.constant 21 : index
    %572 = memref.load %arg1[%c21] : memref<162xf32, #tpu.memory_space<smem>>
    %573 = vector.broadcast %572 : f32 to vector<14x14xf32>
    %574 = arith.mulf %573, %571 : vector<14x14xf32>
    %575 = arith.addf %549, %574 : vector<14x14xf32>
    %c48 = arith.constant 48 : index
    %576 = memref.load %arg1[%c48] : memref<162xf32, #tpu.memory_space<smem>>
    %577 = vector.broadcast %576 : f32 to vector<14x14xf32>
    %578 = arith.mulf %577, %571 : vector<14x14xf32>
    %579 = arith.addf %553, %578 : vector<14x14xf32>
    %c75 = arith.constant 75 : index
    %580 = memref.load %arg1[%c75] : memref<162xf32, #tpu.memory_space<smem>>
    %581 = vector.broadcast %580 : f32 to vector<14x14xf32>
    %582 = arith.mulf %581, %571 : vector<14x14xf32>
    %583 = arith.addf %557, %582 : vector<14x14xf32>
    %c102 = arith.constant 102 : index
    %584 = memref.load %arg1[%c102] : memref<162xf32, #tpu.memory_space<smem>>
    %585 = vector.broadcast %584 : f32 to vector<14x14xf32>
    %586 = arith.mulf %585, %571 : vector<14x14xf32>
    %587 = arith.addf %561, %586 : vector<14x14xf32>
    %c129 = arith.constant 129 : index
    %588 = memref.load %arg1[%c129] : memref<162xf32, #tpu.memory_space<smem>>
    %589 = vector.broadcast %588 : f32 to vector<14x14xf32>
    %590 = arith.mulf %589, %571 : vector<14x14xf32>
    %591 = arith.addf %565, %590 : vector<14x14xf32>
    %c156 = arith.constant 156 : index
    %592 = memref.load %arg1[%c156] : memref<162xf32, #tpu.memory_space<smem>>
    %593 = vector.broadcast %592 : f32 to vector<14x14xf32>
    %594 = arith.mulf %593, %571 : vector<14x14xf32>
    %595 = arith.addf %569, %594 : vector<14x14xf32>
    %c0_99 = arith.constant 0 : index
    %c2_100 = arith.constant 2 : index
    %c1_101 = arith.constant 1 : index
    %c1_102 = arith.constant 1 : index
    %596 = vector.load %arg3[%c0_99, %c2_100, %c1_101, %c1_102] : memref<1x3x16x16xf32, #tpu.memory_space<vmem>>, vector<1x1x14x14xf32>
    %597 = vector.shape_cast %596 : vector<1x1x14x14xf32> to vector<14x14xf32>
    %c22 = arith.constant 22 : index
    %598 = memref.load %arg1[%c22] : memref<162xf32, #tpu.memory_space<smem>>
    %599 = vector.broadcast %598 : f32 to vector<14x14xf32>
    %600 = arith.mulf %599, %597 : vector<14x14xf32>
    %601 = arith.addf %575, %600 : vector<14x14xf32>
    %c49 = arith.constant 49 : index
    %602 = memref.load %arg1[%c49] : memref<162xf32, #tpu.memory_space<smem>>
    %603 = vector.broadcast %602 : f32 to vector<14x14xf32>
    %604 = arith.mulf %603, %597 : vector<14x14xf32>
    %605 = arith.addf %579, %604 : vector<14x14xf32>
    %c76 = arith.constant 76 : index
    %606 = memref.load %arg1[%c76] : memref<162xf32, #tpu.memory_space<smem>>
    %607 = vector.broadcast %606 : f32 to vector<14x14xf32>
    %608 = arith.mulf %607, %597 : vector<14x14xf32>
    %609 = arith.addf %583, %608 : vector<14x14xf32>
    %c103 = arith.constant 103 : index
    %610 = memref.load %arg1[%c103] : memref<162xf32, #tpu.memory_space<smem>>
    %611 = vector.broadcast %610 : f32 to vector<14x14xf32>
    %612 = arith.mulf %611, %597 : vector<14x14xf32>
    %613 = arith.addf %587, %612 : vector<14x14xf32>
    %c130 = arith.constant 130 : index
    %614 = memref.load %arg1[%c130] : memref<162xf32, #tpu.memory_space<smem>>
    %615 = vector.broadcast %614 : f32 to vector<14x14xf32>
    %616 = arith.mulf %615, %597 : vector<14x14xf32>
    %617 = arith.addf %591, %616 : vector<14x14xf32>
    %c157 = arith.constant 157 : index
    %618 = memref.load %arg1[%c157] : memref<162xf32, #tpu.memory_space<smem>>
    %619 = vector.broadcast %618 : f32 to vector<14x14xf32>
    %620 = arith.mulf %619, %597 : vector<14x14xf32>
    %621 = arith.addf %595, %620 : vector<14x14xf32>
    %c0_103 = arith.constant 0 : index
    %c2_104 = arith.constant 2 : index
    %c1_105 = arith.constant 1 : index
    %c2_106 = arith.constant 2 : index
    %622 = vector.load %arg3[%c0_103, %c2_104, %c1_105, %c2_106] : memref<1x3x16x16xf32, #tpu.memory_space<vmem>>, vector<1x1x14x14xf32>
    %623 = vector.shape_cast %622 : vector<1x1x14x14xf32> to vector<14x14xf32>
    %c23 = arith.constant 23 : index
    %624 = memref.load %arg1[%c23] : memref<162xf32, #tpu.memory_space<smem>>
    %625 = vector.broadcast %624 : f32 to vector<14x14xf32>
    %626 = arith.mulf %625, %623 : vector<14x14xf32>
    %627 = arith.addf %601, %626 : vector<14x14xf32>
    %c50 = arith.constant 50 : index
    %628 = memref.load %arg1[%c50] : memref<162xf32, #tpu.memory_space<smem>>
    %629 = vector.broadcast %628 : f32 to vector<14x14xf32>
    %630 = arith.mulf %629, %623 : vector<14x14xf32>
    %631 = arith.addf %605, %630 : vector<14x14xf32>
    %c77 = arith.constant 77 : index
    %632 = memref.load %arg1[%c77] : memref<162xf32, #tpu.memory_space<smem>>
    %633 = vector.broadcast %632 : f32 to vector<14x14xf32>
    %634 = arith.mulf %633, %623 : vector<14x14xf32>
    %635 = arith.addf %609, %634 : vector<14x14xf32>
    %c104 = arith.constant 104 : index
    %636 = memref.load %arg1[%c104] : memref<162xf32, #tpu.memory_space<smem>>
    %637 = vector.broadcast %636 : f32 to vector<14x14xf32>
    %638 = arith.mulf %637, %623 : vector<14x14xf32>
    %639 = arith.addf %613, %638 : vector<14x14xf32>
    %c131 = arith.constant 131 : index
    %640 = memref.load %arg1[%c131] : memref<162xf32, #tpu.memory_space<smem>>
    %641 = vector.broadcast %640 : f32 to vector<14x14xf32>
    %642 = arith.mulf %641, %623 : vector<14x14xf32>
    %643 = arith.addf %617, %642 : vector<14x14xf32>
    %c158 = arith.constant 158 : index
    %644 = memref.load %arg1[%c158] : memref<162xf32, #tpu.memory_space<smem>>
    %645 = vector.broadcast %644 : f32 to vector<14x14xf32>
    %646 = arith.mulf %645, %623 : vector<14x14xf32>
    %647 = arith.addf %621, %646 : vector<14x14xf32>
    %c0_107 = arith.constant 0 : index
    %c2_108 = arith.constant 2 : index
    %c2_109 = arith.constant 2 : index
    %c0_110 = arith.constant 0 : index
    %648 = vector.load %arg3[%c0_107, %c2_108, %c2_109, %c0_110] : memref<1x3x16x16xf32, #tpu.memory_space<vmem>>, vector<1x1x14x14xf32>
    %649 = vector.shape_cast %648 : vector<1x1x14x14xf32> to vector<14x14xf32>
    %c24 = arith.constant 24 : index
    %650 = memref.load %arg1[%c24] : memref<162xf32, #tpu.memory_space<smem>>
    %651 = vector.broadcast %650 : f32 to vector<14x14xf32>
    %652 = arith.mulf %651, %649 : vector<14x14xf32>
    %653 = arith.addf %627, %652 : vector<14x14xf32>
    %c51 = arith.constant 51 : index
    %654 = memref.load %arg1[%c51] : memref<162xf32, #tpu.memory_space<smem>>
    %655 = vector.broadcast %654 : f32 to vector<14x14xf32>
    %656 = arith.mulf %655, %649 : vector<14x14xf32>
    %657 = arith.addf %631, %656 : vector<14x14xf32>
    %c78 = arith.constant 78 : index
    %658 = memref.load %arg1[%c78] : memref<162xf32, #tpu.memory_space<smem>>
    %659 = vector.broadcast %658 : f32 to vector<14x14xf32>
    %660 = arith.mulf %659, %649 : vector<14x14xf32>
    %661 = arith.addf %635, %660 : vector<14x14xf32>
    %c105 = arith.constant 105 : index
    %662 = memref.load %arg1[%c105] : memref<162xf32, #tpu.memory_space<smem>>
    %663 = vector.broadcast %662 : f32 to vector<14x14xf32>
    %664 = arith.mulf %663, %649 : vector<14x14xf32>
    %665 = arith.addf %639, %664 : vector<14x14xf32>
    %c132 = arith.constant 132 : index
    %666 = memref.load %arg1[%c132] : memref<162xf32, #tpu.memory_space<smem>>
    %667 = vector.broadcast %666 : f32 to vector<14x14xf32>
    %668 = arith.mulf %667, %649 : vector<14x14xf32>
    %669 = arith.addf %643, %668 : vector<14x14xf32>
    %c159 = arith.constant 159 : index
    %670 = memref.load %arg1[%c159] : memref<162xf32, #tpu.memory_space<smem>>
    %671 = vector.broadcast %670 : f32 to vector<14x14xf32>
    %672 = arith.mulf %671, %649 : vector<14x14xf32>
    %673 = arith.addf %647, %672 : vector<14x14xf32>
    %c0_111 = arith.constant 0 : index
    %c2_112 = arith.constant 2 : index
    %c2_113 = arith.constant 2 : index
    %c1_114 = arith.constant 1 : index
    %674 = vector.load %arg3[%c0_111, %c2_112, %c2_113, %c1_114] : memref<1x3x16x16xf32, #tpu.memory_space<vmem>>, vector<1x1x14x14xf32>
    %675 = vector.shape_cast %674 : vector<1x1x14x14xf32> to vector<14x14xf32>
    %c25 = arith.constant 25 : index
    %676 = memref.load %arg1[%c25] : memref<162xf32, #tpu.memory_space<smem>>
    %677 = vector.broadcast %676 : f32 to vector<14x14xf32>
    %678 = arith.mulf %677, %675 : vector<14x14xf32>
    %679 = arith.addf %653, %678 : vector<14x14xf32>
    %c52 = arith.constant 52 : index
    %680 = memref.load %arg1[%c52] : memref<162xf32, #tpu.memory_space<smem>>
    %681 = vector.broadcast %680 : f32 to vector<14x14xf32>
    %682 = arith.mulf %681, %675 : vector<14x14xf32>
    %683 = arith.addf %657, %682 : vector<14x14xf32>
    %c79 = arith.constant 79 : index
    %684 = memref.load %arg1[%c79] : memref<162xf32, #tpu.memory_space<smem>>
    %685 = vector.broadcast %684 : f32 to vector<14x14xf32>
    %686 = arith.mulf %685, %675 : vector<14x14xf32>
    %687 = arith.addf %661, %686 : vector<14x14xf32>
    %c106 = arith.constant 106 : index
    %688 = memref.load %arg1[%c106] : memref<162xf32, #tpu.memory_space<smem>>
    %689 = vector.broadcast %688 : f32 to vector<14x14xf32>
    %690 = arith.mulf %689, %675 : vector<14x14xf32>
    %691 = arith.addf %665, %690 : vector<14x14xf32>
    %c133 = arith.constant 133 : index
    %692 = memref.load %arg1[%c133] : memref<162xf32, #tpu.memory_space<smem>>
    %693 = vector.broadcast %692 : f32 to vector<14x14xf32>
    %694 = arith.mulf %693, %675 : vector<14x14xf32>
    %695 = arith.addf %669, %694 : vector<14x14xf32>
    %c160 = arith.constant 160 : index
    %696 = memref.load %arg1[%c160] : memref<162xf32, #tpu.memory_space<smem>>
    %697 = vector.broadcast %696 : f32 to vector<14x14xf32>
    %698 = arith.mulf %697, %675 : vector<14x14xf32>
    %699 = arith.addf %673, %698 : vector<14x14xf32>
    %c0_115 = arith.constant 0 : index
    %c2_116 = arith.constant 2 : index
    %c2_117 = arith.constant 2 : index
    %c2_118 = arith.constant 2 : index
    %700 = vector.load %arg3[%c0_115, %c2_116, %c2_117, %c2_118] : memref<1x3x16x16xf32, #tpu.memory_space<vmem>>, vector<1x1x14x14xf32>
    %701 = vector.shape_cast %700 : vector<1x1x14x14xf32> to vector<14x14xf32>
    %c26 = arith.constant 26 : index
    %702 = memref.load %arg1[%c26] : memref<162xf32, #tpu.memory_space<smem>>
    %703 = vector.broadcast %702 : f32 to vector<14x14xf32>
    %704 = arith.mulf %703, %701 : vector<14x14xf32>
    %705 = arith.addf %679, %704 : vector<14x14xf32>
    %c53 = arith.constant 53 : index
    %706 = memref.load %arg1[%c53] : memref<162xf32, #tpu.memory_space<smem>>
    %707 = vector.broadcast %706 : f32 to vector<14x14xf32>
    %708 = arith.mulf %707, %701 : vector<14x14xf32>
    %709 = arith.addf %683, %708 : vector<14x14xf32>
    %c80 = arith.constant 80 : index
    %710 = memref.load %arg1[%c80] : memref<162xf32, #tpu.memory_space<smem>>
    %711 = vector.broadcast %710 : f32 to vector<14x14xf32>
    %712 = arith.mulf %711, %701 : vector<14x14xf32>
    %713 = arith.addf %687, %712 : vector<14x14xf32>
    %c107 = arith.constant 107 : index
    %714 = memref.load %arg1[%c107] : memref<162xf32, #tpu.memory_space<smem>>
    %715 = vector.broadcast %714 : f32 to vector<14x14xf32>
    %716 = arith.mulf %715, %701 : vector<14x14xf32>
    %717 = arith.addf %691, %716 : vector<14x14xf32>
    %c134 = arith.constant 134 : index
    %718 = memref.load %arg1[%c134] : memref<162xf32, #tpu.memory_space<smem>>
    %719 = vector.broadcast %718 : f32 to vector<14x14xf32>
    %720 = arith.mulf %719, %701 : vector<14x14xf32>
    %721 = arith.addf %695, %720 : vector<14x14xf32>
    %c161 = arith.constant 161 : index
    %722 = memref.load %arg1[%c161] : memref<162xf32, #tpu.memory_space<smem>>
    %723 = vector.broadcast %722 : f32 to vector<14x14xf32>
    %724 = arith.mulf %723, %701 : vector<14x14xf32>
    %725 = arith.addf %699, %724 : vector<14x14xf32>
    %c0_119 = arith.constant 0 : index
    %c0_120 = arith.constant 0 : index
    %c0_121 = arith.constant 0 : index
    %c0_122 = arith.constant 0 : index
    %726 = vector.load %arg4[%c0_119, %c0_120, %c0_121, %c0_122] : memref<1x6x14x14xf32, #tpu.memory_space<vmem>>, vector<1x1x14x14xf32>
    %727 = vector.shape_cast %726 : vector<1x1x14x14xf32> to vector<14x14xf32>
    %728 = vector.shape_cast %705 : vector<14x14xf32> to vector<1x1x14x14xf32>
    tpu.vector_store %arg4[%c0_119, %c0_120, %c0_121, %c0_122], %728 {strides = array<i32>} : memref<1x6x14x14xf32, #tpu.memory_space<vmem>>, vector<1x1x14x14xf32>,
    %c0_123 = arith.constant 0 : index
    %c1_124 = arith.constant 1 : index
    %c0_125 = arith.constant 0 : index
    %c0_126 = arith.constant 0 : index
    %729 = vector.load %arg4[%c0_123, %c1_124, %c0_125, %c0_126] : memref<1x6x14x14xf32, #tpu.memory_space<vmem>>, vector<1x1x14x14xf32>
    %730 = vector.shape_cast %729 : vector<1x1x14x14xf32> to vector<14x14xf32>
    %731 = vector.shape_cast %709 : vector<14x14xf32> to vector<1x1x14x14xf32>
    tpu.vector_store %arg4[%c0_123, %c1_124, %c0_125, %c0_126], %731 {strides = array<i32>} : memref<1x6x14x14xf32, #tpu.memory_space<vmem>>, vector<1x1x14x14xf32>,
    %c0_127 = arith.constant 0 : index
    %c2_128 = arith.constant 2 : index
    %c0_129 = arith.constant 0 : index
    %c0_130 = arith.constant 0 : index
    %732 = vector.load %arg4[%c0_127, %c2_128, %c0_129, %c0_130] : memref<1x6x14x14xf32, #tpu.memory_space<vmem>>, vector<1x1x14x14xf32>
    %733 = vector.shape_cast %732 : vector<1x1x14x14xf32> to vector<14x14xf32>
    %734 = vector.shape_cast %713 : vector<14x14xf32> to vector<1x1x14x14xf32>
    tpu.vector_store %arg4[%c0_127, %c2_128, %c0_129, %c0_130], %734 {strides = array<i32>} : memref<1x6x14x14xf32, #tpu.memory_space<vmem>>, vector<1x1x14x14xf32>,
    %c0_131 = arith.constant 0 : index
    %c3_132 = arith.constant 3 : index
    %c0_133 = arith.constant 0 : index
    %c0_134 = arith.constant 0 : index
    %735 = vector.load %arg4[%c0_131, %c3_132, %c0_133, %c0_134] : memref<1x6x14x14xf32, #tpu.memory_space<vmem>>, vector<1x1x14x14xf32>
    %736 = vector.shape_cast %735 : vector<1x1x14x14xf32> to vector<14x14xf32>
    %737 = vector.shape_cast %717 : vector<14x14xf32> to vector<1x1x14x14xf32>
    tpu.vector_store %arg4[%c0_131, %c3_132, %c0_133, %c0_134], %737 {strides = array<i32>} : memref<1x6x14x14xf32, #tpu.memory_space<vmem>>, vector<1x1x14x14xf32>,
    %c0_135 = arith.constant 0 : index
    %c4_136 = arith.constant 4 : index
    %c0_137 = arith.constant 0 : index
    %c0_138 = arith.constant 0 : index
    %738 = vector.load %arg4[%c0_135, %c4_136, %c0_137, %c0_138] : memref<1x6x14x14xf32, #tpu.memory_space<vmem>>, vector<1x1x14x14xf32>
    %739 = vector.shape_cast %738 : vector<1x1x14x14xf32> to vector<14x14xf32>
    %740 = vector.shape_cast %721 : vector<14x14xf32> to vector<1x1x14x14xf32>
    tpu.vector_store %arg4[%c0_135, %c4_136, %c0_137, %c0_138], %740 {strides = array<i32>} : memref<1x6x14x14xf32, #tpu.memory_space<vmem>>, vector<1x1x14x14xf32>,
    %c0_139 = arith.constant 0 : index
    %c5_140 = arith.constant 5 : index
    %c0_141 = arith.constant 0 : index
    %c0_142 = arith.constant 0 : index
    %741 = vector.load %arg4[%c0_139, %c5_140, %c0_141, %c0_142] : memref<1x6x14x14xf32, #tpu.memory_space<vmem>>, vector<1x1x14x14xf32>
    %742 = vector.shape_cast %741 : vector<1x1x14x14xf32> to vector<14x14xf32>
    %743 = vector.shape_cast %725 : vector<14x14xf32> to vector<1x1x14x14xf32>
    tpu.vector_store %arg4[%c0_139, %c5_140, %c0_141, %c0_142], %743 {strides = array<i32>} : memref<1x6x14x14xf32, #tpu.memory_space<vmem>>, vector<1x1x14x14xf32>,
    return
  }
  func.func @transform_0(%arg0: i32) -> i32 {
    %c0_i32 = arith.constant 0 : i32
    %c0_i32_0 = arith.constant 0 : i32
    return %c0_i32 : i32
  }
  func.func @transform_1(%arg0: i32) -> i32 {
    %c0_i32 = arith.constant 0 : i32
    %c0_i32_0 = arith.constant 0 : i32
    return %c0_i32 : i32
  }
  func.func @transform_2(%arg0: i32) -> (i32, i32, i32, i32) {
    %c0_i32 = arith.constant 0 : i32
    %c0_i32_0 = arith.constant 0 : i32
    %c0_i32_1 = arith.constant 0 : i32
    %c0_i32_2 = arith.constant 0 : i32
    return %arg0, %c0_i32, %c0_i32_0, %c0_i32_1 : i32, i32, i32, i32
  }
  func.func @transform_3(%arg0: i32) -> (i32, i32, i32, i32) {
    %c0_i32 = arith.constant 0 : i32
    %c0_i32_0 = arith.constant 0 : i32
    %c0_i32_1 = arith.constant 0 : i32
    %c0_i32_2 = arith.constant 0 : i32
    return %arg0, %c0_i32, %c0_i32_0, %c0_i32_1 : i32, i32, i32, i32
  }
}

</mosaic_0001>

<bundles_post_ra>
// kernel: tpu_custom_call.1
= control target key start
LH: loop header
LB: loop body
LE: loop exit
PB: predicated region body
PF: predicated region fallthrough
CT: control target
= control target key end

     0   :  { %8 = vsyncpa [#allocation4], 0  ;;  %s4267_s0 = inlined_call_operand.hbm [shape: f32[162], index: 0, kind: input, shape index: {}]   ;;  %s4268_s1 = inlined_call_operand.vmem [shape: f32[6], index: 1, kind: input, shape index: {}]   ;;  %s4269_s2 = inlined_call_operand.hbm [shape: f32[2,3,16,16], index: 2, kind: input, shape index: {}]   ;;  %s4270_s3 = inlined_call_operand.vmem [shape: f32[2,6,14,14], index: 3, kind: output, shape index: {}]  }
   0x1   :  { %9 = vsyncpa [#allocation5], 0 }
   0x2   :  { %10 = vsyncpa [#allocation3], 0 }
   0x3   :  { %12 = vsyncpa [#allocation3 + $0x1], 0  ;;  %s2597_s12 = smov 0   ;;  %s2599_s13 = smov 0  }
   0x4   :  { %s2601_s14 = smov 0   ;;  %s2603_s15 = smov 0  }
   0x5 LB: > { %s2616_s16 = sadd.s32 4294967295, %s2568_s15   ;;  %s2619_s17 = sadd.s32 1, %s2568_s15   ;;  %s2568_s15 = sphi %s2603_s15, %s4411_s15   ;;  %s2564_s14 = sphi %s2601_s14, %s4410_s14   ;;  %s2560_s13 = sphi %s2599_s13, %s4409_s13   ;;  %s2556_s12 = sphi %s2597_s12, %s4408_s12  }
   0x6   : > { %s64_s18 = ssub.s32 %s2568_s15, %s2619_s17  ;;  %s67_s19 = sadd.s32 1, %s2564_s14 }
   0x7   : > { %p65_p0 = scmp.eq.s32.totalorder %s64_s18, 0  ;;  %p74_p1 = scmp.ne.s32.totalorder %s2564_s14, %s2560_s13 }
   0x8   : > { %p75_p2 = scmp.eq.s32.totalorder %s2568_s15, 0  ;;  %p80_p3 = scmp.ne.s32.totalorder %s2560_s13, %s2556_s12 }
   0x9   : > { %s2629_s20 = scalar_select %p65_p0, %s2564_s14, %s67_s19  }
   0xa   : > { %p76_p4 = por %p75_p2, %p74_p1  ;;  %p4271_p5 = scmp.eq.s32.totalorder %s2616_s16, 0 }
   0xb   : > { %p2201_p6 = scmp.ge.s32.totalorder %s2568_s15, 1  ;;  %p117_p7 = scmp.lt.s32.totalorder %s2568_s15, 3 }
   0xc   : > { %p2636_p8 = por %p4271_p5, %p80_p3  ;;  %p2427_p10 = scmp.lt.s32.totalorder %s2568_s15, 2 }
   0xd   : > { %p2640_p9 = pnand %p2201_p6, %p117_p7  ;;  %s139_s25 = sshll.u32 %s4268_s1, 4  ;;  %s140_s25 = int_to_ptr.vmem [resolvable:$true] %s139_s25 }
   0xe   : > { %s4280_s21 = scalar_select %p2636_p8, 1, 0 }
   0xf   : > { %s4281_s22 = scalar_select %p2640_p9, 1, 0 }
  0x10   : > { %p2414_p11 = pneg %p2640_p9  ;;  %p2650_p12 = pnand %p2427_p10, %p76_p4 }
  0x11   : > { %s150_s28 = sand.u32 1, %s2564_s14   ;;  %s2570_s29 = smov [#allocation2]  }
  0x12   : > { %p2656_p13 = pnand %p2414_p11, %p4271_p5  ;;  %s2483_s5 = scalar_lea.vmem %s140_s25, 16 }
  0x13   : > { %p2484_p0 = scmp.ne.s32.totalorder %s140_s25, %s2483_s5  ;;  %p2491_p4 = scmp.lt.s32.totalorder %s140_s25, %s140_s25 }
  0x14   : > { %2417 = dma.hbm_to_smem (!%p2656_p13), %s4267_s0, 32, %s2570_s29, [#allocation4]  }
  0x15   : > { %p2485_p1 = pneg %p2656_p13  ;;  %p2492_p6 = scmp.lt.s32.totalorder %s2483_s5, %s2483_s5 }
  0x17   : > { %p2486_p2 = pnand %p2485_p1, %p2484_p0  ;;  %p2493_p7 = por %p2492_p6, %p2491_p4 }
  0x19   : > { %p2487_p3 = pneg %p2486_p2 }
  0x1b   : > { %p2494_p10 = pnand %p2493_p7, %p2487_p3 }
  0x1d   : > { %2497 = shalt.err (!%p2494_p10)
}
  0x1e   : > { %s2571_s6 = smov [#allocation6]   ;;  %s2400_s7 = smul.u32 48, %s150_s28 }
  0x1f   : > { %2420 = dma.vmem_to_smem (!%p2656_p13), %s140_s25, 16, %s2571_s6, [#allocation5]  }
  0x20   : > { %s2401_s8 = smul.u32 768, %s2568_s15  ;;  %s154_s12 = scalar_lea.vmem [#allocation7], %s2400_s7 }
  0x21   : > { %s161_s18 = sshll.u32 %s154_s12, 4  ;;  %s2678_s19 = scalar_lea.sflag [#allocation3], %s150_s28  ;;  %s2676_s18 = int_to_ptr.vmem [resolvable:$true] %s161_s18 }
  0x22   : > { %s2674_s11 = scalar_lea.hbm %s4269_s2, %s2401_s8  ;;  %p2500_p13 = pneg %p2650_p12 }
  0x23   : > { %s2498_s23 = scalar_lea.hbm %s2674_s11, 768  ;;  %s2503_s25 = scalar_lea.hbm %s4269_s2, 1536 }
  0x24   : > { %p2499_p11 = scmp.ne.s32.totalorder %s2674_s11, %s2498_s23  ;;  %p2504_p2 = scmp.lt.s32.totalorder %s2674_s11, %s4269_s2 }
  0x25   : > { %p2505_p3 = scmp.lt.s32.totalorder %s2503_s25, %s2498_s23 }
  0x26   : > { %p2501_p0 = pnand %p2500_p13, %p2499_p11 }
  0x27   : > { %p2506_p4 = por %p2505_p3, %p2504_p2 }
  0x28   : > { %p2502_p1 = pneg %p2501_p0 }
  0x2a   : > { %p2507_p6 = pnand %p2506_p4, %p2502_p1 }
  0x2c   : > { %2510 = shalt.err (!%p2507_p6)
}
  0x2d   : > { %s2511_s28 = scalar_lea.vmem %s2676_s18, 768  ;;  %s2572_s30 = smov [#allocation7]  }
  0x2e   : > { %p2512_p7 = scmp.ne.s32.totalorder %s2676_s18, %s2511_s28  ;;  %s2516_s4 = sshll.u32 %s2572_s30, 4  ;;  %s2517_s4 = int_to_ptr.vmem [resolvable:$false] %s2516_s4 }
  0x2f   : > { %s2518_s5 = scalar_lea.vmem %s2517_s4, 1536  ;;  %p2519_p0 = scmp.lt.s32.totalorder %s2676_s18, %s2517_s4 }
  0x30   : > { %p2514_p10 = pnand %p2512_p7, %p2500_p13  ;;  %p2520_p5 = scmp.lt.s32.totalorder %s2518_s5, %s2511_s28 }
  0x32   : > { %p2515_p11 = pneg %p2514_p10  ;;  %p2521_p8 = por %p2520_p5, %p2519_p0 }
  0x34   : > { %p2522_p9 = pnand %p2521_p8, %p2515_p11 }
  0x36   : > { %2525 = shalt.err (!%p2522_p9)
}
  0x37   : > { %s2573_s6 = smov 128   ;;  %s2574_s7 = smov 8  }
  0x38   : > { %2424 = dma.hbm_to_vmem [thread:$0]  (!%p2650_p12), %s2674_s11, 768, %s2676_s18, %s2678_s19, %s2573_s6, %s2573_s6, %s2574_s7  }
  0x39   : > { %p4284_p13 = scmp.ne.s32.totalorder %s4281_s22, 0 }
  0x3b   : > { %173 = sbr.rel (%p4284_p13) target bundleno = 633 (0x279), region = 32 }
  0x40   : > { %p4285_p1 = scmp.eq.s32.totalorder %s2616_s16, 0 }
  0x42   : > { %2543 = dma.done.wait (%p4285_p1), [#allocation4], 32   ;;  %p4286_p2 = pmov %p4285_p1 }
  0x43   : > { %p4287_p5 = pmov %p4285_p1 }
  0x44   : > { %2545 = vsyncadd (%p4286_p2), [#allocation4], 4294967264 }
  0x45   : > { %2547 = dma.done.wait (%p4287_p5), [#allocation5], 16   ;;  %p4288_p8 = pmov %p4285_p1 }
  0x46   : > { %s183_s8 = sand.u32 1, %s2560_s13   ;;  %p4289_p9 = scmp.ne.s32.totalorder %s4280_s21, 0 }
  0x47   : > { %2549 = vsyncadd (%p4288_p8), [#allocation5], 4294967280  ;;  %s2402_s26 = smul.u32 48, %s183_s8  ;;  %s184_s9 = scalar_lea.sflag [#allocation3], %s183_s8 }
  0x49   : > { %s2710_s10 = scalar_lea.vmem [#allocation7], %s2402_s26 }
  0x4a   : > { %2551 = dma.done.wait (%p4289_p9), %s184_s9, 768  }
  0x4b   : > { %2553 = vsyncadd (%p4289_p9), %s184_s9, 4294966528 }
  0x4c   : > { %192 = sfence }
  0x4d   : > { %s2221_s22 = sld [smem:[#allocation2 + $0x1c]]  ;;  %v2717_v0 = vld [vmem:[%s2710_s10] sm:$0xff]  ;;  %v2720_v1 = vld [vmem:[%s2710_s10 + $0x8] sm:$0x3f]  ;;  %s2575_s21 = smov 127   ;;  %vm2092_vm0 = vcmask 111616  }
  0x4e   : > { %s2220_s11 = sld [smem:[#allocation2 + $0x1]]  ;;  %s2576_s29 = smov 126   ;;  %v2769_v38 = vld [vmem:[%s2710_s10 + $0x9] sm:$0x3f]  ;;  %v2772_v40 = vld [vmem:[%s2710_s10 + $0x1] sm:$0xff]  ;;  %vm2090_vm1 = vcmask 113664  }
  0x4f   : > { %s2222_s12 = sld [smem:[#allocation2 + $0x37]]  ;;  %p211_p12 = scmp.lt.s32.totalorder %s2616_s16, 1 }
  0x50   : > { %s2223_s18 = sld [smem:[#allocation2 + $0x52]] }
  0x51   : > { %s2224_s19 = sld [smem:[#allocation2 + $0x6d]]  ;;  %s4413_s16 = smov (!%p211_p12, %s2616_s16), 1 }
  0x52   : > { %s2225_s23 = sld [smem:[#allocation2 + $0x88]] }
  0x53   : > { %v287_v2 = vstv %s2221_s22  ;;  %s2226_s15 = sld [smem:[#allocation2 + $0x2]] }
  0x54   : > { %v288_v3 = vmul.f32 %v287_v2, %v2717_v0  ;;  %v273_v4 = vstv %s2220_s11  ;;  %v289_v6 = vmul.f32 %v287_v2, %v2720_v1  ;;  %s2227_s24 = sld [smem:[#allocation2 + $0x1d]] }
  0x55   : > { %v274_v5 = vmul.f32 %v273_v4, %v2717_v0  ;;  %v275_v7 = vmul.f32 %v273_v4, %v2720_v1  ;;  %v301_v8 = vstv %s2222_s12  ;;  %s2228_s25 = sld [smem:[#allocation2 + $0x38]] }
  0x56   : > { %292 = vrot.lane.b32.xlu1 %v288_v3, %s2575_s21  ;;  %v303_v9 = vmul.f32 %v301_v8, %v2720_v1  ;;  %v302_v10 = vmul.f32 %v301_v8, %v2717_v0  ;;  %v315_v11 = vstv %s2223_s18  ;;  %s2229_s27 = sld [smem:[#allocation2 + $0x53]] }
  0x57   : > { %278 = vrot.lane.b32.xlu0 %v274_v5, %s2575_s21  ;;  %v317_v12 = vmul.f32 %v315_v11, %v2720_v1  ;;  %v316_v13 = vmul.f32 %v315_v11, %v2717_v0  ;;  %v329_v14 = vstv %s2224_s19  ;;  %s2230_s28 = sld [smem:[#allocation2 + $0x6e]] }
  0x58   : > { %v331_v15 = vmul.f32 %v329_v14, %v2720_v1  ;;  %v330_v16 = vmul.f32 %v329_v14, %v2717_v0  ;;  %v343_v17 = vstv %s2225_s23  ;;  %s2231_s30 = sld [smem:[#allocation2 + $0x89]]  ;;  %v2823_v14 = vld [vmem:[%s2710_s10 + $0xa] sm:$0x3f] }
  0x59   : > { %v345_v18 = vmul.f32 %v343_v17, %v2720_v1  ;;  %v344_v19 = vmul.f32 %v343_v17, %v2717_v0  ;;  %v357_v20 = vstv %s2226_s15  ;;  %s2238_s4 = sld [smem:[#allocation2 + $0x4]] }
  0x5a   : > { %294 = vrot.lane.b32.xlu1 %v289_v6, %s2575_s21  ;;  %v359_v21 = vmul.f32 %v357_v20, %v2720_v1  ;;  %v358_v22 = vmul.f32 %v357_v20, %v2717_v0  ;;  %v371_v23 = vstv %s2227_s24  ;;  %s2239_s5 = sld [smem:[#allocation2 + $0x1f]] }
  0x5b   : > { %280 = vrot.lane.b32.xlu0 %v275_v7, %s2575_s21  ;;  %v373_v24 = vmul.f32 %v371_v23, %v2720_v1  ;;  %v372_v25 = vmul.f32 %v371_v23, %v2717_v0  ;;  %v385_v26 = vstv %s2228_s25  ;;  %s2240_s6 = sld [smem:[#allocation2 + $0x3a]] }
  0x5c   : > { %v387_v27 = vmul.f32 %v385_v26, %v2720_v1  ;;  %v386_v28 = vmul.f32 %v385_v26, %v2717_v0  ;;  %v399_v29 = vstv %s2229_s27  ;;  %s2241_s7 = sld [smem:[#allocation2 + $0x55]] }
  0x5d   : > { %v401_v30 = vmul.f32 %v399_v29, %v2720_v1  ;;  %v400_v31 = vmul.f32 %v399_v29, %v2717_v0  ;;  %v413_v32 = vstv %s2230_s28  ;;  %s2242_s8 = sld [smem:[#allocation2 + $0x70]] }
  0x5e   : > { %308 = vrot.lane.b32.xlu1 %v303_v9, %s2575_s21  ;;  %v415_v33 = vmul.f32 %v413_v32, %v2720_v1  ;;  %v414_v34 = vmul.f32 %v413_v32, %v2717_v0  ;;  %v427_v35 = vstv %s2231_s30  ;;  %s2243_s26 = sld [smem:[#allocation2 + $0x8b]] }
  0x5f   : > { %306 = vrot.lane.b32.xlu0 %v302_v10, %s2575_s21  ;;  %v429_v36 = vmul.f32 %v427_v35, %v2720_v1  ;;  %v428_v37 = vmul.f32 %v427_v35, %v2717_v0  ;;  %v479_v39 = vstv %s2238_s4  ;;  %s2244_s9 = sld [smem:[#allocation2 + $0x5]] }
  0x60   : > { %v481_v41 = vmul.f32 %v479_v39, %v2769_v38  ;;  %v480_v42 = vmul.f32 %v479_v39, %v2772_v40  ;;  %v493_v43 = vstv %s2239_s5  ;;  %s2245_s22 = sld [smem:[#allocation2 + $0x20]] }
  0x61   : > { %v495_v44 = vmul.f32 %v493_v43, %v2769_v38  ;;  %v494_v45 = vmul.f32 %v493_v43, %v2772_v40  ;;  %v507_v46 = vstv %s2240_s6  ;;  %s2246_s11 = sld [smem:[#allocation2 + $0x3b]] }
  0x62   : > { %322 = vrot.lane.b32.xlu1 %v317_v12, %s2575_s21  ;;  %v509_v47 = vmul.f32 %v507_v46, %v2769_v38  ;;  %v508_v48 = vmul.f32 %v507_v46, %v2772_v40  ;;  %v521_v49 = vstv %s2241_s7  ;;  %s2247_s12 = sld [smem:[#allocation2 + $0x56]] }
  0x63   : > { %320 = vrot.lane.b32.xlu0 %v316_v13, %s2575_s21  ;;  %v523_v50 = vmul.f32 %v521_v49, %v2769_v38  ;;  %v522_v51 = vmul.f32 %v521_v49, %v2772_v40  ;;  %v535_v52 = vstv %s2242_s8  ;;  %s2248_s18 = sld [smem:[#allocation2 + $0x71]] }
  0x64   : > { %v537_v53 = vmul.f32 %v535_v52, %v2769_v38  ;;  %v536_v54 = vmul.f32 %v535_v52, %v2772_v40  ;;  %v549_v55 = vstv %s2243_s26  ;;  %s2249_s19 = sld [smem:[#allocation2 + $0x8c]] }
  0x65   : > { %v551_v56 = vmul.f32 %v549_v55, %v2769_v38  ;;  %v550_v57 = vmul.f32 %v549_v55, %v2772_v40  ;;  %v563_v58 = vstv %s2244_s9  ;;  %s2256_s23 = sld [smem:[#allocation2 + $0x7]] }
  0x66   : > { %336 = vrot.lane.b32.xlu1 %v331_v15, %s2575_s21  ;;  %v565_v59 = vmul.f32 %v563_v58, %v2769_v38  ;;  %v564_v60 = vmul.f32 %v563_v58, %v2772_v40  ;;  %v577_v61 = vstv %s2245_s22  ;;  %s2257_s15 = sld [smem:[#allocation2 + $0x22]] }
  0x67   : > { %334 = vrot.lane.b32.xlu0 %v330_v16, %s2575_s21  ;;  %v579_v62 = vmul.f32 %v577_v61, %v2769_v38  ;;  %v578_v63 = vmul.f32 %v577_v61, %v2772_v40  ;;  %v591_v2 = vstv %s2246_s11  ;;  %s2258_s24 = sld [smem:[#allocation2 + $0x3d]]  ;;  %v2826_v16 = vld [vmem:[%s2710_s10 + $0x2] sm:$0xff] }
  0x68   : > { %v593_v3 = vmul.f32 %v591_v2, %v2769_v38  ;;  %v592_v4 = vmul.f32 %v591_v2, %v2772_v40  ;;  %v605_v5 = vstv %s2247_s12  ;;  %s2259_s25 = sld [smem:[#allocation2 + $0x58]] }
  0x69   : > { %v607_v6 = vmul.f32 %v605_v5, %v2769_v38  ;;  %v606_v7 = vmul.f32 %v605_v5, %v2772_v40  ;;  %v619_v8 = vstv %s2248_s18  ;;  %s2260_s27 = sld [smem:[#allocation2 + $0x73]] }
  0x6a   : > { %350 = vrot.lane.b32.xlu1 %v345_v18, %s2575_s21  ;;  %v621_v9 = vmul.f32 %v619_v8, %v2769_v38  ;;  %v620_v10 = vmul.f32 %v619_v8, %v2772_v40  ;;  %v633_v11 = vstv %s2249_s19  ;;  %s2261_s28 = sld [smem:[#allocation2 + $0x8e]] }
  0x6b   : > { %348 = vrot.lane.b32.xlu0 %v344_v19, %s2575_s21  ;;  %v635_v12 = vmul.f32 %v633_v11, %v2769_v38  ;;  %v634_v13 = vmul.f32 %v633_v11, %v2772_v40  ;;  %v685_v15 = vstv %s2256_s23  ;;  %s2262_s30 = sld [smem:[#allocation2 + $0x8]] }
  0x6c   : > { %v687_v17 = vmul.f32 %v685_v15, %v2823_v14  ;;  %v686_v18 = vmul.f32 %v685_v15, %v2826_v16  ;;  %v699_v19 = vstv %s2257_s15  ;;  %s2263_s4 = sld [smem:[#allocation2 + $0x23]] }
  0x6d   : > { %v701_v20 = vmul.f32 %v699_v19, %v2823_v14  ;;  %s2264_s5 = sld [smem:[#allocation2 + $0x3e]] }
  0x6e   : > { %364 = vrot.lane.b32.xlu1 %v359_v21, %s2576_s29  ;;  %v700_v21 = vmul.f32 %v699_v19, %v2826_v16  ;;  %s2856_s6 = sld [smem:[#allocation2 + $0x1b]] }
  0x6f   : > { %362 = vrot.lane.b32.xlu0 %v358_v22, %s2576_s29  ;;  %v713_v22 = vstv %s2258_s24  ;;  %s2862_s7 = sld [smem:[#allocation2 + $0x59]] }
  0x70   : > { %v715_v23 = vmul.f32 %v713_v22, %v2823_v14  ;;  %s2864_s8 = sld [smem:[#allocation6 + $0x1]] }
  0x71   : > { %s2868_s26 = sld [smem:[#allocation2]] }
  0x72   : > { %378 = vrot.lane.b32.xlu1 %v373_v24, %s2576_s29  ;;  %v714_v24 = vmul.f32 %v713_v22, %v2826_v16  ;;  %s2873_s9 = sld [smem:[#allocation2 + $0x36]] }
  0x73   : > { %376 = vrot.lane.b32.xlu0 %v372_v25, %s2576_s29  ;;  %v727_v25 = vstv %s2259_s25  ;;  %v797_v46 = vstv %s2264_s5  ;;  %s2878_s22 = sld [smem:[#allocation2 + $0x74]] }
  0x74   : > { %v729_v26 = vmul.f32 %v727_v25, %v2823_v14  ;;  %s2880_s11 = sld [smem:[#allocation6]]  ;;  %v799_v49 = vmul.f32 %v797_v46, %v2823_v14  ;;  %v243_v55 = vstv %s2856_s6 }
  0x75   : > { %s2884_s12 = sld [smem:[#allocation6 + $0x2]] }
  0x76   : > { %392 = vrot.lane.b32.xlu1 %v387_v27, %s2576_s29  ;;  %v728_v27 = vmul.f32 %v727_v25, %v2826_v16  ;;  %s2889_s18 = sld [smem:[#allocation2 + $0x51]]  ;;  %v220_v5 = vstv %s2864_s8 }
  0x77   : > { %390 = vrot.lane.b32.xlu0 %v386_v28, %s2576_s29  ;;  %v741_v28 = vstv %s2260_s27  ;;  %s2895_s19 = sld [smem:[#allocation2 + $0x8f]] }
  0x78   : > { %v743_v29 = vmul.f32 %v741_v28, %v2823_v14  ;;  %s2899_s23 = sld [smem:[#allocation2 + $0x3]]  ;;  %v249_v58 = vstv %s2873_s9 }
  0x79   : > { %s2902_s15 = sld [smem:[#allocation6 + $0x3]]  ;;  %v250_v15 = vmul.f32 %v249_v58, %v2717_v0 }
  0x7a   : > { %406 = vrot.lane.b32.xlu1 %v401_v30, %s2576_s29  ;;  %v742_v30 = vmul.f32 %v741_v28, %v2826_v16  ;;  %s2908_s24 = sld [smem:[#allocation2 + $0x6c]]  ;;  %v217_v2 = vstv %s2880_s11 }
  0x7b   : > { %404 = vrot.lane.b32.xlu0 %v400_v31, %s2576_s29  ;;  %v755_v31 = vstv %s2261_s28  ;;  %s2916_s25 = sld [smem:[#allocation2 + $0xa]] }
  0x7c   : > { %v757_v32 = vmul.f32 %v755_v31, %v2823_v14  ;;  %s2921_s27 = sld [smem:[#allocation2 + $0x1e]] }
  0x7d   : > { %s2931_s28 = sld [smem:[#allocation6 + $0x4]] }
  0x7e   : > { %420 = vrot.lane.b32.xlu1 %v415_v33, %s2576_s29  ;;  %v756_v33 = vmul.f32 %v755_v31, %v2826_v16  ;;  %s2948_s5 = sld [smem:[#allocation2 + $0x87]]  ;;  %v2966_v31 = vld [vmem:[%s2710_s10 + $0x10] sm:$0xff] }
  0x7f   : > { %418 = vrot.lane.b32.xlu0 %v414_v34, %s2576_s29  ;;  %v769_v34 = vstv %s2262_s30  ;;  %s2939_s30 = sld [smem:[#allocation2 + $0x25]] }
  0x80   : > { %v770_v39 = vmul.f32 %v769_v34, %v2826_v16  ;;  %v261_v25 = vstv %s2908_s24  ;;  %s2956_s6 = sld [smem:[#allocation2 + $0x40]] }
  0x81   : > { %s2976_s8 = sld [smem:[#allocation6 + $0x5]] }
  0x82   : > { %434 = vrot.lane.b32.xlu1 %v429_v36, %s2576_s29  ;;  %s2995_s9 = sld [smem:[#allocation2 + $0x6f]] }
  0x83   : > { %432 = vrot.lane.b32.xlu0 %v428_v37, %s2576_s29  ;;  %v771_v37 = vmul.f32 %v769_v34, %v2823_v14  ;;  %s3015_s11 = sld [smem:[#allocation2 + $0x8a]] }
  0x84   : > { %s2286_s24 = sld [smem:[#allocation2 + $0x77]] }
  0x86   : > { %486 = vrot.lane.b32.xlu1 %v481_v41, %s2575_s21  ;;  %v783_v41 = vstv %s2263_s4  ;;  %s2945_s4 = sld [smem:[#allocation2 + $0x39]] }
  0x87   : > { %484 = vrot.lane.b32.xlu0 %v480_v42, %s2575_s21 }
  0x8a   : > { %500 = vrot.lane.b32.xlu1 %v495_v44, %s2575_s21  ;;  %v785_v44 = vmul.f32 %v783_v41, %v2823_v14 }
  0x8b   : > { %498 = vrot.lane.b32.xlu0 %v494_v45, %s2575_s21  ;;  %v784_v45 = vmul.f32 %v783_v41, %v2826_v16  ;;  %v449_v41 = vstv %s2921_s27  ;;  %s3097_s27 = sld [smem:[#allocation2 + $0x6]] }
  0x8e   : > { %514 = vrot.lane.b32.xlu1 %v509_v47, %s2575_s21 }
  0x8f   : > { %512 = vrot.lane.b32.xlu0 %v508_v48, %s2575_s21 }
  0x92   : > { %528 = vrot.lane.b32.xlu1 %v523_v50, %s2575_s21  ;;  %v798_v50 = vmul.f32 %v797_v46, %v2826_v16 }
  0x93   : > { %526 = vrot.lane.b32.xlu0 %v522_v51, %s2575_s21  ;;  %v811_v51 = vstv %s2862_s7  ;;  %s2972_s7 = sld [smem:[#allocation2 + $0x54]] }
  0x96   : > { %542 = vrot.lane.b32.xlu1 %v537_v53, %s2575_s21  ;;  %v237_v53 = vstv %s2868_s26  ;;  %s2985_s26 = sld [smem:[#allocation2 + $0x5b]] }
  0x97   : > { %540 = vrot.lane.b32.xlu0 %v536_v54, %s2575_s21  ;;  %v238_v61 = vmul.f32 %v237_v53, %v2717_v0 }
  0x9a   : > { %556 = vrot.lane.b32.xlu1 %v551_v56, %s2575_s21  ;;  %v813_v56 = vmul.f32 %v811_v51, %v2823_v14 }
  0x9b   : > { %554 = vrot.lane.b32.xlu0 %v550_v57, %s2575_s21  ;;  %v239_v57 = vmul.f32 %v237_v53, %v2720_v1 }
  0x9e   : > { %570 = vrot.lane.b32.xlu1 %v565_v59, %s2576_s29  ;;  %v812_v59 = vmul.f32 %v811_v51, %v2826_v16 }
  0x9f   : > { %568 = vrot.lane.b32.xlu0 %v564_v60, %s2576_s29  ;;  %v825_v60 = vstv %s2878_s22  ;;  %s3002_s22 = sld [smem:[#allocation2 + $0x76]] }
  0xa0   : > { %v827_v8 = vmul.f32 %v825_v60, %v2823_v14  ;;  %v826_v11 = vmul.f32 %v825_v60, %v2826_v16 }
  0xa2   : > { %584 = vrot.lane.b32.xlu1 %v579_v62, %s2576_s29 }
  0xa3   : > { %582 = vrot.lane.b32.xlu0 %v578_v63, %s2576_s29  ;;  %v244_v63 = vmul.f32 %v243_v55, %v2717_v0 }
  0xa5   : > { %v246_v19 = vadd.f32 %v244_v63, %v220_v5  ;;  %v450_v63 = vmul.f32 %v449_v41, %v2772_v40 }
  0xa6   : > { %598 = vrot.lane.b32.xlu1 %v593_v3, %s2576_s29  ;;  %v245_v3 = vmul.f32 %v243_v55, %v2720_v1 }
  0xa7   : > { %596 = vrot.lane.b32.xlu0 %v592_v4, %s2576_s29 }
  0xaa   : > { %612 = vrot.lane.b32.xlu1 %v607_v6, %s2576_s29  ;;  %v251_v6 = vmul.f32 %v249_v58, %v2720_v1  ;;  %v451_v58 = vmul.f32 %v449_v41, %v2769_v38 }
  0xab   : > { %610 = vrot.lane.b32.xlu0 %v606_v7, %s2576_s29  ;;  %v255_v7 = vstv %s2889_s18  ;;  %s3042_s18 = sld [smem:[#allocation2 + $0xb]] }
  0xae   : > { %626 = vrot.lane.b32.xlu1 %v621_v9, %s2576_s29  ;;  %v241_v9 = vadd.f32 %v239_v57, %v217_v2 }
  0xaf   : > { %624 = vrot.lane.b32.xlu0 %v620_v10, %s2576_s29  ;;  %v223_v10 = vstv %s2884_s12  ;;  %s3026_s12 = sld [smem:[#allocation2 + $0x91]] }
  0xb0   : > { %v252_v34 = vadd.f32 %v250_v15, %v223_v10 }
  0xb2   : > { %640 = vrot.lane.b32.xlu1 %v635_v12, %s2576_s29  ;;  %v839_v12 = vstv %s2895_s19  ;;  %s3058_s19 = sld [smem:[#allocation2 + $0x26]] }
  0xb3   : > { %638 = vrot.lane.b32.xlu0 %v634_v13, %s2576_s29  ;;  %v240_v13 = vadd.f32 %v238_v61, %v217_v2  ;;  %v840_v28 = vmul.f32 %v839_v12, %v2826_v16  ;;  %v455_v2 = vstv %s2945_s4  ;;  %s3117_s4 = sld [smem:[#allocation2 + $0x28]] }
  0xb4   : > { %v457_v15 = vmul.f32 %v455_v2, %v2769_v38 }
  0xb6   : > { %692 = vrot.lane.b32.xlu1 %v687_v17, %s2575_s21 }
  0xb7   : > { %690 = vrot.lane.b32.xlu0 %v686_v18, %s2575_s21  ;;  %v443_v18 = vstv %s2899_s23  ;;  %s2284_s23 = sld [smem:[#allocation2 + $0x41]] }
  0xba   : > { %706 = vrot.lane.b32.xlu1 %v701_v20, %s2575_s21  ;;  %v247_v20 = vadd.f32 %v245_v3, %v220_v5  ;;  %v262_v5 = vmul.f32 %v261_v25, %v2717_v0 }
  0xbb   : > { %704 = vrot.lane.b32.xlu0 %v700_v21, %s2575_s21  ;;  %v257_v21 = vmul.f32 %v255_v7, %v2720_v1 }
  0xbe   : > { %720 = vrot.lane.b32.xlu1 %v715_v23, %s2575_s21  ;;  %v253_v23 = vadd.f32 %v251_v6, %v223_v10  ;;  %v920_v10 = vstv %s2956_s6  ;;  %s3138_s6 = sld [smem:[#allocation2 + $0x43]] }
  0xbf   : > { %718 = vrot.lane.b32.xlu0 %v714_v24, %s2575_s21  ;;  %v226_v24 = vstv %s2902_s15  ;;  %s2285_s15 = sld [smem:[#allocation2 + $0x5c]] }
  0xc2   : > { %734 = vrot.lane.b32.xlu1 %v729_v26, %s2575_s21  ;;  %v841_v26 = vmul.f32 %v839_v12, %v2823_v14 }
  0xc3   : > { %732 = vrot.lane.b32.xlu0 %v728_v27, %s2575_s21 }
  0xc6   : > { %748 = vrot.lane.b32.xlu1 %v743_v29, %s2575_s21  ;;  %v2962_v29 = vld [vmem:[%s2710_s10 + $0x18] sm:$0x3f] }
  0xc7   : > { %746 = vrot.lane.b32.xlu0 %v742_v30, %s2575_s21  ;;  %v892_v30 = vstv %s2916_s25  ;;  %s2287_s25 = sld [smem:[#allocation2 + $0x92]] }
  0xc8   : > { %v2852_v35 = vpop.permute.xlu1 %292  ;;  %v894_v51 = vmul.f32 %v2962_v29, %v892_v30  ;;  %v893_v53 = vmul.f32 %v2966_v31, %v892_v30 }
  0xc9   : > { %v2854_v36 = vpop.permute.xlu0 %278 }
  0xca   : > { %762 = vrot.lane.b32.xlu1 %v757_v32, %s2575_s21  ;;  %v445_v32 = vmul.f32 %v443_v18, %v2769_v38 }
  0xcb   : > { %760 = vrot.lane.b32.xlu0 %v756_v33, %s2575_s21  ;;  %v284_v33 = vadd.f32 %v2854_v36, %v240_v13 }
  0xcc   : > { %v2866_v42 = vpop.permute.xlu1 %294 }
  0xcd   : > { %v2870_v43 = vpop.permute.xlu0 %280  ;;  %v299_v55 = vadd.f32 %v2866_v42, %v247_v20 }
  0xce   : > { %776 = vrot.lane.b32.xlu1 %v771_v37, %s2576_s29  ;;  %v285_v27 = vadd.f32 %v2870_v43, %v241_v9  ;;  %v259_v43 = vadd.f32 %v257_v21, %v226_v24  ;;  %v456_v21 = vmul.f32 %v455_v2, %v2772_v40  ;;  %v473_v2 = vstv %s3015_s11  ;;  %s3192_s11 = sld [smem:[#allocation2 + $0x94]] }
  0xcf   : > { %774 = vrot.lane.b32.xlu0 %v770_v39, %s2576_s29  ;;  %v444_v39 = vmul.f32 %v443_v18, %v2772_v40 }
  0xd0   : > { %v2882_v47 = vpop.permute.xlu1 %308 }
  0xd1   : > { %v2886_v48 = vpop.permute.xlu0 %306 }
  0xd2   : > { %790 = vrot.lane.b32.xlu1 %v785_v44, %s2576_s29  ;;  %v256_v44 = vmul.f32 %v255_v7, %v2717_v0  ;;  %v312_v18 = vadd.f32 %v2886_v48, %v252_v34  ;;  %v922_v48 = vmul.f32 %v2962_v29, %v920_v10  ;;  %v934_v34 = vstv %s2985_s26  ;;  %s3163_s26 = sld [smem:[#allocation2 + $0x72]] }
  0xd3   : > { %788 = vrot.lane.b32.xlu0 %v784_v45, %s2576_s29  ;;  %v263_v45 = vmul.f32 %v261_v25, %v2720_v1  ;;  %v232_v25 = vstv %s2976_s8  ;;  %s3152_s8 = sld [smem:[#allocation2 + $0x5e]] }
  0xd4   : > { %v2897_v52 = vpop.permute.xlu1 %322  ;;  %v258_v42 = vadd.f32 %v256_v44, %v226_v24  ;;  %v461_v24 = vstv %s2972_s7  ;;  %s3144_s7 = sld [smem:[#allocation2 + $0x57]] }
  0xd5   : > { %v2904_v54 = vpop.permute.xlu0 %320  ;;  %v462_v44 = vmul.f32 %v461_v24, %v2772_v40 }
  0xd6   : > { %804 = vrot.lane.b32.xlu1 %v799_v49, %s2576_s29 }
  0xd7   : > { %802 = vrot.lane.b32.xlu0 %v798_v50, %s2576_s29  ;;  %v229_v50 = vstv %s2931_s28  ;;  %s3105_s28 = sld [smem:[#allocation2 + $0xd]] }
  0xd8   : > { %v2919_v62 = vpop.permute.xlu1 %336  ;;  %v265_v3 = vadd.f32 %v263_v45, %v229_v50  ;;  %v467_v45 = vstv %s2995_s9  ;;  %s3172_s9 = sld [smem:[#allocation2 + $0x79]] }
  0xd9   : > { %v2926_v4 = vpop.permute.xlu0 %334 }
  0xda   : > { %818 = vrot.lane.b32.xlu1 %v813_v56, %s2576_s29  ;;  %v906_v56 = vstv %s2939_s30  ;;  %s3109_s30 = sld [smem:[#allocation2 + $0x21]] }
  0xdb   : > { %816 = vrot.lane.b32.xlu0 %v812_v59, %s2576_s29  ;;  %v298_v59 = vadd.f32 %v2852_v35, %v246_v19  ;;  %v908_v35 = vmul.f32 %v2962_v29, %v906_v56  ;;  %v907_v12 = vmul.f32 %v2966_v31, %v906_v56  ;;  %v469_v56 = vmul.f32 %v467_v45, %v2769_v38 }
  0xdc   : > { %v2942_v17 = vpop.permute.xlu1 %350 }
  0xdd   : > { %v2950_v22 = vpop.permute.xlu0 %348 }
  0xde   : > { %832 = vrot.lane.b32.xlu1 %v827_v8, %s2576_s29  ;;  %v267_v8 = vstv %s2948_s5  ;;  %s3122_s5 = sld [smem:[#allocation2 + $0x3c]] }
  0xdf   : > { %830 = vrot.lane.b32.xlu0 %v826_v11, %s2576_s29  ;;  %v313_v11 = vadd.f32 %v2882_v47, %v253_v23  ;;  %v264_v47 = vadd.f32 %v262_v5, %v229_v50  ;;  %v269_v23 = vmul.f32 %v267_v8, %v2720_v1 }
  0xe0   : > { %v365_v37 = vpop.permute.xlu1 %364 }
  0xe1   : > { %v369_v46 = vadd.f32 %v365_v37, %v285_v27  ;;  %v363_v49 = vpop.permute.xlu0 %362  ;;  %v463_v37 = vmul.f32 %v461_v24, %v2769_v38 }
  0xe2   : > { %v368_v36 = vadd.f32 %v363_v49, %v284_v33  ;;  %846 = vrot.lane.b32.xlu1 %v841_v26, %s2576_s29  ;;  %v327_v33 = vadd.f32 %v2897_v52, %v259_v43 }
  0xe3   : > { %844 = vrot.lane.b32.xlu0 %v840_v28, %s2576_s29  ;;  %v2987_v57 = vadd.f32 %v445_v32, %v369_v46  ;;  %v268_v28 = vmul.f32 %v267_v8, %v2717_v0  ;;  %v921_v32 = vmul.f32 %v2966_v31, %v920_v10  ;;  %v326_v0 = vadd.f32 %v2904_v54, %v258_v42 }
  0xe4   : > { %v379_v60 = vpop.permute.xlu1 %378  ;;  %v2991_v61 = vadd.f32 %v444_v39, %v368_v36  ;;  %v271_v46 = vadd.f32 %v269_v23, %v232_v25  ;;  %v936_v36 = vmul.f32 %v2962_v29, %v934_v34  ;;  %v935_v54 = vmul.f32 %v2966_v31, %v934_v34 }
  0xe5   : > { %v383_v6 = vadd.f32 %v379_v60, %v299_v55  ;;  %v377_v7 = vpop.permute.xlu0 %376  ;;  %v270_v49 = vadd.f32 %v268_v28, %v232_v25 }
  0xe6   : > { %v382_v9 = vadd.f32 %v377_v7, %v298_v59  ;;  %899 = vrot.lane.b32.xlu1 %v894_v51, %s2575_s21  ;;  %v948_v51 = vstv %s3002_s22  ;;  %v355_v7 = vadd.f32 %v2942_v17, %v271_v46  ;;  %s3183_s22 = sld [smem:[#allocation2 + $0x8d]] }
  0xe7   : > { %897 = vrot.lane.b32.xlu0 %v893_v53, %s2575_s21  ;;  %v3007_v13 = vadd.f32 %v451_v58, %v383_v6  ;;  %v341_v53 = vadd.f32 %v2919_v62, %v265_v3  ;;  %v340_v58 = vadd.f32 %v2926_v4, %v264_v47  ;;  %v950_v5 = vmul.f32 %v2962_v29, %v948_v51 }
  0xe8   : > { %v393_v19 = vpop.permute.xlu1 %392  ;;  %v3011_v20 = vadd.f32 %v450_v63, %v382_v9  ;;  %v468_v63 = vmul.f32 %v467_v45, %v2772_v40  ;;  %v949_v6 = vmul.f32 %v2966_v31, %v948_v51  ;;  %v962_v4 = vstv %s3026_s12  ;;  %s3210_s12 = sld [smem:[#allocation2 + $0xe]] }
  0xe9   : > { %v397_v26 = vadd.f32 %v393_v19, %v313_v11  ;;  %v391_v27 = vpop.permute.xlu0 %390  ;;  %v475_v9 = vmul.f32 %v473_v2, %v2769_v38  ;;  %v964_v19 = vmul.f32 %v2962_v29, %v962_v4  ;;  %v976_v38 = vstv %s3042_s18  ;;  %s3228_s18 = sld [smem:[#allocation2 + $0x29]] }
  0xea   : > { %v396_v30 = vadd.f32 %v391_v27, %v312_v18  ;;  %913 = vrot.lane.b32.xlu1 %v908_v35, %s2575_s21  ;;  %v354_v35 = vadd.f32 %v2950_v22, %v270_v49  ;;  %v978_v23 = vmul.f32 %v2962_v29, %v976_v38  ;;  %v977_v25 = vmul.f32 %v2966_v31, %v976_v38 }
  0xeb   : > { %911 = vrot.lane.b32.xlu0 %v907_v12, %s2575_s21  ;;  %v3028_v1 = vadd.f32 %v457_v15, %v397_v26  ;;  %v474_v12 = vmul.f32 %v473_v2, %v2772_v40  ;;  %v990_v26 = vstv %s3058_s19  ;;  %s2304_s19 = sld [smem:[#allocation2 + $0x44]] }
  0xec   : > { %v407_v39 = vpop.permute.xlu1 %406  ;;  %v3032_v41 = vadd.f32 %v456_v21, %v396_v30  ;;  %v963_v21 = vmul.f32 %v2966_v31, %v962_v4  ;;  %v992_v30 = vmul.f32 %v2962_v29, %v990_v26 }
  0xed   : > { %v411_v52 = vadd.f32 %v407_v39, %v327_v33  ;;  %v405_v43 = vpop.permute.xlu0 %404  ;;  %v1018_v39 = vstv %s2285_s15  ;;  %s2306_s15 = sld [smem:[#allocation2 + $0x7a]] }
  0xee   : > { %v410_v50 = vadd.f32 %v405_v43, %v326_v0  ;;  %927 = vrot.lane.b32.xlu1 %v922_v48, %s2575_s21  ;;  %v991_v48 = vmul.f32 %v2966_v31, %v990_v26  ;;  %v1020_v46 = vmul.f32 %v2962_v29, %v1018_v39  ;;  %v1032_v43 = vstv %s2286_s24  ;;  %s2307_s24 = sld [smem:[#allocation2 + $0x95]] }
  0xef   : > { %925 = vrot.lane.b32.xlu0 %v921_v32, %s2575_s21  ;;  %v3044_v55 = vadd.f32 %v463_v37, %v411_v52  ;;  %v1004_v32 = vstv %s2284_s23  ;;  %v1019_v52 = vmul.f32 %v2966_v31, %v1018_v39  ;;  %v1033_v51 = vmul.f32 %v2966_v31, %v1032_v43  ;;  %s2305_s23 = sld [smem:[#allocation2 + $0x5f]] }
  0xf0   : > { %v421_v59 = vpop.permute.xlu1 %420  ;;  %v3048_v60 = vadd.f32 %v462_v44, %v410_v50  ;;  %v1006_v37 = vmul.f32 %v2962_v29, %v1004_v32  ;;  %v1005_v0 = vmul.f32 %v2966_v31, %v1004_v32  ;;  %v667_v39 = vstv %s3144_s7  ;;  %s2323_s7 = sld [smem:[#allocation2 + $0x2c]] }
  0xf1   : > { %v425_v62 = vadd.f32 %v421_v59, %v341_v53  ;;  %v419_v42 = vpop.permute.xlu0 %418  ;;  %v1046_v53 = vstv %s2287_s25  ;;  %s2316_s25 = sld [smem:[#allocation2 + $0x10]] }
  0xf2   : > { %v424_v3 = vadd.f32 %v419_v42, %v340_v58  ;;  %941 = vrot.lane.b32.xlu1 %v936_v36, %s2575_s21  ;;  %v1034_v36 = vmul.f32 %v2962_v29, %v1032_v43  ;;  %v1048_v59 = vmul.f32 %v2962_v29, %v1046_v53  ;;  %v1047_v2 = vmul.f32 %v2966_v31, %v1046_v53 }
  0xf3   : > { %939 = vrot.lane.b32.xlu0 %v935_v54, %s2575_s21  ;;  %v3060_v8 = vadd.f32 %v469_v56, %v425_v62  ;;  %v649_v56 = vstv %s3097_s27  ;;  %v3132_v62 = vld [vmem:[%s2710_s10 + $0x19] sm:$0x3f]  ;;  %v1098_v42 = vstv %s3105_s28  ;;  %s2317_s27 = sld [smem:[#allocation2 + $0x2b]] }
  0xf4   : > { %v435_v10 = vpop.permute.xlu1 %434  ;;  %v3064_v11 = vadd.f32 %v468_v63, %v424_v3  ;;  %v3136_v3 = vld [vmem:[%s2710_s10 + $0x11] sm:$0xff]  ;;  %v650_v29 = vmul.f32 %v649_v56, %v2826_v16  ;;  %s2318_s28 = sld [smem:[#allocation2 + $0x46]] }
  0xf5   : > { %v439_v15 = vadd.f32 %v435_v10, %v355_v7  ;;  %v433_v18 = vpop.permute.xlu0 %432  ;;  %v1099_v10 = vmul.f32 %v3136_v3, %v1098_v42 }
  0xf6   : > { %v438_v17 = vadd.f32 %v433_v18, %v354_v35  ;;  %955 = vrot.lane.b32.xlu1 %v950_v5, %s2575_s21  ;;  %v651_v5 = vmul.f32 %v649_v56, %v2823_v14  ;;  %v1100_v35 = vmul.f32 %v3132_v62, %v1098_v42 }
  0xf7   : > { %953 = vrot.lane.b32.xlu0 %v949_v6, %s2575_s21  ;;  %v3072_v22 = vadd.f32 %v475_v9, %v439_v15 }
  0xf8   : > { %v487_v24 = vpop.permute.xlu1 %486  ;;  %v3074_v47 = vadd.f32 %v474_v12, %v438_v17 }
  0xf9   : > { %v485_v40 = vpop.permute.xlu0 %484  ;;  %v491_v63 = vadd.f32 %v487_v24, %v2987_v57  ;;  %v655_v57 = vstv %s3109_s30  ;;  %v661_v24 = vstv %s3122_s5  ;;  %s2319_s30 = sld [smem:[#allocation2 + $0x61]] }
  0xfa   : > { %969 = vrot.lane.b32.xlu1 %v964_v19, %s2575_s21  ;;  %v490_v6 = vadd.f32 %v485_v40, %v2991_v61  ;;  %v1112_v61 = vstv %s3117_s4  ;;  %v657_v18 = vmul.f32 %v655_v57, %v2823_v14  ;;  %v656_v38 = vmul.f32 %v655_v57, %v2826_v16  ;;  %s2320_s4 = sld [smem:[#allocation2 + $0x7c]] }
  0xfb   : > { %967 = vrot.lane.b32.xlu0 %v963_v21, %s2575_s21  ;;  %v1113_v26 = vmul.f32 %v3136_v3, %v1112_v61  ;;  %s2321_s5 = sld [smem:[#allocation2 + $0x97]] }
  0xfc   : > { %v501_v27 = vpop.permute.xlu1 %500 }
  0xfd   : > { %v3081_v28 = vpop.permute.xlu0 %498  ;;  %v505_v12 = vadd.f32 %v501_v27, %v3007_v13  ;;  %v1126_v27 = vstv %s3138_s6  ;;  %s2322_s6 = sld [smem:[#allocation2 + $0x11]] }
  0xfe   : > { %983 = vrot.lane.b32.xlu1 %v978_v23, %s2576_s29  ;;  %v504_v17 = vadd.f32 %v3081_v28, %v3011_v20  ;;  %v1127_v43 = vmul.f32 %v3136_v3, %v1126_v27 }
  0xff   : > { %981 = vrot.lane.b32.xlu0 %v977_v25, %s2576_s29  ;;  %v1114_v25 = vmul.f32 %v3132_v62, %v1112_v61 }
 0x100   : > { %v3087_v33 = vpop.permute.xlu1 %514 }
 0x101   : > { %v3089_v34 = vpop.permute.xlu0 %512  ;;  %v519_v20 = vadd.f32 %v3087_v33, %v3028_v1 }
 0x102   : > { %997 = vrot.lane.b32.xlu1 %v992_v30, %s2576_s29  ;;  %v663_v30 = vmul.f32 %v661_v24, %v2823_v14 }
 0x103   : > { %995 = vrot.lane.b32.xlu0 %v991_v48, %s2576_s29  ;;  %v518_v48 = vadd.f32 %v3089_v34, %v3032_v41  ;;  %v1140_v34 = vstv %s3152_s8  ;;  %s2324_s8 = sld [smem:[#allocation2 + $0x47]] }
 0x104   : > { %v3095_v44 = vpop.permute.xlu1 %528 }
 0x105   : > { %v3099_v45 = vpop.permute.xlu0 %526  ;;  %v533_v41 = vadd.f32 %v3095_v44, %v3044_v55 }
 0x106   : > { %1011 = vrot.lane.b32.xlu1 %v1006_v37, %s2576_s29  ;;  %v532_v53 = vadd.f32 %v3099_v45, %v3048_v60  ;;  %v1154_v60 = vstv %s3172_s9  ;;  %s2326_s9 = sld [smem:[#allocation2 + $0x7d]] }
 0x107   : > { %1009 = vrot.lane.b32.xlu0 %v1005_v0, %s2576_s29  ;;  %v662_v0 = vmul.f32 %v661_v24, %v2826_v16  ;;  %v1155_v61 = vmul.f32 %v3136_v3, %v1154_v60 }
 0x108   : > { %v3107_v49 = vpop.permute.xlu1 %542 }
 0x109   : > { %v3111_v50 = vpop.permute.xlu0 %540 }
 0x10a   : > { %1025 = vrot.lane.b32.xlu1 %v1020_v46, %s2576_s29  ;;  %v546_v57 = vadd.f32 %v3111_v50, %v3064_v11  ;;  %v1168_v11 = vstv %s3192_s11  ;;  %s2336_s11 = sld [smem:[#allocation2 + $0x13]] }
 0x10b   : > { %1023 = vrot.lane.b32.xlu0 %v1019_v52, %s2576_s29  ;;  %v1128_v52 = vmul.f32 %v3132_v62, %v1126_v27 }
 0x10c   : > { %v3119_v54 = vpop.permute.xlu1 %556 }
 0x10d   : > { %v3124_v58 = vpop.permute.xlu0 %554 }
 0x10e   : > { %1039 = vrot.lane.b32.xlu1 %v1034_v36, %s2576_s29 }
 0x10f   : > { %1037 = vrot.lane.b32.xlu0 %v1033_v51, %s2576_s29  ;;  %v669_v51 = vmul.f32 %v667_v39, %v2823_v14 }
 0x110   : > { %v571_v7 = vpop.permute.xlu1 %570 }
 0x111   : > { %v575_v4 = vadd.f32 %v571_v7, %v491_v63  ;;  %v569_v31 = vpop.permute.xlu0 %568  ;;  %v668_v63 = vmul.f32 %v667_v39, %v2826_v16  ;;  %v547_v7 = vadd.f32 %v3107_v49, %v3060_v8 }
 0x112   : > { %v574_v9 = vadd.f32 %v569_v31, %v490_v6  ;;  %1053 = vrot.lane.b32.xlu1 %v1048_v59, %s2576_s29  ;;  %v1141_v6 = vmul.f32 %v3136_v3, %v1140_v34 }
 0x113   : > { %1051 = vrot.lane.b32.xlu0 %v1047_v2, %s2576_s29  ;;  %v3154_v15 = vadd.f32 %v651_v5, %v575_v4  ;;  %v673_v2 = vstv %s3163_s26  ;;  %v1142_v5 = vmul.f32 %v3132_v62, %v1140_v34  ;;  %s2325_s26 = sld [smem:[#allocation2 + $0x62]] }
 0x114   : > { %v585_v19 = vpop.permute.xlu1 %584  ;;  %v3159_v21 = vadd.f32 %v650_v29, %v574_v9  ;;  %v675_v29 = vmul.f32 %v673_v2, %v2823_v14  ;;  %v674_v9 = vmul.f32 %v673_v2, %v2826_v16 }
 0x115   : > { %v589_v13 = vadd.f32 %v585_v19, %v505_v12  ;;  %v583_v40 = vpop.permute.xlu0 %582  ;;  %v1156_v12 = vmul.f32 %v3132_v62, %v1154_v60  ;;  %v560_v19 = vadd.f32 %v3124_v58, %v3074_v47 }
 0x116   : > { %v588_v23 = vadd.f32 %v583_v40, %v504_v17  ;;  %1105 = vrot.lane.b32.xlu1 %v1100_v35, %s2575_s21  ;;  %v679_v35 = vstv %s3183_s22  ;;  %s2327_s22 = sld [smem:[#allocation2 + $0x98]] }
 0x117   : > { %1103 = vrot.lane.b32.xlu0 %v1099_v10, %s2575_s21  ;;  %v3174_v28 = vadd.f32 %v657_v18, %v589_v13  ;;  %v561_v18 = vadd.f32 %v3119_v54, %v3072_v22  ;;  %v681_v17 = vmul.f32 %v679_v35, %v2823_v14  ;;  %v680_v13 = vmul.f32 %v679_v35, %v2826_v16  ;;  %v3302_v35 = vld [vmem:[%s2710_s10 + $0x12] sm:$0xff] }
 0x118   : > { %v599_v32 = vpop.permute.xlu1 %598  ;;  %v3179_v37 = vadd.f32 %v656_v38, %v588_v23  ;;  %v1170_v23 = vmul.f32 %v3132_v62, %v1168_v11  ;;  %v1169_v14 = vmul.f32 %v3136_v3, %v1168_v11  ;;  %4292 = vst [vmem:[#allocation13_spill] sm:$0xff] %v3302_v35 }
 0x119   : > { %v603_v1 = vadd.f32 %v599_v32, %v519_v20  ;;  %v597_v33 = vpop.permute.xlu0 %596 }
 0x11a   : > { %v602_v46 = vadd.f32 %v597_v33, %v518_v48  ;;  %1119 = vrot.lane.b32.xlu1 %v1114_v25, %s2575_s21  ;;  %v1182_v25 = vstv %s3210_s12  ;;  %s2337_s12 = sld [smem:[#allocation2 + $0x2e]] }
 0x11b   : > { %1117 = vrot.lane.b32.xlu0 %v1113_v26, %s2575_s21  ;;  %v3194_v36 = vadd.f32 %v663_v30, %v603_v1  ;;  %v1184_v20 = vmul.f32 %v3132_v62, %v1182_v25  ;;  %v1183_v27 = vmul.f32 %v3136_v3, %v1182_v25  ;;  %v1196_v30 = vstv %s3228_s18  ;;  %s2338_s18 = sld [smem:[#allocation2 + $0x49]] }
 0x11c   : > { %v613_v56 = vpop.permute.xlu1 %612  ;;  %v3199_v59 = vadd.f32 %v662_v0, %v602_v46  ;;  %v1198_v0 = vmul.f32 %v3132_v62, %v1196_v30  ;;  %v1197_v39 = vmul.f32 %v3136_v3, %v1196_v30  ;;  %v1210_v1 = vstv %s2304_s19  ;;  %s2339_s19 = sld [smem:[#allocation2 + $0x64]] }
 0x11d   : > { %v617_v55 = vadd.f32 %v613_v56, %v533_v41  ;;  %v611_v44 = vpop.permute.xlu0 %610  ;;  %v1224_v41 = vstv %s2305_s23  ;;  %s2340_s23 = sld [smem:[#allocation2 + $0x7f]] }
 0x11e   : > { %v616_v42 = vadd.f32 %v611_v44, %v532_v53  ;;  %1133 = vrot.lane.b32.xlu1 %v1128_v52, %s2575_s21  ;;  %v1212_v52 = vmul.f32 %v3132_v62, %v1210_v1  ;;  %v1226_v53 = vmul.f32 %v3132_v62, %v1224_v41  ;;  %v1225_v56 = vmul.f32 %v3136_v3, %v1224_v41 }
 0x11f   : > { %1131 = vrot.lane.b32.xlu0 %v1127_v43, %s2575_s21  ;;  %v3212_v45 = vadd.f32 %v669_v51, %v617_v55  ;;  %v1211_v43 = vmul.f32 %v3136_v3, %v1210_v1 }
 0x120   : > { %v627_v4 = vpop.permute.xlu1 %626  ;;  %v3217_v31 = vadd.f32 %v668_v63, %v616_v42  ;;  %v1238_v63 = vstv %s2306_s15  ;;  %s2341_s15 = sld [smem:[#allocation2 + $0x9a]] }
 0x121   : > { %v631_v8 = vadd.f32 %v627_v4, %v547_v7  ;;  %v625_v49 = vpop.permute.xlu0 %624  ;;  %v1240_v44 = vmul.f32 %v3132_v62, %v1238_v63  ;;  %v1239_v42 = vmul.f32 %v3136_v3, %v1238_v63  ;;  %v1304_v4 = vstv %s2316_s25  ;;  %s3440_s25 = sld [smem:[#allocation2 + $0x9]] }
 0x122   : > { %v630_v10 = vadd.f32 %v625_v49, %v546_v57  ;;  %1147 = vrot.lane.b32.xlu1 %v1142_v5, %s2575_s21  ;;  %v1252_v5 = vstv %s2307_s24  ;;  %v3297_v57 = vld [vmem:[%s2710_s10 + $0x1a] sm:$0x3f]  ;;  %v1388_v63 = vstv %s2322_s6  ;;  %s2342_s24 = sld [smem:[#allocation2 + $0x14]] }
 0x123   : > { %1145 = vrot.lane.b32.xlu0 %v1141_v6, %s2575_s21  ;;  %v3230_v50 = vadd.f32 %v675_v29, %v631_v8  ;;  %v1254_v60 = vmul.f32 %v3132_v62, %v1252_v5  ;;  %v1253_v29 = vmul.f32 %v3136_v3, %v1252_v5  ;;  %v1306_v49 = vmul.f32 %v3297_v57, %v1304_v4  ;;  %s3464_s6 = sld [smem:[#allocation2 + $0x75]] }
 0x124   : > { %v641_v38 = vpop.permute.xlu1 %640  ;;  %v3235_v24 = vadd.f32 %v674_v9, %v630_v10  ;;  %v1305_v10 = vmul.f32 %v3302_v35, %v1304_v4  ;;  %v1390_v5 = vmul.f32 %v3297_v57, %v1388_v63 }
 0x125   : > { %v645_v40 = vadd.f32 %v641_v38, %v561_v18  ;;  %v639_v22 = vpop.permute.xlu0 %638 }
 0x126   : > { %4290 = vst [vmem:[#allocation11_spill] sm:$0xff] %v3235_v24  ;;  %v644_v54 = vadd.f32 %v639_v22, %v560_v19  ;;  %1161 = vrot.lane.b32.xlu1 %v1156_v12, %s2575_s21  ;;  %v1318_v12 = vstv %s2317_s27  ;;  %v1332_v19 = vstv %s2318_s28  ;;  %s3446_s27 = sld [smem:[#allocation2 + $0x2f]] }
 0x127   : > { %1159 = vrot.lane.b32.xlu0 %v1155_v61, %s2575_s21  ;;  %v3243_v47 = vadd.f32 %v681_v17, %v645_v40  ;;  %v1320_v11 = vmul.f32 %v3297_v57, %v1318_v12  ;;  %v1319_v17 = vmul.f32 %v3302_v35, %v1318_v12  ;;  %v1334_v40 = vmul.f32 %v3297_v57, %v1332_v19  ;;  %s3448_s28 = sld [smem:[#allocation2 + $0x24]] }
 0x128   : > { %v3245_v58 = vpop.permute.xlu1 %692  ;;  %v3247_v26 = vadd.f32 %v680_v13, %v644_v54  ;;  %v1333_v22 = vmul.f32 %v3302_v35, %v1332_v19  ;;  %v1346_v54 = vstv %s2319_s30  ;;  %s3452_s30 = sld [smem:[#allocation2 + $0x3f]] }
 0x129   : > { %v3249_v16 = vpop.permute.xlu0 %690  ;;  %v1348_v25 = vmul.f32 %v3297_v57, %v1346_v54 }
 0x12a   : > { %1175 = vrot.lane.b32.xlu1 %v1170_v23, %s2575_s21 }
 0x12b   : > { %1173 = vrot.lane.b32.xlu0 %v1169_v14, %s2575_s21 }
 0x12c   : > { %v3256_v48 = vpop.permute.xlu1 %706 }
 0x12d   : > { %v3258_v32 = vpop.permute.xlu0 %704 }
 0x12e   : > { %1189 = vrot.lane.b32.xlu1 %v1184_v20, %s2576_s29  ;;  %v1347_v20 = vmul.f32 %v3302_v35, %v1346_v54  ;;  %v1430_v54 = vstv %s2325_s26  ;;  %s3479_s26 = sld [smem:[#allocation2 + $0x65]] }
 0x12f   : > { %1187 = vrot.lane.b32.xlu0 %v1183_v27, %s2576_s29  ;;  %v1360_v27 = vstv %s2320_s4  ;;  %s3456_s4 = sld [smem:[#allocation2 + $0x5a]] }
 0x130   : > { %v3264_v33 = vpop.permute.xlu1 %720  ;;  %v1361_v1 = vmul.f32 %v3302_v35, %v1360_v27 }
 0x131   : > { %v3266_v46 = vpop.permute.xlu0 %718 }
 0x132   : > { %1203 = vrot.lane.b32.xlu1 %v1198_v0, %s2576_s29 }
 0x133   : > { %1201 = vrot.lane.b32.xlu0 %v1197_v39, %s2576_s29  ;;  %v1362_v39 = vmul.f32 %v3297_v57, %v1360_v27  ;;  %v1432_v27 = vmul.f32 %v3297_v57, %v1430_v54 }
 0x134   : > { %v3272_v34 = vpop.permute.xlu1 %734 }
 0x135   : > { %v3274_v51 = vpop.permute.xlu0 %732 }
 0x136   : > { %1217 = vrot.lane.b32.xlu1 %v1212_v52, %s2576_s29  ;;  %v1374_v52 = vstv %s2321_s5  ;;  %s3462_s5 = sld [smem:[#allocation2 + $0x4a]] }
 0x137   : > { %1215 = vrot.lane.b32.xlu0 %v1211_v43, %s2576_s29 }
 0x138   : > { %v3280_v2 = vpop.permute.xlu1 %748 }
 0x139   : > { %v3282_v55 = vpop.permute.xlu0 %746 }
 0x13a   : > { %4291 = vst [vmem:[#allocation12_spill] sm:$0xff] %v3282_v55  ;;  %1231 = vrot.lane.b32.xlu1 %v1226_v53, %s2576_s29  ;;  %v1376_v53 = vmul.f32 %v3297_v57, %v1374_v52 }
 0x13b   : > { %1229 = vrot.lane.b32.xlu0 %v1225_v56, %s2576_s29  ;;  %v1375_v56 = vmul.f32 %v3302_v35, %v1374_v52 }
 0x13c   : > { %v3288_v6 = vpop.permute.xlu1 %762 }
 0x13d   : > { %v3290_v7 = vpop.permute.xlu0 %760 }
 0x13e   : > { %1245 = vrot.lane.b32.xlu1 %v1240_v44, %s2576_s29 }
 0x13f   : > { %1243 = vrot.lane.b32.xlu0 %v1239_v42, %s2576_s29 }
 0x140   : > { %v3299_v9 = vpop.permute.xlu1 %776 }
 0x141   : > { %v3304_v8 = vpop.permute.xlu0 %774 }
 0x142   : > { %1259 = vrot.lane.b32.xlu1 %v1254_v60, %s2576_s29  ;;  %v1389_v60 = vmul.f32 %v3302_v35, %v1388_v63 }
 0x143   : > { %1257 = vrot.lane.b32.xlu0 %v1253_v29, %s2576_s29  ;;  %v1402_v29 = vstv %s2323_s7  ;;  %s3468_s7 = sld [smem:[#allocation2 + $0x90]] }
 0x144   : > { %v3310_v61 = vpop.permute.xlu1 %790  ;;  %v1403_v12 = vmul.f32 %v3302_v35, %v1402_v29 }
 0x145   : > { %v3312_v18 = vpop.permute.xlu0 %788 }
 0x146   : > { %1311 = vrot.lane.b32.xlu1 %v1306_v49, %s2575_s21 }
 0x147   : > { %1309 = vrot.lane.b32.xlu0 %v1305_v10, %s2575_s21  ;;  %v1404_v10 = vmul.f32 %v3297_v57, %v1402_v29 }
 0x148   : > { %v3318_v38 = vpop.permute.xlu1 %804 }
 0x149   : > { %v3320_v13 = vpop.permute.xlu0 %802  ;;  %v886_v24 = vstv %s3468_s7  ;;  %s3653_s7 = sld [smem:[#allocation2 + $0x9d]] }
 0x14a   : > { %1325 = vrot.lane.b32.xlu1 %v1320_v11, %s2575_s21  ;;  %v1416_v11 = vstv %s2324_s8  ;;  %s3472_s8 = sld [smem:[#allocation2 + $0xc]] }
 0x14b   : > { %1323 = vrot.lane.b32.xlu0 %v1319_v17, %s2575_s21 }
 0x14c   : > { %v3326_v23 = vpop.permute.xlu1 %818 }
 0x14d   : > { %v3328_v14 = vpop.permute.xlu0 %816 }
 0x14e   : > { %1339 = vrot.lane.b32.xlu1 %v1334_v40, %s2575_s21  ;;  %v1418_v40 = vmul.f32 %v3297_v57, %v1416_v11 }
 0x14f   : > { %1337 = vrot.lane.b32.xlu0 %v1333_v22, %s2575_s21  ;;  %v1417_v22 = vmul.f32 %v3302_v35, %v1416_v11  ;;  %v3399_v11 = vld [vmem:[%s2710_s10 + $0x28] sm:$0x3f] }
 0x150   : > { %v3334_v30 = vpop.permute.xlu1 %832  ;;  %4304 = vst [vmem:[#allocation25_spill] sm:$0xff] %v3399_v11 }
 0x151   : > { %4293 = vst [vmem:[#allocation14_spill] sm:$0xff] %v3334_v30  ;;  %v3336_v0 = vpop.permute.xlu0 %830 }
 0x152   : > { %4294 = vst [vmem:[#allocation15_spill] sm:$0xff] %v3336_v0  ;;  %1353 = vrot.lane.b32.xlu1 %v1348_v25, %s2575_s21 }
 0x153   : > { %1351 = vrot.lane.b32.xlu0 %v1347_v20, %s2575_s21 }
 0x154   : > { %v3342_v43 = vpop.permute.xlu1 %846 }
 0x155   : > { %v3344_v41 = vpop.permute.xlu0 %844 }
 0x156   : > { %1367 = vrot.lane.b32.xlu1 %v1362_v39, %s2575_s21  ;;  %v1431_v39 = vmul.f32 %v3302_v35, %v1430_v54  ;;  %v3404_v54 = vld [vmem:[%s2710_s10 + $0x20] sm:$0xff] }
 0x157   : > { %1365 = vrot.lane.b32.xlu0 %v1361_v1, %s2575_s21  ;;  %v1444_v1 = vstv %s2326_s9  ;;  %4305 = vst [vmem:[#allocation26_spill] sm:$0xff] %v3404_v54  ;;  %s3481_s9 = sld [smem:[#allocation2 + $0x27]] }
 0x158   : > { %v3350_v44 = vpop.permute.xlu1 %899  ;;  %v1445_v63 = vmul.f32 %v3302_v35, %v1444_v1 }
 0x159   : > { %v3352_v42 = vpop.permute.xlu0 %897 }
 0x15a   : > { %1381 = vrot.lane.b32.xlu1 %v1376_v53, %s2575_s21 }
 0x15b   : > { %1379 = vrot.lane.b32.xlu0 %v1375_v56, %s2575_s21  ;;  %v1446_v56 = vmul.f32 %v3297_v57, %v1444_v1 }
 0x15c   : > { %v3358_v4 = vpop.permute.xlu1 %913 }
 0x15d   : > { %4295 = vst [vmem:[#allocation16_spill] sm:$0xff] %v3358_v4  ;;  %v3360_v49 = vpop.permute.xlu0 %911  ;;  %v1062_v4 = vstv %s3472_s8  ;;  %s3669_s8 = sld [smem:[#allocation2 + $0x17]] }
 0x15e   : > { %4296 = vst [vmem:[#allocation17_spill] sm:$0xff] %v3360_v49  ;;  %1395 = vrot.lane.b32.xlu1 %v1390_v5, %s2576_s29  ;;  %v1458_v5 = vstv %s2327_s22  ;;  %s3487_s22 = sld [smem:[#allocation2 + $0x42]] }
 0x15f   : > { %1393 = vrot.lane.b32.xlu0 %v1389_v60, %s2576_s29 }
 0x160   : > { %v3366_v17 = vpop.permute.xlu1 %927 }
 0x161   : > { %4297 = vst [vmem:[#allocation18_spill] sm:$0xff] %v3366_v17  ;;  %v3368_v19 = vpop.permute.xlu0 %925  ;;  %v1637_v17 = vstv %s3479_s26  ;;  %s3795_s26 = sld [smem:[#allocation2 + $0x32]] }
 0x162   : > { %4298 = vst [vmem:[#allocation19_spill] sm:$0xff] %v3368_v19  ;;  %1409 = vrot.lane.b32.xlu1 %v1404_v10, %s2576_s29  ;;  %v1460_v10 = vmul.f32 %v3297_v57, %v1458_v5 }
 0x163   : > { %1407 = vrot.lane.b32.xlu0 %v1403_v12, %s2576_s29  ;;  %v1459_v12 = vmul.f32 %v3302_v35, %v1458_v5 }
 0x164   : > { %v3374_v25 = vpop.permute.xlu1 %941 }
 0x165   : > { %4299 = vst [vmem:[#allocation20_spill] sm:$0xff] %v3374_v25  ;;  %v3376_v20 = vpop.permute.xlu0 %939  ;;  %v1553_v25 = vstv %s2339_s19  ;;  %s3506_s19 = sld [smem:[#allocation2 + $0x93]] }
 0x166   : > { %4300 = vst [vmem:[#allocation21_spill] sm:$0xff] %v3376_v20  ;;  %1423 = vrot.lane.b32.xlu1 %v1418_v40, %s2576_s29  ;;  %v1511_v40 = vstv %s2336_s11  ;;  %s3491_s11 = sld [smem:[#allocation2 + $0x5d]] }
 0x167   : > { %1421 = vrot.lane.b32.xlu0 %v1417_v22, %s2576_s29  ;;  %v1512_v1 = vmul.f32 %v3404_v54, %v1511_v40 }
 0x168   : > { %v3382_v52 = vpop.permute.xlu1 %955 }
 0x169   : > { %4301 = vst [vmem:[#allocation22_spill] sm:$0xff] %v3382_v52  ;;  %v3384_v53 = vpop.permute.xlu0 %953  ;;  %v1539_v52 = vstv %s2338_s18  ;;  %s3500_s18 = sld [smem:[#allocation2 + $0x78]] }
 0x16a   : > { %4302 = vst [vmem:[#allocation23_spill] sm:$0xff] %v3384_v53  ;;  %1437 = vrot.lane.b32.xlu1 %v1432_v27, %s2576_s29 }
 0x16b   : > { %1435 = vrot.lane.b32.xlu0 %v1431_v39, %s2576_s29  ;;  %v1513_v39 = vmul.f32 %v3399_v11, %v1511_v40  ;;  %v1541_v40 = vmul.f32 %v3399_v11, %v1539_v52 }
 0x16c   : > { %v3390_v60 = vpop.permute.xlu1 %969 }
 0x16d   : > { %v3392_v29 = vpop.permute.xlu0 %967 }
 0x16e   : > { %4303 = vst [vmem:[#allocation24_spill] sm:$0xff] %v3392_v29  ;;  %1451 = vrot.lane.b32.xlu1 %v1446_v56, %s2576_s29  ;;  %v1525_v56 = vstv %s2337_s12  ;;  %s3496_s12 = sld [smem:[#allocation2 + $0x80]]  ;;  %v1074_v29 = vstv %s3487_s22 }
 0x16f   : > { %1449 = vrot.lane.b32.xlu0 %v1445_v63, %s2576_s29  ;;  %v1527_v53 = vmul.f32 %v3399_v11, %v1525_v56  ;;  %s3827_s22 = sld [smem:[#allocation2 + $0x4d]] }
 0x170   : > { %v3401_v22 = vpop.permute.xlu1 %983 }
 0x171   : > { %v3406_v27 = vpop.permute.xlu0 %981 }
 0x172   : > { %4306 = vst [vmem:[#allocation27_spill] sm:$0xff] %v3406_v27  ;;  %1465 = vrot.lane.b32.xlu1 %v1460_v10, %s2576_s29  ;;  %v1526_v10 = vmul.f32 %v3404_v54, %v1525_v56  ;;  %v1555_v56 = vmul.f32 %v3399_v11, %v1553_v25  ;;  %v1068_v27 = vstv %s3481_s9  ;;  %s3812_s9 = sld [smem:[#allocation2 + $0x7b]] }
 0x173   : > { %1463 = vrot.lane.b32.xlu0 %v1459_v12, %s2576_s29 }
 0x174   : > { %v3412_v63 = vpop.permute.xlu1 %997 }
 0x175   : > { %4307 = vst [vmem:[#allocation28_spill] sm:$0xff] %v3412_v63  ;;  %v3414_v5 = vpop.permute.xlu0 %995 }
 0x176   : > { %4308 = vst [vmem:[#allocation29_spill] sm:$0xff] %v3414_v5  ;;  %1518 = vrot.lane.b32.xlu1 %v1513_v39, %s2575_s21  ;;  %v1540_v39 = vmul.f32 %v3404_v54, %v1539_v52  ;;  %v2469_v5 = vld [vmem:[%s2710_s10 + $0x10] sm:$0xff] }
 0x177   : > { %1516 = vrot.lane.b32.xlu0 %v1512_v1, %s2575_s21 }
 0x178   : > { %v3420_v20 = vpop.permute.xlu1 %1011 }
 0x179   : > { %4309 = vst [vmem:[#allocation30_spill] sm:$0xff] %v3420_v20  ;;  %v3422_v12 = vpop.permute.xlu0 %1009 }
 0x17a   : > { %4310 = vst [vmem:[#allocation31_spill] sm:$0xff] %v3422_v12  ;;  %1532 = vrot.lane.b32.xlu1 %v1527_v53, %s2575_s21  ;;  %v1554_v53 = vmul.f32 %v3404_v54, %v1553_v25  ;;  %v1567_v12 = vstv %s2340_s23  ;;  %s3511_s23 = sld [smem:[#allocation2 + $0x9b]] }
 0x17b   : > { %1530 = vrot.lane.b32.xlu0 %v1526_v10, %s2575_s21  ;;  %v1569_v52 = vmul.f32 %v3399_v11, %v1567_v12 }
 0x17c   : > { %v3428_v19 = vpop.permute.xlu1 %1025 }
 0x17d   : > { %4311 = vst [vmem:[#allocation32_spill] sm:$0xff] %v3428_v19  ;;  %v3430_v1 = vpop.permute.xlu0 %1023 }
 0x17e   : > { %4312 = vst [vmem:[#allocation33_spill] sm:$0xff] %v3430_v1  ;;  %1546 = vrot.lane.b32.xlu1 %v1541_v40, %s2575_s21  ;;  %v1568_v40 = vmul.f32 %v3404_v54, %v1567_v12  ;;  %v1581_v1 = vstv %s2341_s15  ;;  %s3517_s15 = sld [smem:[#allocation2 + $0xf]] }
 0x17f   : > { %1544 = vrot.lane.b32.xlu0 %v1540_v39, %s2575_s21  ;;  %v1582_v12 = vmul.f32 %v3404_v54, %v1581_v1 }
 0x180   : > { %v3436_v20 = vpop.permute.xlu1 %1039 }
 0x181   : > { %4313 = vst [vmem:[#allocation34_spill] sm:$0xff] %v3436_v20  ;;  %v3438_v10 = vpop.permute.xlu0 %1037 }
 0x182   : > { %4314 = vst [vmem:[#allocation35_spill] sm:$0xff] %v3438_v10  ;;  %1560 = vrot.lane.b32.xlu1 %v1555_v56, %s2575_s21  ;;  %v1583_v56 = vmul.f32 %v3399_v11, %v1581_v1 }
 0x183   : > { %1558 = vrot.lane.b32.xlu0 %v1554_v53, %s2575_s21  ;;  %v1595_v53 = vstv %s2342_s24  ;;  %s3530_s24 = sld [smem:[#allocation2 + $0x16]] }
 0x184   : > { %v3450_v25 = vpop.permute.xlu1 %1053  ;;  %v1596_v1 = vmul.f32 %v3404_v54, %v1595_v53 }
 0x185   : > { %4315 = vst [vmem:[#allocation36_spill] sm:$0xff] %v3450_v25  ;;  %v3454_v39 = vpop.permute.xlu0 %1051 }
 0x186   : > { %4316 = vst [vmem:[#allocation37_spill] sm:$0xff] %v3454_v39  ;;  %1574 = vrot.lane.b32.xlu1 %v1569_v52, %s2575_s21  ;;  %v1597_v52 = vmul.f32 %v3399_v11, %v1595_v53  ;;  %v1623_v53 = vstv %s3462_s5  ;;  %v880_v39 = vstv %s3464_s6  ;;  %s3613_s5 = sld [smem:[#allocation2 + $0x82]] }
 0x187   : > { %1572 = vrot.lane.b32.xlu0 %v1568_v40, %s2575_s21  ;;  %v1609_v40 = vstv %s3446_s27  ;;  %s3549_s27 = sld [smem:[#allocation2 + $0x31]] }
 0x188   : > { %v3466_v10 = vpop.permute.xlu1 %1105  ;;  %s3631_s6 = sld [smem:[#allocation2 + $0x60]] }
 0x189   : > { %4317 = vst [vmem:[#allocation38_spill] sm:$0xff] %v3466_v10  ;;  %v3470_v20 = vpop.permute.xlu0 %1103  ;;  %v874_v10 = vstv %s3456_s4  ;;  %s3590_s4 = sld [smem:[#allocation2 + $0x67]] }
 0x18a   : > { %4318 = vst [vmem:[#allocation39_spill] sm:$0xff] %v3470_v20  ;;  %1588 = vrot.lane.b32.xlu1 %v1583_v56, %s2575_s21  ;;  %v1611_v56 = vmul.f32 %v3399_v11, %v1609_v40 }
 0x18b   : > { %1586 = vrot.lane.b32.xlu0 %v1582_v12, %s2575_s21  ;;  %v1610_v12 = vmul.f32 %v3404_v54, %v1609_v40  ;;  %v1625_v40 = vmul.f32 %v3399_v11, %v1623_v53 }
 0x18c   : > { %v3483_v19 = vpop.permute.xlu1 %1119 }
 0x18d   : > { %4319 = vst [vmem:[#allocation40_spill] sm:$0xff] %v3483_v19  ;;  %v3485_v20 = vpop.permute.xlu0 %1117 }
 0x18e   : > { %4320 = vst [vmem:[#allocation41_spill] sm:$0xff] %v3485_v20  ;;  %1602 = vrot.lane.b32.xlu1 %v1597_v52, %s2576_s29  ;;  %v856_v52 = vstv %s3440_s25  ;;  %v862_v20 = vstv %s3448_s28  ;;  %s3541_s25 = sld [smem:[#allocation2 + $0x2a]] }
 0x18f   : > { %1600 = vrot.lane.b32.xlu0 %v1596_v1, %s2576_s29  ;;  %v868_v1 = vstv %s3452_s30  ;;  %s3558_s28 = sld [smem:[#allocation2 + $0x45]] }
 0x190   : > { %v3498_v19 = vpop.permute.xlu1 %1133  ;;  %v3536_v55 = vmul.f32 %v2469_v5, %v868_v1  ;;  %s3569_s30 = sld [smem:[#allocation2 + $0x4c]] }
 0x191   : > { %4321 = vst [vmem:[#allocation42_spill] sm:$0xff] %v3498_v19  ;;  %v3504_v0 = vpop.permute.xlu0 %1131  ;;  %v1624_v19 = vmul.f32 %v3404_v54, %v1623_v53 }
 0x192   : > { %4322 = vst [vmem:[#allocation43_spill] sm:$0xff] %v3504_v0  ;;  %1616 = vrot.lane.b32.xlu1 %v1611_v56, %s2576_s29  ;;  %v2468_v0 = vld [vmem:[%s2710_s10 + $0x18] sm:$0x3f]  ;;  %v3523_v56 = vmul.f32 %v2469_v5, %v856_v52  ;;  %4325 = vst [vmem:[#allocation46_spill] sm:$0xff] %v3536_v55  ;;  %v1651_v55 = vstv %s3496_s12  ;;  %s3859_s12 = sld [smem:[#allocation2 + $0x96]] }
 0x193   : > { %1614 = vrot.lane.b32.xlu0 %v1610_v12, %s2576_s29  ;;  %v3520_v30 = vmul.f32 %v2468_v0, %v856_v52  ;;  %v3525_v63 = vmul.f32 %v2468_v0, %v862_v20  ;;  %v3532_v12 = vmul.f32 %v2469_v5, %v862_v20  ;;  %v3534_v53 = vmul.f32 %v2468_v0, %v868_v1 }
 0x194   : > { %v3528_v49 = vpop.permute.xlu1 %1147  ;;  %v3543_v52 = vmul.f32 %v2468_v0, %v874_v10  ;;  %v1639_v20 = vmul.f32 %v3399_v11, %v1637_v17  ;;  %v3553_v1 = vmul.f32 %v2468_v0, %v880_v39 }
 0x195   : > { %4323 = vst [vmem:[#allocation44_spill] sm:$0xff] %v3528_v49  ;;  %4324 = vst [vmem:[#allocation45_spill] sm:$0xff] %v3534_v53  ;;  %v3539_v25 = vpop.permute.xlu0 %1145  ;;  %v3551_v49 = vmul.f32 %v2469_v5, %v874_v10  ;;  %v3564_v53 = vmul.f32 %v2469_v5, %v886_v24 }
 0x196   : > { %4326 = vst [vmem:[#allocation47_spill] sm:$0xff] %v3539_v25  ;;  %4327 = vst [vmem:[#allocation48_spill] sm:$0xff] %v3543_v52  ;;  %1630 = vrot.lane.b32.xlu1 %v1625_v40, %s2576_s29  ;;  %v1638_v25 = vmul.f32 %v3404_v54, %v1637_v17  ;;  %v3560_v52 = vmul.f32 %v2469_v5, %v880_v39  ;;  %v3562_v40 = vmul.f32 %v2468_v0, %v886_v24 }
 0x197   : > { %4328 = vst [vmem:[#allocation49_spill] sm:$0xff] %v3551_v49  ;;  %4329 = vst [vmem:[#allocation50_spill] sm:$0xff] %v3553_v1  ;;  %1628 = vrot.lane.b32.xlu0 %v1624_v19, %s2576_s29  ;;  %v3572_v19 = vmul.f32 %v3132_v62, %v1062_v4  ;;  %v3575_v17 = vmul.f32 %v3136_v3, %v1062_v4  ;;  %v3578_v1 = vmul.f32 %v3132_v62, %v1068_v27 }
 0x198   : > { %4330 = vst [vmem:[#allocation51_spill] sm:$0xff] %v3560_v52  ;;  %v3567_v10 = vpop.permute.xlu1 %1161  ;;  %v1080_v39 = vstv %s3491_s11  ;;  %v3584_v24 = vmul.f32 %v3136_v3, %v1068_v27  ;;  %v1086_v5 = vstv %s3500_s18  ;;  %v1653_v52 = vmul.f32 %v3399_v11, %v1651_v55  ;;  %s3853_s11 = sld [smem:[#allocation2 + $0x68]] }
 0x199   : > { %4331 = vst [vmem:[#allocation52_spill] sm:$0xff] %v3567_v10  ;;  %4332 = vst [vmem:[#allocation53_spill] sm:$0xff] %v3575_v17  ;;  %v3581_v0 = vpop.permute.xlu0 %1159  ;;  %v1092_v10 = vstv %s3506_s19  ;;  %v3593_v4 = vmul.f32 %v3132_v62, %v1074_v29  ;;  %v1652_v27 = vmul.f32 %v3404_v54, %v1651_v55  ;;  %v1717_v49 = vstv %s3530_s24  ;;  %s3880_s18 = sld [smem:[#allocation2 + $0x83]] }
 0x19a   : > { %4333 = vst [vmem:[#allocation54_spill] sm:$0xff] %v3578_v1  ;;  %4334 = vst [vmem:[#allocation55_spill] sm:$0xff] %v3581_v0  ;;  %1644 = vrot.lane.b32.xlu1 %v1639_v20, %s2576_s29  ;;  %v3596_v1 = vmul.f32 %v3136_v3, %v1074_v29  ;;  %v1665_v0 = vstv %s3511_s23  ;;  %v3602_v20 = vmul.f32 %v3132_v62, %v1080_v39  ;;  %v1268_v29 = vstv %s3517_s15  ;;  %s3901_s19 = sld [smem:[#allocation2 + $0x9e]] }
 0x19b   : > { %4335 = vst [vmem:[#allocation56_spill] sm:$0xff] %v3584_v24  ;;  %4336 = vst [vmem:[#allocation57_spill] sm:$0xff] %v3593_v4  ;;  %1642 = vrot.lane.b32.xlu0 %v1638_v25, %s2576_s29  ;;  %v3605_v24 = vmul.f32 %v3136_v3, %v1080_v39  ;;  %v3610_v4 = vld [vmem:[%s2710_s10 + $0x29] sm:$0x3f]  ;;  %v3617_v25 = vmul.f32 %v3132_v62, %v1086_v5  ;;  %v3620_v55 = vmul.f32 %v3136_v3, %v1086_v5  ;;  %s3916_s23 = sld [smem:[#allocation2 + $0x19]] }
 0x19c   : > { %4337 = vst [vmem:[#allocation58_spill] sm:$0xff] %v3596_v1  ;;  %4338 = vst [vmem:[#allocation59_spill] sm:$0xff] %v3602_v20  ;;  %v3607_v17 = vpop.permute.xlu1 %1175  ;;  %v3623_v20 = vmul.f32 %v3132_v62, %v1092_v10  ;;  %v1274_v1 = vstv %s3541_s25  ;;  %v1666_v5 = vmul.f32 %v3404_v54, %v1665_v0  ;;  %v1719_v62 = vmul.f32 %v3610_v4, %v1717_v49  ;;  %s3929_s15 = sld [smem:[#allocation2 + $0x34]] }
 0x19d   : > { %4339 = vst [vmem:[#allocation60_spill] sm:$0xff] %v3605_v24  ;;  %4340 = vst [vmem:[#allocation61_spill] sm:$0xff] %v3607_v17  ;;  %v3625_v39 = vpop.permute.xlu0 %1173  ;;  %v3628_v24 = vld [vmem:[%s2710_s10 + $0x21] sm:$0xff]  ;;  %v3634_v17 = vmul.f32 %v3136_v3, %v1092_v10  ;;  %v1280_v3 = vstv %s3558_s28  ;;  %v697_v54 = vadd.f32 %v3245_v58, %v3154_v15  ;;  %v767_v58 = vadd.f32 %v3288_v6, %v3243_v47  ;;  %s3944_s24 = sld [smem:[#allocation2 + $0x4f]] }
 0x19e   : > { %4341 = vst [vmem:[#allocation62_spill] sm:$0xff] %v3617_v25  ;;  %4342 = vst [vmem:[#allocation63_spill] sm:$0xff] %v3620_v55  ;;  %1658 = vrot.lane.b32.xlu1 %v1653_v52, %s2576_s29  ;;  %v1667_v25 = vmul.f32 %v3399_v11, %v1665_v0  ;;  %v1731_v55 = vstv %s3549_s27  ;;  %v1718_v52 = vmul.f32 %v3628_v24, %v1717_v49  ;;  %v1745_v11 = vstv %s3569_s30  ;;  %s3960_s25 = sld [smem:[#allocation2 + $0x6a]] }
 0x19f   : > { %4343 = vst [vmem:[#allocation64_spill] sm:$0xff] %v3623_v20  ;;  %4344 = vst [vmem:[#allocation65_spill] sm:$0xff] %v3625_v39  ;;  %1656 = vrot.lane.b32.xlu0 %v1652_v27, %s2576_s29  ;;  %v3643_v39 = vmul.f32 %v3297_v57, %v1268_v29  ;;  %v3646_v20 = vmul.f32 %v3302_v35, %v1268_v29  ;;  %v3656_v0 = vmul.f32 %v3297_v57, %v1274_v1  ;;  %s3973_s27 = sld [smem:[#allocation2 + $0x85]] }
 0x1a0   : > { %v3649_v10 = vpop.permute.xlu1 %1189  ;;  %v3659_v27 = vmul.f32 %v3302_v35, %v1274_v1  ;;  %v696_v29 = vadd.f32 %v3249_v16, %v3159_v21  ;;  %v1732_v49 = vmul.f32 %v3628_v24, %v1731_v55  ;;  %v1759_v1 = vstv %s3590_s4  ;;  %s3975_s28 = sld [smem:[#allocation2 + $0x12]] }
 0x1a1   : > { %4345 = vst [vmem:[#allocation66_spill] sm:$0xff] %v3643_v39  ;;  %4346 = vst [vmem:[#allocation67_spill] sm:$0xff] %v3646_v20  ;;  %v3665_v20 = vpop.permute.xlu0 %1187  ;;  %v1733_v39 = vmul.f32 %v3610_v4, %v1731_v55  ;;  %v3676_v15 = vmul.f32 %v3297_v57, %v1280_v3  ;;  %v3679_v21 = vmul.f32 %v3302_v35, %v1280_v3  ;;  %s3988_s30 = sld [smem:[#allocation2 + $0xa0]] }
 0x1a2   : > { %4347 = vst [vmem:[#allocation68_spill] sm:$0xff] %v3656_v0  ;;  %v711_v0 = vadd.f32 %v3256_v48, %v3174_v28  ;;  %1672 = vrot.lane.b32.xlu1 %v1667_v25, %s2576_s29  ;;  %v781_v16 = vadd.f32 %v3299_v9, %v697_v54  ;;  %v1747_v55 = vmul.f32 %v3610_v4, %v1745_v11  ;;  %s3990_s4 = sld [smem:[#allocation2 + $0x2d]] }
 0x1a3   : > { %4348 = vst [vmem:[#allocation69_spill] sm:$0xff] %v3679_v21  ;;  %1670 = vrot.lane.b32.xlu0 %v1666_v5, %s2576_s29  ;;  %v1746_v28 = vmul.f32 %v3628_v24, %v1745_v11  ;;  %v710_v48 = vadd.f32 %v3258_v32, %v3179_v37  ;;  %v766_v25 = vadd.f32 %v3290_v7, %v3247_v26  ;;  %v1773_v21 = vstv %s3613_s5  ;;  %s4003_s5 = sld [smem:[#allocation2 + $0x1a]] }
 0x1a4   : > { %v780_v3 = vadd.f32 %v3304_v8, %v696_v29  ;;  %v3692_v35 = vpop.permute.xlu1 %1203  ;;  %v725_v47 = vadd.f32 %v3264_v33, %v3194_v36  ;;  %v851_v6 = vadd.f32 %v3342_v43, %v767_v58  ;;  %v3701_v11 = vmul.f32 %v3610_v4, %v1759_v1 }
 0x1a5   : > { %v3698_v9 = vpop.permute.xlu0 %1201  ;;  %v1286_v37 = vstv %s3631_s6  ;;  %v795_v32 = vadd.f32 %v3310_v61, %v711_v0  ;;  %v794_v26 = vadd.f32 %v3312_v18, %v710_v48  ;;  %v850_v7 = vadd.f32 %v3344_v41, %v766_v25  ;;  %v4356_v25 = vld [vmem:[#allocation37_spill] sm:$0xff]  ;;  %s4006_s6 = sld [smem:[#allocation2 + $0x48]] }
 0x1a6   : > { %1724 = vrot.lane.b32.xlu1 %v1719_v62, %s2575_s21  ;;  %v3709_v36 = vmul.f32 %v3628_v24, %v1759_v1  ;;  %v724_v33 = vadd.f32 %v3266_v46, %v3199_v59  ;;  %v739_v8 = vadd.f32 %v3272_v34, %v3212_v45  ;;  %v860_v43 = vadd.f32 %v3520_v30, %v781_v16  ;;  %v4355_v16 = vld [vmem:[#allocation17_spill] sm:$0xff] }
 0x1a7   : > { %1722 = vrot.lane.b32.xlu0 %v1718_v52, %s2575_s21  ;;  %v3718_v61 = vmul.f32 %v3610_v4, %v1773_v21  ;;  %v738_v18 = vadd.f32 %v3274_v51, %v3217_v31  ;;  %v859_v41 = vadd.f32 %v3523_v56, %v780_v3  ;;  %v3726_v5 = vmul.f32 %v3628_v24, %v1773_v21 }
 0x1a8   : > { %v3723_v54 = vpop.permute.xlu1 %1217  ;;  %v1787_v59 = vstv %s3653_s7  ;;  %v753_v45 = vadd.f32 %v3280_v2, %v3230_v50  ;;  %v904_v46 = vadd.f32 %v3350_v44, %v860_v43  ;;  %v890_v34 = vadd.f32 %v3562_v40, %v851_v6  ;;  %v4357_v6 = vld [vmem:[#allocation45_spill] sm:$0xff]  ;;  %s4020_s7 = sld [smem:[#allocation2 + $0x35]] }
 0x1a9   : > { %v3733_v30 = vpop.permute.xlu0 %1215  ;;  %v1801_v62 = vstv %s3669_s8  ;;  %v903_v31 = vadd.f32 %v3352_v42, %v859_v41  ;;  %v866_v51 = vadd.f32 %v3525_v63, %v795_v32  ;;  %v865_v56 = vadd.f32 %v3532_v12, %v794_v26  ;;  %v4349_v12 = vld [vmem:[#allocation24_spill] sm:$0xff]  ;;  %v4358_v26 = vld [vmem:[#allocation46_spill] sm:$0xff]  ;;  %s4024_s8 = sld [smem:[#allocation2 + $0x63]] }
 0x1aa   : > { %v889_v52 = vadd.f32 %v3564_v53, %v850_v7  ;;  %1738 = vrot.lane.b32.xlu1 %v1733_v39, %s2575_s21  ;;  %v809_v0 = vadd.f32 %v3318_v38, %v725_v47  ;;  %v808_v50 = vadd.f32 %v3320_v13, %v724_v33  ;;  %v974_v2 = vadd.f32 %v3390_v60, %v890_v34  ;;  %v4350_v53 = vld [vmem:[#allocation27_spill] sm:$0xff]  ;;  %v4351_v38 = vld [vmem:[#allocation16_spill] sm:$0xff]  ;;  %v4362_v34 = vld [vmem:[#allocation29_spill] sm:$0xff] }
 0x1ab   : > { %v988_v44 = vadd.f32 %v3401_v22, %v904_v46  ;;  %1736 = vrot.lane.b32.xlu0 %v1732_v49, %s2575_s21  ;;  %v823_v42 = vadd.f32 %v3326_v23, %v739_v8  ;;  %v822_v63 = vadd.f32 %v3328_v14, %v738_v18  ;;  %v987_v29 = vadd.f32 %v4350_v53, %v903_v31  ;;  %v4352_v13 = vld [vmem:[#allocation36_spill] sm:$0xff]  ;;  %v4353_v23 = vld [vmem:[#allocation11_spill] sm:$0xff]  ;;  %v4363_v31 = vld [vmem:[#allocation53_spill] sm:$0xff] }
 0x1ac   : > { %v973_v40 = vadd.f32 %v4349_v12, %v889_v52  ;;  %v3750_v39 = vpop.permute.xlu1 %1231  ;;  %v918_v1 = vadd.f32 %v4351_v38, %v866_v51  ;;  %v1058_v21 = vadd.f32 %v4352_v13, %v974_v2  ;;  %v3757_v22 = vmul.f32 %v3610_v4, %v1787_v59  ;;  %v4354_v14 = vld [vmem:[#allocation12_spill] sm:$0xff]  ;;  %v4364_v52 = vld [vmem:[#allocation14_spill] sm:$0xff]  ;;  %v4369_v38 = vld [vmem:[#allocation19_spill] sm:$0xff] }
 0x1ad   : > { %v3754_v60 = vpop.permute.xlu0 %1229  ;;  %v3760_v49 = vmul.f32 %v3628_v24, %v1787_v59  ;;  %v752_v58 = vadd.f32 %v4354_v14, %v4353_v23  ;;  %v917_v48 = vadd.f32 %v4355_v16, %v865_v56  ;;  %v3770_v47 = vmul.f32 %v3610_v4, %v1801_v62  ;;  %v4359_v33 = vld [vmem:[#allocation28_spill] sm:$0xff]  ;;  %v4361_v59 = vld [vmem:[#allocation49_spill] sm:$0xff]  ;;  %v4365_v2 = vld [vmem:[#allocation18_spill] sm:$0xff] }
 0x1ae   : > { %v1057_v3 = vadd.f32 %v4356_v25, %v973_v40  ;;  %1752 = vrot.lane.b32.xlu1 %v1747_v55, %s2575_s21  ;;  %v872_v32 = vadd.f32 %v4357_v6, %v809_v0  ;;  %v871_v7 = vadd.f32 %v4358_v26, %v808_v50  ;;  %v1002_v8 = vadd.f32 %v4359_v33, %v918_v1  ;;  %v4360_v18 = vld [vmem:[#allocation48_spill] sm:$0xff]  ;;  %v4366_v12 = vld [vmem:[#allocation38_spill] sm:$0xff]  ;;  %v4370_v1 = vld [vmem:[#allocation39_spill] sm:$0xff] }
 0x1af   : > { %v1066_v43 = vadd.f32 %v3572_v19, %v988_v44  ;;  %1750 = vrot.lane.b32.xlu0 %v1746_v28, %s2575_s21  ;;  %v878_v41 = vadd.f32 %v4360_v18, %v823_v42  ;;  %v877_v46 = vadd.f32 %v4361_v59, %v822_v63  ;;  %v1001_v55 = vadd.f32 %v4362_v34, %v917_v48  ;;  %v4367_v53 = vld [vmem:[#allocation64_spill] sm:$0xff]  ;;  %v4368_v28 = vld [vmem:[#allocation15_spill] sm:$0xff]  ;;  %v4372_v14 = vld [vmem:[#allocation54_spill] sm:$0xff] }
 0x1b0   : > { %v1065_v51 = vadd.f32 %v4363_v31, %v987_v29  ;;  %v3781_v56 = vpop.permute.xlu1 %1245  ;;  %v837_v0 = vadd.f32 %v4364_v52, %v753_v45  ;;  %v932_v50 = vadd.f32 %v4365_v2, %v872_v32  ;;  %v1096_v19 = vadd.f32 %v4367_v53, %v1058_v21  ;;  %v4371_v45 = vld [vmem:[#allocation30_spill] sm:$0xff]  ;;  %v4373_v21 = vld [vmem:[#allocation61_spill] sm:$0xff]  ;;  %v4375_v32 = vld [vmem:[#allocation56_spill] sm:$0xff] }
 0x1b1   : > { %v1110_v40 = vadd.f32 %v4366_v12, %v1066_v43  ;;  %v3787_v44 = vpop.permute.xlu0 %1243  ;;  %v836_v42 = vadd.f32 %v4368_v28, %v752_v58  ;;  %v931_v63 = vadd.f32 %v4369_v38, %v871_v7  ;;  %v1095_v29 = vadd.f32 %v3634_v17, %v1057_v3  ;;  %v4374_v58 = vld [vmem:[#allocation31_spill] sm:$0xff]  ;;  %v4376_v3 = vld [vmem:[#allocation65_spill] sm:$0xff]  ;;  %v4377_v33 = vld [vmem:[#allocation20_spill] sm:$0xff] }
 0x1b2   : > { %v1109_v13 = vadd.f32 %v4370_v1, %v1065_v51  ;;  %1766 = vrot.lane.b32.xlu1 %v3701_v11, %s2575_s21  ;;  %v1016_v23 = vadd.f32 %v4371_v45, %v932_v50  ;;  %v1072_v16 = vadd.f32 %v4372_v14, %v1002_v8  ;;  %v1180_v48 = vadd.f32 %v4373_v21, %v1096_v19  ;;  %v4378_v18 = vld [vmem:[#allocation50_spill] sm:$0xff]  ;;  %v4379_v59 = vld [vmem:[#allocation40_spill] sm:$0xff]  ;;  %v4381_v52 = vld [vmem:[#allocation51_spill] sm:$0xff] }
 0x1b3   : > { %v1194_v25 = vadd.f32 %v3649_v10, %v1110_v40  ;;  %1764 = vrot.lane.b32.xlu0 %v3709_v36, %s2575_s21  ;;  %v1015_v6 = vadd.f32 %v4374_v58, %v931_v63  ;;  %v1071_v17 = vadd.f32 %v4375_v32, %v1001_v55  ;;  %v1179_v26 = vadd.f32 %v4376_v3, %v1095_v29  ;;  %v4380_v36 = vld [vmem:[#allocation21_spill] sm:$0xff]  ;;  %v4387_v38 = vld [vmem:[#allocation58_spill] sm:$0xff]  ;;  %v4392_v58 = vld [vmem:[#allocation43_spill] sm:$0xff] }
 0x1b4   : > { %v1193_v11 = vadd.f32 %v3665_v20, %v1109_v13  ;;  %v1260_v7 = vpop.permute.xlu1 %1259  ;;  %v946_v43 = vadd.f32 %v4377_v33, %v878_v41  ;;  %v884_v8 = vadd.f32 %v4378_v18, %v837_v0  ;;  %v1124_v34 = vadd.f32 %v4379_v59, %v1072_v16  ;;  %v4382_v2 = vld [vmem:[#allocation41_spill] sm:$0xff]  ;;  %v4383_v20 = vld [vmem:[#allocation32_spill] sm:$0xff]  ;;  %v4388_v13 = vld [vmem:[#allocation67_spill] sm:$0xff] }
 0x1b5   : > { %v3810_v31 = vadd.f32 %v1260_v7, %v1180_v48  ;;  %v1258_v10 = vpop.permute.xlu0 %1257  ;;  %v945_v51 = vadd.f32 %v4380_v36, %v877_v46  ;;  %v883_v55 = vadd.f32 %v4381_v52, %v836_v42  ;;  %v1123_v50 = vadd.f32 %v4382_v2, %v1071_v17  ;;  %v4384_v0 = vld [vmem:[#allocation57_spill] sm:$0xff]  ;;  %v4385_v46 = vld [vmem:[#allocation66_spill] sm:$0xff]  ;;  %v4391_v48 = vld [vmem:[#allocation23_spill] sm:$0xff] }
 0x1b6   : > { %v3817_v12 = vadd.f32 %v1258_v10, %v1179_v26  ;;  %1780 = vrot.lane.b32.xlu1 %v3718_v61, %s2575_s21  ;;  %v1030_v41 = vadd.f32 %v4383_v20, %v946_v43  ;;  %v1078_v40 = vadd.f32 %v4384_v0, %v1016_v23  ;;  %v1208_v53 = vadd.f32 %v3692_v35, %v1124_v34  ;;  %v4386_v28 = vld [vmem:[#allocation33_spill] sm:$0xff]  ;;  %v4389_v45 = vld [vmem:[#allocation22_spill] sm:$0xff]  ;;  %v4394_v26 = vld [vmem:[#allocation59_spill] sm:$0xff] }
 0x1b7   : > { %1778 = vrot.lane.b32.xlu0 %v3726_v5, %s2575_s21  ;;  %v1272_v19 = vadd.f32 %v4385_v46, %v1194_v25  ;;  %v1029_v42 = vadd.f32 %v4386_v28, %v945_v51  ;;  %v1077_v63 = vadd.f32 %v4387_v38, %v1015_v6  ;;  %v1207_v61 = vadd.f32 %v3698_v9, %v1123_v50  ;;  %v4390_v35 = vld [vmem:[#allocation42_spill] sm:$0xff]  ;;  %v4396_v43 = vld [vmem:[#allocation35_spill] sm:$0xff]  ;;  %v4402_v38 = vld [vmem:[#allocation69_spill] sm:$0xff] }
 0x1b8   : > { %v1312_v1 = vpop.permute.xlu1 %1311  ;;  %v1271_v29 = vadd.f32 %v4388_v13, %v1193_v11  ;;  %v960_v23 = vadd.f32 %v4389_v45, %v884_v8  ;;  %v1138_v14 = vadd.f32 %v4390_v35, %v1078_v40  ;;  %v1802_v21 = vmul.f32 %v3628_v24, %v1801_v62  ;;  %v4393_v17 = vld [vmem:[#allocation34_spill] sm:$0xff]  ;;  %v4395_v62 = vld [vmem:[#allocation68_spill] sm:$0xff]  ;;  %v4399_v2 = vld [vmem:[#allocation47_spill] sm:$0xff] }
 0x1b9   : > { %v3835_v16 = vadd.f32 %v1312_v1, %v1272_v19  ;;  %v1310_v5 = vpop.permute.xlu0 %1309  ;;  %v959_v25 = vadd.f32 %v4391_v48, %v883_v55  ;;  %v1137_v32 = vadd.f32 %v4392_v58, %v1077_v63  ;;  %v1815_v9 = vstv %s3795_s26  ;;  %v4397_v8 = vld [vmem:[#allocation60_spill] sm:$0xff]  ;;  %v4401_v19 = vld [vmem:[#allocation63_spill] sm:$0xff]  ;;  %s4039_s26 = sld [smem:[#allocation2 + $0x50]] }
 0x1ba   : > { %v3842_v6 = vadd.f32 %v1310_v5, %v1271_v29  ;;  %1794 = vrot.lane.b32.xlu1 %v3757_v22, %s2575_s21  ;;  %v1044_v3 = vadd.f32 %v4393_v17, %v960_v23  ;;  %v1084_v11 = vadd.f32 %v4394_v26, %v1030_v41  ;;  %v1222_v7 = vadd.f32 %v3723_v54, %v1138_v14  ;;  %v4398_v54 = vld [vmem:[#allocation44_spill] sm:$0xff]  ;;  %v4400_v41 = vld [vmem:[#allocation62_spill] sm:$0xff] }
 0x1bb   : > { %1792 = vrot.lane.b32.xlu0 %v3760_v49, %s2575_s21  ;;  %v1278_v33 = vadd.f32 %v4395_v62, %v1208_v53  ;;  %v1043_v18 = vadd.f32 %v4396_v43, %v959_v25  ;;  %v1083_v22 = vadd.f32 %v4397_v8, %v1029_v42  ;;  %v1221_v59 = vadd.f32 %v3733_v30, %v1137_v32  ;;  %v4404_v13 = vld [vmem:[#allocation52_spill] sm:$0xff] }
 0x1bc   : > { %v1326_v34 = vpop.permute.xlu1 %1325  ;;  %v1277_v10 = vadd.f32 %v3659_v27, %v1207_v61  ;;  %v1152_v36 = vadd.f32 %v4398_v54, %v1084_v11  ;;  %v1288_v52 = vmul.f32 %v3297_v57, %v1286_v37  ;;  %v1292_v55 = vstv %s3812_s9  ;;  %v4403_v61 = vld [vmem:[#allocation13_spill] sm:$0xff]  ;;  %s4044_s9 = sld [smem:[#allocation2 + $0x7e]] }
 0x1bd   : > { %v3862_v51 = vadd.f32 %v1326_v34, %v1278_v33  ;;  %v1324_v49 = vpop.permute.xlu0 %1323  ;;  %v1151_v50 = vadd.f32 %v4399_v2, %v1083_v22  ;;  %v1817_v27 = vmul.f32 %v3610_v4, %v1815_v9  ;;  %v1816_v30 = vmul.f32 %v3628_v24, %v1815_v9 }
 0x1be   : > { %v3869_v20 = vadd.f32 %v1324_v49, %v1277_v10  ;;  %1808 = vrot.lane.b32.xlu1 %v3770_v47, %s2576_s29  ;;  %v1090_v0 = vadd.f32 %v4400_v41, %v1044_v3  ;;  %v1236_v40 = vadd.f32 %v3750_v39, %v1152_v36  ;;  %v1284_v53 = vadd.f32 %v3676_v15, %v1222_v7  ;;  %v4405_v15 = vld [vmem:[#allocation55_spill] sm:$0xff] }
 0x1bf   : > { %1806 = vrot.lane.b32.xlu0 %v1802_v21, %s2576_s29  ;;  %v1829_v46 = vstv %s3827_s22  ;;  %v1089_v28 = vadd.f32 %v4401_v19, %v1043_v18  ;;  %v1235_v42 = vadd.f32 %v3754_v60, %v1151_v50  ;;  %v1283_v63 = vadd.f32 %v4402_v38, %v1221_v59  ;;  %s4057_s22 = sld [smem:[#allocation2 + $0x6b]] }
 0x1c0   : > { %v1340_v47 = vpop.permute.xlu1 %1339  ;;  %v1287_v1 = vmul.f32 %v4403_v61, %v1286_v37  ;;  %v1166_v39 = vadd.f32 %v4404_v13, %v1090_v0  ;;  %v1831_v60 = vmul.f32 %v3610_v4, %v1829_v46  ;;  %v1294_v14 = vmul.f32 %v3297_v57, %v1292_v55  ;;  %v3947_v0 = vld [vmem:[%s2710_s10 + $0x22] sm:$0xff] }
 0x1c1   : > { %v3889_v29 = vadd.f32 %v1340_v47, %v1284_v53  ;;  %v1338_v45 = vpop.permute.xlu0 %1337  ;;  %v1165_v23 = vadd.f32 %v4405_v15, %v1089_v28  ;;  %v1290_v37 = vadd.f32 %v1288_v52, %v1236_v40  ;;  %v1830_v21 = vmul.f32 %v3628_v24, %v1829_v46 }
 0x1c2   : > { %v3892_v35 = vadd.f32 %v1338_v45, %v1283_v63  ;;  %1822 = vrot.lane.b32.xlu1 %v1817_v27, %s2576_s29  ;;  %v1250_v5 = vadd.f32 %v3781_v56, %v1166_v39  ;;  %v1843_v48 = vstv %s3853_s11  ;;  %v1289_v32 = vadd.f32 %v1287_v1, %v1235_v42  ;;  %s4062_s11 = sld [smem:[#allocation2 + $0x99]] }
 0x1c3   : > { %1820 = vrot.lane.b32.xlu0 %v1816_v30, %s2576_s29  ;;  %v1249_v25 = vadd.f32 %v3787_v44, %v1165_v23  ;;  %v1293_v9 = vmul.f32 %v4403_v61, %v1292_v55  ;;  %v1298_v17 = vstv %s3859_s12  ;;  %v1845_v11 = vmul.f32 %v3610_v4, %v1843_v48  ;;  %v3941_v30 = vld [vmem:[%s2710_s10 + $0x2a] sm:$0x3f]  ;;  %s4087_s12 = sld [smem:[#allocation2 + $0xa1]] }
 0x1c4   : > { %v1354_v58 = vpop.permute.xlu1 %1353  ;;  %v1296_v7 = vadd.f32 %v1294_v14, %v1250_v5  ;;  %v1844_v44 = vmul.f32 %v3628_v24, %v1843_v48  ;;  %v1300_v62 = vmul.f32 %v3297_v57, %v1298_v17  ;;  %v1857_v33 = vstv %s3880_s18  ;;  %s2351_s18 = sld [smem:[#allocation2 + $0x30]] }
 0x1c5   : > { %v3906_v3 = vadd.f32 %v1354_v58, %v1290_v37  ;;  %v1352_v26 = vpop.permute.xlu0 %1351  ;;  %v1295_v18 = vadd.f32 %v1293_v9, %v1249_v25  ;;  %v1299_v8 = vmul.f32 %v4403_v61, %v1298_v17  ;;  %v1859_v10 = vmul.f32 %v3610_v4, %v1857_v33 }
 0x1c6   : > { %v3908_v56 = vadd.f32 %v1352_v26, %v1289_v32  ;;  %1836 = vrot.lane.b32.xlu1 %v1831_v60, %s2576_s29  ;;  %v1302_v57 = vadd.f32 %v1300_v62, %v3810_v31  ;;  %v1858_v54 = vmul.f32 %v3628_v24, %v1857_v33  ;;  %v1871_v36 = vstv %s3901_s19  ;;  %v4406_v26 = vld [vmem:[#allocation25_spill] sm:$0xff]  ;;  %s2352_s19 = sld [smem:[#allocation2 + $0x4b]] }
 0x1c7   : > { %1834 = vrot.lane.b32.xlu0 %v1830_v21, %s2576_s29  ;;  %v1301_v52 = vadd.f32 %v1299_v8, %v3817_v12  ;;  %v1873_v27 = vmul.f32 %v3610_v4, %v1871_v36  ;;  %v1872_v31 = vmul.f32 %v3628_v24, %v1871_v36  ;;  %v1923_v41 = vstv %s3916_s23  ;;  %s2354_s23 = sld [smem:[#allocation2 + $0x81]] }
 0x1c8   : > { %v1368_v43 = vpop.permute.xlu1 %1367  ;;  %v1925_v19 = vmul.f32 %v3941_v30, %v1923_v41  ;;  %v1924_v28 = vmul.f32 %v3947_v0, %v1923_v41  ;;  %v1937_v42 = vstv %s3929_s15  ;;  %v1951_v1 = vstv %s3944_s24  ;;  %s2355_s15 = sld [smem:[#allocation2 + $0x9c]] }
 0x1c9   : > { %v3919_v22 = vadd.f32 %v1368_v43, %v1296_v7  ;;  %v1366_v59 = vpop.permute.xlu0 %1365  ;;  %v1938_v61 = vmul.f32 %v3947_v0, %v1937_v42  ;;  %v1953_v45 = vmul.f32 %v3941_v30, %v1951_v1  ;;  %v1952_v15 = vmul.f32 %v3947_v0, %v1951_v1  ;;  %s2370_s24 = sld [smem:[#allocation2 + $0x18]] }
 0x1ca   : > { %v3921_v34 = vadd.f32 %v1366_v59, %v1295_v18  ;;  %1850 = vrot.lane.b32.xlu1 %v1845_v11, %s2576_s29  ;;  %v1965_v23 = vstv %s3960_s25  ;;  %v1979_v21 = vstv %s3973_s27  ;;  %v1475_v25 = vstv %s3975_s28  ;;  %s2371_s25 = sld [smem:[#allocation2 + $0x33]] }
 0x1cb   : > { %1848 = vrot.lane.b32.xlu0 %v1844_v44, %s2576_s29  ;;  %v1967_v5 = vmul.f32 %v3941_v30, %v1965_v23  ;;  %v1966_v37 = vmul.f32 %v3947_v0, %v1965_v23  ;;  %v1981_v17 = vmul.f32 %v3941_v30, %v1979_v21  ;;  %v1993_v11 = vstv %s3988_s30  ;;  %v4407_v44 = vld [vmem:[#allocation26_spill] sm:$0xff]  ;;  %s4167_s27 = sld [smem:[#allocation2 + $0x4e]]  ;;  %s2403_s30 = smul.u32 96, %s4413_s16 }
 0x1cc   : > { %v1382_v49 = vpop.permute.xlu1 %1381  ;;  %v1476_v62 = vmul.f32 %v4407_v44, %v1475_v25  ;;  %v1481_v33 = vstv %s3990_s4  ;;  %v2035_v1 = vstv %s4039_s26  ;;  %s4171_s28 = sld [smem:[#allocation2 + $0x69]] }
 0x1cd   : > { %v3932_v55 = vadd.f32 %v1382_v49, %v1302_v57  ;;  %v1380_v2 = vpop.permute.xlu0 %1379  ;;  %v2007_v57 = vstv %s4003_s5  ;;  %v1482_v49 = vmul.f32 %v4407_v44, %v1481_v33  ;;  %s4187_s4 = sld [smem:[#allocation2 + $0x84]] }
 0x1ce   : > { %v3934_v50 = vadd.f32 %v1380_v2, %v1301_v52  ;;  %1864 = vrot.lane.b32.xlu1 %v1859_v10, %s2576_s29  ;;  %v1483_v10 = vmul.f32 %v4406_v26, %v1481_v33  ;;  %v1487_v52 = vstv %s4006_s6  ;;  %v2008_v41 = vmul.f32 %v3947_v0, %v2007_v57  ;;  %s4198_s6 = scalar_lea.vmem %s4270_s3, %s2403_s30 }
 0x1cf   : > { %1862 = vrot.lane.b32.xlu0 %v1858_v54, %s2576_s29 }
 0x1d0   : > { %v1396_v12 = vpop.permute.xlu1 %1395 }
 0x1d1   : > { %v3950_v40 = vadd.f32 %v1396_v12, %v3835_v16  ;;  %v1394_v53 = vpop.permute.xlu0 %1393  ;;  %v1489_v12 = vmul.f32 %v4406_v26, %v1487_v52 }
 0x1d2   : > { %v3953_v46 = vadd.f32 %v1394_v53, %v3842_v6  ;;  %1878 = vrot.lane.b32.xlu1 %v1873_v27, %s2576_s29  ;;  %v1939_v6 = vmul.f32 %v3941_v30, %v1937_v42  ;;  %v2009_v27 = vmul.f32 %v3941_v30, %v2007_v57 }
 0x1d3   : > { %1876 = vrot.lane.b32.xlu0 %v1872_v31, %s2576_s29 }
 0x1d4   : > { %v1410_v47 = vpop.permute.xlu1 %1409  ;;  %v1478_v36 = vadd.f32 %v1476_v62, %v3953_v46  ;;  %v2470_v62 = vld [vmem:[%s2710_s10 + $0x28] sm:$0x3f] }
 0x1d5   : > { %v3963_v16 = vadd.f32 %v1410_v47, %v3862_v51  ;;  %v1408_v38 = vpop.permute.xlu0 %1407 }
 0x1d6   : > { %v3966_v63 = vadd.f32 %v1408_v38, %v3869_v20  ;;  %1930 = vrot.lane.b32.xlu1 %v1925_v19, %s2575_s21  ;;  %v1488_v19 = vmul.f32 %v4407_v44, %v1487_v52 }
 0x1d7   : > { %1928 = vrot.lane.b32.xlu0 %v1924_v28, %s2575_s21  ;;  %v1485_v31 = vadd.f32 %v1483_v10, %v3963_v16  ;;  %v1493_v28 = vstv %s4024_s8 }
 0x1d8   : > { %v1424_v13 = vpop.permute.xlu1 %1423  ;;  %v1484_v46 = vadd.f32 %v1482_v49, %v3966_v63  ;;  %v2077_v49 = vstv %s4087_s12 }
 0x1d9   : > { %v3978_v51 = vadd.f32 %v1424_v13, %v3889_v29  ;;  %v1422_v20 = vpop.permute.xlu0 %1421 }
 0x1da   : > { %v3981_v39 = vadd.f32 %v1422_v20, %v3892_v35  ;;  %1944 = vrot.lane.b32.xlu1 %v1939_v6, %s2575_s21 }
 0x1db   : > { %1942 = vrot.lane.b32.xlu0 %v1938_v61, %s2575_s21  ;;  %v1491_v6 = vadd.f32 %v1489_v12, %v3978_v51  ;;  %v1495_v61 = vmul.f32 %v4406_v26, %v1493_v28  ;;  %v2037_v51 = vmul.f32 %v3941_v30, %v2035_v1  ;;  %v2078_v12 = vmul.f32 %v3947_v0, %v2077_v49 }
 0x1dc   : > { %v1438_v60 = vpop.permute.xlu1 %1437  ;;  %v1490_v20 = vadd.f32 %v1488_v19, %v3981_v39 }
 0x1dd   : > { %v3993_v29 = vadd.f32 %v1438_v60, %v3906_v3  ;;  %v1436_v35 = vpop.permute.xlu0 %1435  ;;  %v1980_v3 = vmul.f32 %v3947_v0, %v1979_v21  ;;  %v2049_v21 = vstv %s4057_s22 }
 0x1de   : > { %v3996_v14 = vadd.f32 %v1436_v35, %v3908_v56  ;;  %1958 = vrot.lane.b32.xlu1 %v1953_v45, %s2575_s21  ;;  %v1477_v56 = vmul.f32 %v4406_v26, %v1475_v25  ;;  %v1494_v45 = vmul.f32 %v4407_v44, %v1493_v28 }
 0x1df   : > { %1956 = vrot.lane.b32.xlu0 %v1952_v15, %s2575_s21  ;;  %v1499_v15 = vstv %s4044_s9 }
 0x1e0   : > { %v1452_v48 = vpop.permute.xlu1 %1451  ;;  %v1479_v59 = vadd.f32 %v1477_v56, %v3950_v40  ;;  %v2021_v40 = vstv %s4020_s7  ;;  %v1501_v39 = vmul.f32 %v4406_v26, %v1499_v15  ;;  %v1496_v25 = vadd.f32 %v1494_v45, %v3996_v14  ;;  %s4203_s7 = sld [smem:[#allocation2 + $0x9f]] }
 0x1e1   : > { %v4009_v58 = vadd.f32 %v1452_v48, %v3919_v22  ;;  %v1450_v32 = vpop.permute.xlu0 %1449  ;;  %v1995_v22 = vmul.f32 %v3941_v30, %v1993_v11  ;;  %v2023_v38 = vmul.f32 %v3941_v30, %v2021_v40  ;;  %v2022_v63 = vmul.f32 %v3947_v0, %v2021_v40 }
 0x1e2   : > { %v4012_v9 = vadd.f32 %v1450_v32, %v3921_v34  ;;  %1972 = vrot.lane.b32.xlu1 %v1967_v5, %s2575_s21  ;;  %v1994_v34 = vmul.f32 %v3947_v0, %v1993_v11  ;;  %v1497_v5 = vadd.f32 %v1495_v61, %v3993_v29  ;;  %v1500_v32 = vmul.f32 %v4407_v44, %v1499_v15 }
 0x1e3   : > { %1970 = vrot.lane.b32.xlu0 %v1966_v37, %s2575_s21  ;;  %v2036_v37 = vmul.f32 %v3947_v0, %v2035_v1  ;;  %v2051_v29 = vmul.f32 %v3941_v30, %v2049_v21  ;;  %v1503_v26 = vadd.f32 %v1501_v39, %v4009_v58 }
 0x1e4   : > { %v1466_v7 = vpop.permute.xlu1 %1465  ;;  %v1502_v44 = vadd.f32 %v1500_v32, %v4012_v9 }
 0x1e5   : > { %v4027_v43 = vadd.f32 %v1466_v7, %v3932_v55  ;;  %v1464_v18 = vpop.permute.xlu0 %1463  ;;  %v2050_v7 = vmul.f32 %v3947_v0, %v2049_v21 }
 0x1e6   : > { %v4030_v8 = vadd.f32 %v1464_v18, %v3934_v50  ;;  %1986 = vrot.lane.b32.xlu1 %v1981_v17, %s2575_s21  ;;  %v1505_v17 = vstv %s4062_s11 }
 0x1e7   : > { %1984 = vrot.lane.b32.xlu0 %v1980_v3, %s2575_s21  ;;  %v1507_v14 = vmul.f32 %v2470_v62, %v1505_v17 }
 0x1e8   : > { %v1519_v54 = vpop.permute.xlu1 %1518 }
 0x1e9   : > { %v4046_v55 = vadd.f32 %v1519_v54, %v1479_v59  ;;  %v1517_v2 = vpop.permute.xlu0 %1516  ;;  %v1509_v58 = vadd.f32 %v1507_v14, %v4027_v43 }
 0x1ea   : > { %v4048_v50 = vadd.f32 %v1517_v2, %v1478_v36  ;;  %2000 = vrot.lane.b32.xlu1 %v1995_v22, %s2575_s21  ;;  %v2471_v22 = vld [vmem:[%s2710_s10 + $0x20] sm:$0xff]  ;;  %s2350_s10 = sld [smem:[#allocation2 + $0x15]] }
 0x1eb   : > { %1998 = vrot.lane.b32.xlu0 %v1994_v34, %s2575_s21  ;;  %s4075_s21 = sld [smem:[#allocation2 + $0x86]]  ;;  %v1506_v59 = vmul.f32 %v2471_v22, %v1505_v17 }
 0x1ec   : > { %v1533_v53 = vpop.permute.xlu1 %1532 }
 0x1ed   : > { %v4064_v42 = vadd.f32 %v1533_v53, %v1485_v31  ;;  %v1531_v47 = vpop.permute.xlu0 %1530  ;;  %v1508_v2 = vadd.f32 %v1506_v59, %v4030_v8 }
 0x1ee   : > { %v4066_v16 = vadd.f32 %v1531_v47, %v1484_v46  ;;  %2014 = vrot.lane.b32.xlu1 %v2009_v27, %s2576_s29 }
 0x1ef   : > { %2012 = vrot.lane.b32.xlu0 %v2008_v41, %s2576_s29  ;;  %v2079_v41 = vmul.f32 %v3941_v30, %v2077_v49 }
 0x1f0   : > { %v1547_v13 = vpop.permute.xlu1 %1546  ;;  %v1681_v45 = vstv %s2350_s10 }
 0x1f1   : > { %v1551_v23 = vadd.f32 %v1547_v13, %v1491_v6  ;;  %v1545_v60 = vpop.permute.xlu0 %1544  ;;  %v2063_v33 = vstv %s4075_s21 }
 0x1f2   : > { %v1550_v35 = vadd.f32 %v1545_v60, %v1490_v20  ;;  %2028 = vrot.lane.b32.xlu1 %v2023_v38, %s2576_s29  ;;  %v2065_v54 = vmul.f32 %v3941_v30, %v2063_v33  ;;  %v2064_v36 = vmul.f32 %v3947_v0, %v2063_v33 }
 0x1f3   : > { %2026 = vrot.lane.b32.xlu0 %v2022_v63, %s2576_s29 }
 0x1f4   : > { %v1561_v48 = vpop.permute.xlu1 %1560 }
 0x1f5   : > { %v1565_v3 = vadd.f32 %v1561_v48, %v1497_v5  ;;  %v1559_v56 = vpop.permute.xlu0 %1558 }
 0x1f6   : > { %v1564_v11 = vadd.f32 %v1559_v56, %v1496_v25  ;;  %2042 = vrot.lane.b32.xlu1 %v2037_v51, %s2576_s29 }
 0x1f7   : > { %2040 = vrot.lane.b32.xlu0 %v2036_v37, %s2576_s29  ;;  %v1687_v37 = vstv %s2351_s18 }
 0x1f8   : > { %v1575_v18 = vpop.permute.xlu1 %1574  ;;  %v1689_v48 = vmul.f32 %v3610_v4, %v1687_v37  ;;  %v1688_v17 = vmul.f32 %v3628_v24, %v1687_v37 }
 0x1f9   : > { %v1579_v34 = vadd.f32 %v1575_v18, %v1503_v26  ;;  %v1573_v10 = vpop.permute.xlu0 %1572 }
 0x1fa   : > { %v1578_v57 = vadd.f32 %v1573_v10, %v1502_v44  ;;  %2056 = vrot.lane.b32.xlu1 %v2051_v29, %s2576_s29 }
 0x1fb   : > { %2054 = vrot.lane.b32.xlu0 %v2050_v7, %s2576_s29 }
 0x1fc   : > { %v1589_v52 = vpop.permute.xlu1 %1588 }
 0x1fd   : > { %v1593_v9 = vadd.f32 %v1589_v52, %v1509_v58  ;;  %v1587_v27 = vpop.permute.xlu0 %1586 }
 0x1fe   : > { %v1592_v31 = vadd.f32 %v1587_v27, %v1508_v2  ;;  %2070 = vrot.lane.b32.xlu1 %v2065_v54, %s2576_s29 }
 0x1ff   : > { %2068 = vrot.lane.b32.xlu0 %v2064_v36, %s2576_s29  ;;  %v1705_v36 = vstv %s2354_s23 }
 0x200   : > { %v1603_v40 = vpop.permute.xlu1 %1602  ;;  %v1707_v27 = vmul.f32 %v3610_v4, %v1705_v36 }
 0x201   : > { %v1607_v43 = vadd.f32 %v1603_v40, %v4046_v55  ;;  %v1601_v53 = vpop.permute.xlu0 %1600  ;;  %v1711_v40 = vstv %s2355_s15 }
 0x202   : > { %v1606_v46 = vadd.f32 %v1601_v53, %v4048_v50  ;;  %2084 = vrot.lane.b32.xlu1 %v2079_v41, %s2576_s29 }
 0x203   : > { %2082 = vrot.lane.b32.xlu0 %v2078_v12, %s2576_s29  ;;  %s2353_s29 = sld [smem:[#allocation2 + $0x66]]  ;;  %v1706_v12 = vmul.f32 %v3628_v24, %v1705_v36 }
 0x204   : > { %v1617_v8 = vpop.permute.xlu1 %1616 }
 0x205   : > { %v1621_v19 = vadd.f32 %v1617_v8, %v4064_v42  ;;  %v1615_v28 = vpop.permute.xlu0 %1614  ;;  %v1683_v42 = vmul.f32 %v3610_v4, %v1681_v45 }
 0x206   : > { %v1620_v47 = vadd.f32 %v1615_v28, %v4066_v16  ;;  %v1682_v16 = vmul.f32 %v3628_v24, %v1681_v45 }
 0x207   : > { %v1685_v21 = vadd.f32 %v1683_v42, %v1607_v43  ;;  %v1691_v26 = vadd.f32 %v1689_v48, %v1621_v19  ;;  %v1713_v19 = vmul.f32 %v3610_v4, %v1711_v40 }
 0x208   : > { %v1631_v38 = vpop.permute.xlu1 %1630  ;;  %v1684_v32 = vadd.f32 %v1682_v16, %v1606_v46  ;;  %v1690_v14 = vadd.f32 %v1688_v17, %v1620_v47 }
 0x209   : > { %v1635_v6 = vadd.f32 %v1631_v38, %v1551_v23  ;;  %v1629_v63 = vpop.permute.xlu0 %1628  ;;  %v1699_v18 = vstv %s2353_s29  ;;  %v1712_v38 = vmul.f32 %v3628_v24, %v1711_v40  ;;  %v1905_v40 = vstv %s4171_s28 }
 0x20a   : > { %v1634_v61 = vadd.f32 %v1629_v63, %v1550_v35  ;;  %v1701_v10 = vmul.f32 %v3610_v4, %v1699_v18  ;;  %v1700_v58 = vmul.f32 %v3628_v24, %v1699_v18 }
 0x20c   : > { %v1645_v1 = vpop.permute.xlu1 %1644 }
 0x20d   : > { %v1649_v55 = vadd.f32 %v1645_v1, %v1565_v3  ;;  %v1643_v13 = vpop.permute.xlu0 %1642  ;;  %v1693_v3 = vstv %s2352_s19 }
 0x20e   : > { %v1648_v50 = vadd.f32 %v1643_v13, %v1564_v11  ;;  %v1695_v7 = vmul.f32 %v3610_v4, %v1693_v3  ;;  %v1694_v33 = vmul.f32 %v3628_v24, %v1693_v3 }
 0x210   : > { %v1659_v20 = vpop.permute.xlu1 %1658  ;;  %v1696_v54 = vadd.f32 %v1694_v33, %v1634_v61  ;;  %v1702_v41 = vadd.f32 %v1700_v58, %v1648_v50 }
 0x211   : > { %v1663_v15 = vadd.f32 %v1659_v20, %v1579_v34  ;;  %v1657_v60 = vpop.permute.xlu0 %1656  ;;  %v1697_v34 = vadd.f32 %v1695_v7, %v1635_v6  ;;  %v1887_v7 = vstv %s2370_s24 }
 0x212   : > { %v1662_v51 = vadd.f32 %v1657_v60, %v1578_v57  ;;  %v1889_v33 = vmul.f32 %v3941_v30, %v1887_v7 }
 0x213   : > { %v1709_v8 = vadd.f32 %v1707_v27, %v1663_v15 }
 0x214   : > { %v1673_v5 = vpop.permute.xlu1 %1672  ;;  %v1708_v47 = vadd.f32 %v1706_v12, %v1662_v51 }
 0x215   : > { %v1677_v23 = vadd.f32 %v1673_v5, %v1593_v9  ;;  %v1671_v35 = vpop.permute.xlu0 %1670  ;;  %v1703_v9 = vadd.f32 %v1701_v10, %v1649_v55  ;;  %v1893_v10 = vstv %s2371_s25 }
 0x216   : > { %v1676_v39 = vadd.f32 %v1671_v35, %v1592_v31  ;;  %v1895_v36 = vmul.f32 %v3941_v30, %v1893_v10  ;;  %v1894_v27 = vmul.f32 %v3947_v0, %v1893_v10 }
 0x217   : > { %v1715_v1 = vadd.f32 %v1713_v19, %v1677_v23 }
 0x218   : > { %v1725_v25 = vpop.permute.xlu1 %1724  ;;  %v1714_v13 = vadd.f32 %v1712_v38, %v1676_v39 }
 0x219   : > { %v4122_v56 = vadd.f32 %v1725_v25, %v1685_v21  ;;  %v1723_v11 = vpop.permute.xlu0 %1722 }
 0x21a   : > { %v4124_v29 = vadd.f32 %v1723_v11, %v1684_v32 }
 0x21c   : > { %v1739_v62 = vpop.permute.xlu1 %1738 }
 0x21d   : > { %v4128_v44 = vadd.f32 %v1739_v62, %v1691_v26  ;;  %v1737_v22 = vpop.permute.xlu0 %1736 }
 0x21e   : > { %v4130_v59 = vadd.f32 %v1737_v22, %v1690_v14 }
 0x220   : > { %v1753_v57 = vpop.permute.xlu1 %1752 }
 0x221   : > { %v4134_v49 = vadd.f32 %v1753_v57, %v1697_v34  ;;  %v1751_v52 = vpop.permute.xlu0 %1750  ;;  %v1888_v34 = vmul.f32 %v3947_v0, %v1887_v7 }
 0x222   : > { %v4136_v2 = vadd.f32 %v1751_v52, %v1696_v54  ;;  %v1899_v52 = vstv %s4167_s27 }
 0x223   : > { %v1901_v12 = vmul.f32 %v3941_v30, %v1899_v52  ;;  %v1900_v38 = vmul.f32 %v3947_v0, %v1899_v52 }
 0x224   : > { %v1767_v31 = vpop.permute.xlu1 %1766 }
 0x225   : > { %v4140_v43 = vadd.f32 %v1767_v31, %v1703_v9  ;;  %v1765_v53 = vpop.permute.xlu0 %1764 }
 0x226   : > { %v4142_v46 = vadd.f32 %v1765_v53, %v1702_v41 }
 0x228   : > { %v1781_v28 = vpop.permute.xlu1 %1780 }
 0x229   : > { %v4146_v6 = vadd.f32 %v1781_v28, %v1709_v8  ;;  %v1779_v63 = vpop.permute.xlu0 %1778 }
 0x22a   : > { %v4148_v61 = vadd.f32 %v1779_v63, %v1708_v47 }
 0x22c   : > { %v1795_v55 = vpop.permute.xlu1 %1794 }
 0x22d   : > { %v4150_v50 = vadd.f32 %v1795_v55, %v1715_v1  ;;  %v1793_v20 = vpop.permute.xlu0 %1792 }
 0x22e   : > { %v4152_v45 = vadd.f32 %v1793_v20, %v1714_v13 }
 0x230   : > { %v1809_v15 = vpop.permute.xlu1 %1808 }
 0x231   : > { %v1807_v60 = vpop.permute.xlu0 %1806  ;;  %v1813_v14 = vadd.f32 %v1809_v15, %v4122_v56  ;;  %v1911_v15 = vstv %s4187_s4 }
 0x232   : > { %v1812_v22 = vadd.f32 %v1807_v60, %v4124_v29 }
 0x233   : > { %v1891_v58 = vadd.f32 %v1889_v33, %v1813_v14 }
 0x234   : > { %v1823_v4 = vpop.permute.xlu1 %1822  ;;  %v1890_v29 = vadd.f32 %v1888_v34, %v1812_v22  ;;  %v1917_v22 = vstv %s4203_s7 }
 0x235   : > { %v1821_v42 = vpop.permute.xlu0 %1820  ;;  %v1827_v54 = vadd.f32 %v1823_v4, %v4128_v44  ;;  %v1918_v52 = vmul.f32 %v3947_v0, %v1917_v22 }
 0x236   : > { %v1826_v9 = vadd.f32 %v1821_v42, %v4130_v59 }
 0x237   : > { %v1897_v59 = vadd.f32 %v1895_v36, %v1827_v54 }
 0x238   : > { %v1837_v51 = vpop.permute.xlu1 %1836  ;;  %v1896_v47 = vadd.f32 %v1894_v27, %v1826_v9 }
 0x239   : > { %v1835_v5 = vpop.permute.xlu0 %1834  ;;  %v1841_v53 = vadd.f32 %v1837_v51, %v4134_v49  ;;  %v1907_v49 = vmul.f32 %v3941_v30, %v1905_v40 }
 0x23a   : > { %v1840_v28 = vadd.f32 %v1835_v5, %v4136_v2  ;;  %v1906_v5 = vmul.f32 %v3947_v0, %v1905_v40 }
 0x23b   : > { %v1903_v2 = vadd.f32 %v1901_v12, %v1841_v53 }
 0x23c   : > { %v1851_v24 = vpop.permute.xlu1 %1850  ;;  %v1902_v51 = vadd.f32 %v1900_v38, %v1840_v28 }
 0x23d   : > { %v4154_v16 = vpop.permute.xlu0 %1848  ;;  %v1855_v20 = vadd.f32 %v1851_v24, %v4140_v43  ;;  %v1913_v43 = vmul.f32 %v3941_v30, %v1911_v15 }
 0x23e   : > { %v1854_v42 = vadd.f32 %v4154_v16, %v4142_v46  ;;  %v1912_v16 = vmul.f32 %v3947_v0, %v1911_v15 }
 0x23f   : > { %v1909_v46 = vadd.f32 %v1907_v49, %v1855_v20 }
 0x240   : > { %v4156_v37 = vpop.permute.xlu1 %1864  ;;  %v1908_v33 = vadd.f32 %v1906_v5, %v1854_v42 }
 0x241   : > { %v4158_v23 = vpop.permute.xlu0 %1862 }
 0x244   : > { %v4160_v35 = vpop.permute.xlu1 %1878 }
 0x245   : > { %v4162_v39 = vpop.permute.xlu0 %1876 }
 0x248   : > { %v1931_v21 = vpop.permute.xlu1 %1930 }
 0x249   : > { %v1929_v48 = vpop.permute.xlu0 %1928  ;;  %v1935_v31 = vadd.f32 %v1931_v21, %v1891_v58 }
 0x24a   : > { %v1934_v41 = vadd.f32 %v1929_v48, %v1890_v29 }
 0x24c   : > { %v1945_v25 = vpop.permute.xlu1 %1944 }
 0x24d   : > { %v1943_v32 = vpop.permute.xlu0 %1942  ;;  %v1949_v1 = vadd.f32 %v1945_v25, %v1897_v59 }
 0x24e   : > { %v1948_v55 = vadd.f32 %v1943_v32, %v1896_v47  ;;  %v1869_v32 = vadd.f32 %v4156_v37, %v4146_v6  ;;  %v1883_v37 = vadd.f32 %v4160_v35, %v4150_v50 }
 0x250   : > { %v1959_v17 = vpop.permute.xlu1 %1958  ;;  %v1915_v54 = vadd.f32 %v1913_v43, %v1869_v32 }
 0x251   : > { %v1957_v3 = vpop.permute.xlu0 %1956  ;;  %v1963_v48 = vadd.f32 %v1959_v17, %v1903_v2  ;;  %v1868_v17 = vadd.f32 %v4158_v23, %v4148_v61  ;;  %v1919_v61 = vmul.f32 %v3941_v30, %v1917_v22 }
 0x252   : > { %v1962_v25 = vadd.f32 %v1957_v3, %v1902_v51 }
 0x253   : > { %v1914_v36 = vadd.f32 %v1912_v16, %v1868_v17  ;;  %v1921_v35 = vadd.f32 %v1919_v61, %v1883_v37 }
 0x254   : > { %v4164_v11 = vpop.permute.xlu1 %1972 }
 0x255   : > { %v4169_v26 = vpop.permute.xlu0 %1970  ;;  %v1977_v34 = vadd.f32 %v4164_v11, %v1909_v46  ;;  %v1882_v11 = vadd.f32 %v4162_v39, %v4152_v45 }
 0x256   : > { %v1976_v10 = vadd.f32 %v4169_v26, %v1908_v33 }
 0x257   : > { %v1920_v45 = vadd.f32 %v1918_v52, %v1882_v11 }
 0x258   : > { %v4173_v62 = vpop.permute.xlu1 %1986 }
 0x259   : > { %v4178_v18 = vpop.permute.xlu0 %1984  ;;  %v1991_v9 = vadd.f32 %v4173_v62, %v1915_v54 }
 0x25a   : > { %v1990_v50 = vadd.f32 %v4178_v18, %v1914_v36 }
 0x25c   : > { %v4182_v57 = vpop.permute.xlu1 %2000 }
 0x25d   : > { %v4189_v56 = vpop.permute.xlu0 %1998 }
 0x25e   : > { %v2004_v0 = vadd.f32 %v4189_v56, %v1920_v45 }
 0x260   : > { %v2015_v44 = vpop.permute.xlu1 %2014 }
 0x261   : > { %v2019_v8 = vadd.f32 %v2015_v44, %v1935_v31  ;;  %v2013_v19 = vpop.permute.xlu0 %2012  ;;  %v2005_v31 = vadd.f32 %v4182_v57, %v1921_v35 }
 0x262   : > { %v2018_v63 = vadd.f32 %v2013_v19, %v1934_v41 }
 0x263   : > { %2093 = vst.msk [vmem:[%s4198_s6 + $0x8] sm:$0x3f] %vm2092_vm0, %v2019_v8 }
 0x264   : > { %2091 = vst.msk [vmem:[%s4198_s6] sm:$0xff] %vm2090_vm1, %v2018_v63  ;;  %v2029_v13 = vpop.permute.xlu1 %2028 }
 0x265   : > { %v2033_v60 = vadd.f32 %v2029_v13, %v1949_v1  ;;  %v2027_v4 = vpop.permute.xlu0 %2026 }
 0x266   : > { %v2032_v21 = vadd.f32 %v2027_v4, %v1948_v55 }
 0x267   : > { %2389 = vst.msk [vmem:[%s4198_s6 + $0x18] sm:$0x3f] %vm2092_vm0, %v2033_v60 }
 0x268   : > { %2388 = vst.msk [vmem:[%s4198_s6 + $0x10] sm:$0xff] %vm2090_vm1, %v2032_v21  ;;  %v2043_v24 = vpop.permute.xlu1 %2042 }
 0x269   : > { %v2047_v7 = vadd.f32 %v2043_v24, %v1963_v48  ;;  %v2041_v14 = vpop.permute.xlu0 %2040 }
 0x26a   : > { %v2046_v3 = vadd.f32 %v2041_v14, %v1962_v25 }
 0x26b   : > { %2391 = vst.msk [vmem:[%s4198_s6 + $0x28] sm:$0x3f] %vm2092_vm0, %v2047_v7 }
 0x26c   : > { %2390 = vst.msk [vmem:[%s4198_s6 + $0x20] sm:$0xff] %vm2090_vm1, %v2046_v3  ;;  %v2057_v6 = vpop.permute.xlu1 %2056 }
 0x26d   : > { %v2061_v23 = vadd.f32 %v2057_v6, %v1977_v34  ;;  %v2055_v58 = vpop.permute.xlu0 %2054 }
 0x26e   : > { %v2060_v26 = vadd.f32 %v2055_v58, %v1976_v10 }
 0x26f   : > { %2393 = vst.msk [vmem:[%s4198_s6 + $0x38] sm:$0x3f] %vm2092_vm0, %v2061_v23 }
 0x270   : > { %2392 = vst.msk [vmem:[%s4198_s6 + $0x30] sm:$0xff] %vm2090_vm1, %v2060_v26  ;;  %v2071_v30 = vpop.permute.xlu1 %2070 }
 0x271   : > { %v2075_v29 = vadd.f32 %v2071_v30, %v1991_v9  ;;  %v2069_v27 = vpop.permute.xlu0 %2068 }
 0x272   : > { %v2074_v39 = vadd.f32 %v2069_v27, %v1990_v50 }
 0x273   : > { %2395 = vst.msk [vmem:[%s4198_s6 + $0x48] sm:$0x3f] %vm2092_vm0, %v2075_v29 }
 0x274   : > { %2394 = vst.msk [vmem:[%s4198_s6 + $0x40] sm:$0xff] %vm2090_vm1, %v2074_v39  ;;  %v2085_v62 = vpop.permute.xlu1 %2084 }
 0x275   : > { %v2089_v18 = vadd.f32 %v2085_v62, %v2005_v31  ;;  %v2083_v41 = vpop.permute.xlu0 %2082 }
 0x276   : > { %v2088_v12 = vadd.f32 %v2083_v41, %v2004_v0 }
 0x277   : > { %2397 = vst.msk [vmem:[%s4198_s6 + $0x58] sm:$0x3f] %vm2092_vm0, %v2089_v18 }
 0x278   : > { %2396 = vst.msk [vmem:[%s4198_s6 + $0x50] sm:$0xff] %vm2090_vm1, %v2088_v12 }
 0x279 PF: > { %p15_p3 = scmp.ge.s32.totalorder %s2619_s17, 4   ;;  %s4408_s12 = smov %s2560_s13 }
 0x27a   : > { %s4409_s13 = smov %s2564_s14  ;;  %s4410_s14 = smov %s2629_s20 }
 0x27b   : > { %s4411_s15 = smov %s2619_s17  ;;  %17 = sbr.rel (!%p15_p3) target bundleno = 5 (0x5), region = 89 }
 0x280   :  { %2130 = vsyncpa [#allocation3], 1 }
 0x281   :  { %2132 = vsyncpa [#allocation3 + $0x1], 1 }
 0x282   :  { %2133 = vsyncpa [#allocation4], 1 }
 0x283   :  { %2135 = vsyncpa [#allocation4 + $0x1], 1 }
 0x284   :  { %2136 = vsyncpa [#allocation5], 1 }
 0x285   :  { %2138 = vsyncpa [#allocation5 + $0x1], 1 }

</bundles_post_ra>
